<compile_context>
chip_gen: v5e
topology: v5e:2x2
jax: 0.10.0
libtpu: 0.0.40
codegen_flags: <defaults>
</compile_context>

<pallas_src>
import jax
import jax.numpy as jnp
from jax.experimental import pallas as pl
from jax.experimental.pallas import tpu as pltpu

_INV_SQRT2 = 0.7071067811865476


def _round_up(x, m):
    return ((x + m - 1) // m) * m


def _erf(x):
    # Abramowitz & Stegun 7.1.26 (abs err < 1.5e-7) with Mosaic-lowerable ops only;
    # reproduces PyTorch's exact erf-based F.gelu to float32 precision.
    p = 0.3275911
    a1, a2, a3, a4, a5 = 0.254829592, -0.284496736, 1.421413741, -1.453152027, 1.061405429
    ax = jnp.abs(x)
    t = pl.reciprocal(1.0 + p * ax, approx=True)          # EUP rcp instead of VPU divide
    poly = ((((a5 * t + a4) * t + a3) * t + a2) * t + a1) * t
    y = 1.0 - poly * jnp.exp(-ax * ax)
    return jnp.where(x >= 0.0, y, -y)


def _gelu_exact(x):
    return 0.5 * x * (1.0 + _erf(x * _INV_SQRT2))


def _hidden_and_score(embT_ref, w1_ref, b1_ref, w2_ref, b2_ref):
    # hT[j, b] = gelu( sum_d w1[j,d]*emb[b,d] + b1[j] ), feature-major (H, tB).
    hT = _gelu_exact(
        jnp.dot(w1_ref[...], embT_ref[...], preferred_element_type=jnp.float32)
        + b1_ref[...])                                                  # (H, tB)
    # h2score: cross-sublane reduce (j on sublanes); b2 is a scalar SMEM read.
    s_lin = jnp.sum(hT * w2_ref[...], axis=0, keepdims=True) + b2_ref[0, 0]  # (1, tB)
    sc = jax.nn.sigmoid(s_lin)
    return hT, sc


def _dyn_softmax_parts(hT, wc):
    # u[k,j,b] = softmax_j( wc[k]*h[j,b] )  (conv bias cancels along j).
    # Analytic row-max: max_j wc[k]*h[j,b] = wc[k]*hmax[b] if wc[k]>=0 else wc[k]*hmin[b]
    # -> no max-reduce over the 3-D tensor.
    hmax = jnp.max(hT, axis=0, keepdims=True)                 # (1, tB)
    hmin = jnp.min(hT, axis=0, keepdims=True)                 # (1, tB)
    tmax = wc * jnp.where(wc >= 0.0, hmax, hmin)              # (H_k, tB)
    t = wc[:, :, None] * hT[None, :, :] - tmax[:, None, :]    # (H_k, H_j, tB) lane-dense
    e = jnp.exp(t)                                            # (H_k, H_j, tB)
    z = jnp.sum(e, axis=1)                                    # (H_k, tB)  sublane reduce per k
    return e, z


def _nt_logsumexp_kernel(embT_ref, laT_ref, w1_ref, b1_ref, w2_ref, b2_ref,
                         wc_ref, tranT_ref, out_ref):
    # out[j,b] = logsumexp_k( la[k,b] + log(sc*u[k,j,b] + (1-sc)*tran[k,j]) )
    #          = m_la[b] + log( sc * sum_k alpha'[k,b] u[k,j,b]
    #                           + (1-sc) * (tran^T @ alpha')[j,b] )
    hT, sc = _hidden_and_score(embT_ref, w1_ref, b1_ref, w2_ref, b2_ref)
    laT = laT_ref[...]                                         # (H_k, tB)
    m_la = jnp.max(laT, axis=0, keepdims=True)                 # (1, tB)
    alpha = jnp.exp(laT - m_la)                                # (H_k, tB)

    # Static transition on the MXU with a lane-dense (H_j, tB) result.
    m2 = jnp.dot(tranT_ref[...], alpha, preferred_element_type=jnp.float32)

    e, z = _dyn_softmax_parts(hT, wc_ref[...])
    g = alpha * pl.reciprocal(z, approx=True)                  # (H_k, tB)
    m1 = jnp.sum(e * g[:, None, :], axis=0)                    # (H_j, tB): add over leading dim

    out_ref[...] = m_la + jnp.log(sc * m1 + (1.0 - sc) * m2)


def _nt_maxmul_kernel(embT_ref, laT_ref, w1_ref, b1_ref, w2_ref, b2_ref,
                      wc_ref, tran_ref, out_ref, arg_ref):
    # out[j,b] = max_k( la[k,b] + log(sc*u + (1-sc)*tran) ) = m_la[b] + log(max_k v[k,j,b])
    # v[k,j,b] = alpha'[k,b]*(sc[b]*u[k,j,b] + (1-sc[b])*tran[k,j])   (log hoisted; monotone)
    hT, sc = _hidden_and_score(embT_ref, w1_ref, b1_ref, w2_ref, b2_ref)
    laT = laT_ref[...]
    m_la = jnp.max(laT, axis=0, keepdims=True)                 # (1, tB)
    alpha = jnp.exp(laT - m_la)                                # (H_k, tB)

    e, z = _dyn_softmax_parts(hT, wc_ref[...])                 # (H_k, H_j, tB), (H_k, tB)
    a1 = alpha * sc * pl.reciprocal(z, approx=True)            # alpha' * sc / z
    a2 = alpha * (1.0 - sc)
    tran = tran_ref[...]                                       # (H_k, H_j)
    v = e * a1[:, None, :] + tran[:, :, None] * a2[:, None, :]  # (H_k, H_j, tB)

    # Fused running max/argmax over previous states k (leading dim).  Heavy math
    # is vectorised over k above; this scan carries only run_max/run_arg plus one
    # (H_j, tB) slab (~16 live vregs), so the static unroll cannot spill.
    run_max = v[0]
    run_arg = jnp.zeros(run_max.shape, jnp.int32)
    for k in range(1, v.shape[0]):
        vk = v[k]
        upd = vk > run_max                 # strict '>' keeps the first maximal k
        run_arg = jnp.where(upd, k, run_arg)
        run_max = jnp.where(upd, vk, run_max)

    out_ref[...] = m_la + jnp.log(run_max)
    # TODO(synk): torch.max returns int64 indices; int32 is used here (TPU-native).
    arg_ref[...] = run_arg


def init_neural_transition_params(key, d_emb, n_hidden):
    ks = jax.random.split(key, 7)
    s = 0.3
    w1 = s * jax.random.normal(ks[0], (n_hidden, d_emb), jnp.float32)   # emb2h.weight
    b1 = s * jax.random.normal(ks[1], (n_hidden, 1), jnp.float32)       # emb2h.bias
    w2 = s * jax.random.normal(ks[2], (n_hidden, 1), jnp.float32)       # h2score.weight.T
    b2 = s * jax.random.normal(ks[3], (1, 1), jnp.float32)              # h2score.bias
    wc = s * jax.random.normal(ks[4], (n_hidden, 1), jnp.float32)       # h2u.weight[:,0,:]
    bc = s * jax.random.normal(ks[5], (n_hidden, 1), jnp.float32)       # h2u.bias (cancels)
    tran = jax.random.normal(ks[6], (n_hidden, n_hidden), jnp.float32)  # unnormalized_tran
    return (w1, b1, w2, b2, wc, bc, tran)


def _pick_row_block(n_rows):
    # Lane-axis tiling: a block's lane dim must be a multiple of 128 or the full
    # array.  Aim for >=2 grid steps when R > 128 (v7x megacore: 2 TCs), cap at
    # 512 rows/tile (largest live tensor (H,H,512) f32 ~2 MiB << VMEM limits).
    if n_rows <= 128:
        return n_rows
    return max(128, min(512, _round_up(pl.cdiv(n_rows, 2), 128)))


def neural_transition_forward(emb, log_alpha, params, use_max=False, row_block=None):
    """emb: (R, d_emb), log_alpha: (R, n_hidden).  R may be B or stacked T*B rows.

    row_block (if given) must be a multiple of 128 or >= R."""
    w1, b1, w2, b2, wc, _bc, tran = params   # h2u.bias cancels in softmax -> never shipped
    R, D = emb.shape
    H = log_alpha.shape[1]

    # Hoisted, input-independent prep.  Callers looping over timesteps should
    # hoist this (and keep the recursion feature-major end-to-end to avoid the
    # emb/log_alpha/output round-trip transposes).
    tran_sm = jax.nn.softmax(tran, axis=-1)
    tran_arg = tran_sm if use_max else tran_sm.T    # lse path needs [j,k] for the MXU
    embT = emb.T                                    # (D, R) batch-on-lanes
    laT = log_alpha.T                               # (H, R)

    tB = _pick_row_block(R) if row_block is None else min(row_block, R)
    grid = (pl.cdiv(R, tB),)                        # ragged last block; no jnp.pad

    col = lambda i: (0, i)       # row(-on-lane)-tiled operands
    rep = lambda i: (0, 0)       # replicated (whole-array) operands
    in_specs = [
        pl.BlockSpec((D, tB), col),      # emb^T
        pl.BlockSpec((H, tB), col),      # log_alpha^T
        pl.BlockSpec((H, D), rep),       # w1 (emb2h.weight)
        pl.BlockSpec((H, 1), rep),       # b1
        pl.BlockSpec((H, 1), rep),       # w2 (h2score.weight, sublane-resident)
        pl.BlockSpec(memory_space=pltpu.MemorySpace.SMEM),   # b2 scalar in SMEM
        pl.BlockSpec((H, 1), rep),       # wc (h2u.weight)
        pl.BlockSpec((H, H), rep),       # softmax(tran) (or its transpose)
    ]
    cparams = pltpu.CompilerParams(dimension_semantics=("parallel",))
    args = (embT, laT, w1, b1, w2, b2, wc, tran_arg)

    if use_max:
        out_shape = (jax.ShapeDtypeStruct((H, R), jnp.float32),
                     jax.ShapeDtypeStruct((H, R), jnp.int32))
        out_specs = (pl.BlockSpec((H, tB), col), pl.BlockSpec((H, tB), col))
        vals, arg = pl.pallas_call(_nt_maxmul_kernel, out_shape=out_shape, grid=grid,
                                   in_specs=in_specs, out_specs=out_specs,
                                   compiler_params=cparams)(*args)
        return vals.T, arg.T

    out_shape = jax.ShapeDtypeStruct((H, R), jnp.float32)
    out_specs = pl.BlockSpec((H, tB), col)
    out = pl.pallas_call(_nt_logsumexp_kernel, out_shape=out_shape, grid=grid,
                         in_specs=in_specs, out_specs=out_specs,
                         compiler_params=cparams)(*args)
    return out.T


def _reference_forward(emb, log_alpha, params, use_max=False):
    """Plain-JAX reference mirroring the PyTorch forward (incl. the conv bias)."""
    w1, b1, w2, b2, wc, bc, tran = params
    h = jax.nn.gelu(emb @ w1.T + b1.T, approximate=False)
    score = jax.nn.sigmoid(h @ w2 + b2)[:, :, None]                       # (R,1,1)
    u = jax.nn.softmax(wc[None, :, :] * h[:, None, :] + bc[None, :, :], axis=-1)
    t = jax.nn.softmax(tran, axis=-1)
    clt = jnp.log(score * u + (1.0 - score) * t[None, :, :])
    x = log_alpha[:, :, None] + clt
    if use_max:
        return jnp.max(x, axis=1), jnp.argmax(x, axis=1).astype(jnp.int32)
    return jax.scipy.special.logsumexp(x, axis=1)


if __name__ == "__main__":
    B, d_emb, n_hidden = 2, 16, 32
    key = jax.random.PRNGKey(0)
    k_emb, k_alpha, k_params, k_seq = jax.random.split(key, 4)

    emb = jax.random.normal(k_emb, (B, d_emb), jnp.float32)
    log_alpha = jax.nn.log_softmax(
        jax.random.normal(k_alpha, (B, n_hidden), jnp.float32), axis=-1)
    params = init_neural_transition_params(k_params, d_emb, n_hidden)

    # Tolerance covers the EUP approx-reciprocal ops (~1e-4 rel err).
    ATOL, RTOL = 2e-3, 1e-3

    # use_max=False path (log_matmul)
    out = neural_transition_forward(emb, log_alpha, params, use_max=False)
    out = jax.block_until_ready(out)
    ref = _reference_forward(emb, log_alpha, params, use_max=False)
    assert out.shape == (B, n_hidden) and out.dtype == jnp.float32
    assert jnp.allclose(out, ref, atol=ATOL, rtol=RTOL)

    # use_max=True path (log_maxmul -> values + argmax indices)
    out_max, out_arg = neural_transition_forward(emb, log_alpha, params, use_max=True)
    jax.block_until_ready((out_max, out_arg))
    ref_max, _ = _reference_forward(emb, log_alpha, params, use_max=True)
    assert out_max.shape == (B, n_hidden) and out_arg.shape == (B, n_hidden)
    assert out_arg.dtype == jnp.int32
    assert jnp.allclose(out_max, ref_max, atol=ATOL, rtol=RTOL)

    # Larger stacked batch: T=17 timesteps x B=16 rows folded into one call.
    # Default tiling gives tB=256 -> 2-step "parallel" grid with a ragged 16-row
    # tail block (exercises the un-padded boundary-block clipping path).
    T, Bb = 17, 16
    k_e2, k_a2 = jax.random.split(k_seq)
    emb_seq = jax.random.normal(k_e2, (T * Bb, d_emb), jnp.float32)
    la_seq = jax.nn.log_softmax(
        jax.random.normal(k_a2, (T * Bb, n_hidden), jnp.float32), axis=-1)
    out_seq = neural_transition_forward(emb_seq, la_seq, params, use_max=False)
    out_seq = jax.block_until_ready(out_seq)
    ref_seq = _reference_forward(emb_seq, la_seq, params, use_max=False)
    assert out_seq.shape == (T * Bb, n_hidden)
    assert jnp.allclose(out_seq, ref_seq, atol=ATOL, rtol=RTOL)

    print("KERNEL_OK")
</pallas_src>

<mosaic_0001>
module attributes {stable_mosaic.version = 11 : i64} {
  func.func @_nt_logsumexp_kernel(%arg0: i32, %arg1: memref<16x2xf32, #tpu.memory_space<vmem>>, %arg2: memref<32x2xf32, #tpu.memory_space<vmem>>, %arg3: memref<32x16xf32, #tpu.memory_space<vmem>>, %arg4: memref<32x1xf32, #tpu.memory_space<vmem>>, %arg5: memref<32x1xf32, #tpu.memory_space<vmem>>, %arg6: memref<1x1xf32, #tpu.memory_space<smem>>, %arg7: memref<32x1xf32, #tpu.memory_space<vmem>>, %arg8: memref<32x32xf32, #tpu.memory_space<vmem>>, %arg9: memref<32x2xf32, #tpu.memory_space<vmem>>) attributes {dimension_semantics = [#tpu.dimension_semantics<parallel>], iteration_bounds = array<i64: 1>, scalar_prefetch = 0 : i64, scratch_operands = 0 : i64, tpu.core_type = #tpu.core_type<tc>, window_params = [{transform_indices = @transform_0, window_bounds = array<i64: 16, 2>}, {transform_indices = @transform_1, window_bounds = array<i64: 32, 2>}, {pipeline_mode = #tpu.pipeline_mode<synchronous>, transform_indices = @transform_2, window_bounds = array<i64: 32, 16>}, {pipeline_mode = #tpu.pipeline_mode<synchronous>, transform_indices = @transform_3, window_bounds = array<i64: 32, 1>}, {pipeline_mode = #tpu.pipeline_mode<synchronous>, transform_indices = @transform_4, window_bounds = array<i64: 32, 1>}, {transform_indices = @transform_5, window_bounds = array<i64: 1, 1>}, {pipeline_mode = #tpu.pipeline_mode<synchronous>, transform_indices = @transform_6, window_bounds = array<i64: 32, 1>}, {pipeline_mode = #tpu.pipeline_mode<synchronous>, transform_indices = @transform_7, window_bounds = array<i64: 32, 32>}, {transform_indices = @transform_8, window_bounds = array<i64: 32, 2>}]} {
    %c0 = arith.constant 0 : index
    %c0_0 = arith.constant 0 : index
    %0 = vector.load %arg3[%c0, %c0_0] : memref<32x16xf32, #tpu.memory_space<vmem>>, vector<32x16xf32>
    %c0_1 = arith.constant 0 : index
    %c0_2 = arith.constant 0 : index
    %1 = vector.load %arg1[%c0_1, %c0_2] : memref<16x2xf32, #tpu.memory_space<vmem>>, vector<16x2xf32>
    %cst = arith.constant dense<0.000000e+00> : vector<32x2xf32>
    %2 = tpu.matmul %0, %1, %cst {dimension_numbers = #tpu.dot_dimension_numbers<[1], [0], [0], [1], [0, 0, 1, 1], [], []>} : vector<32x16xf32>, vector<16x2xf32>, vector<32x2xf32> -> vector<32x2xf32>
    %c0_3 = arith.constant 0 : index
    %c0_4 = arith.constant 0 : index
    %3 = vector.load %arg4[%c0_3, %c0_4] : memref<32x1xf32, #tpu.memory_space<vmem>>, vector<32x1xf32>
    %4 = vector.broadcast %3 : vector<32x1xf32> to vector<32x2xf32>
    %5 = arith.addf %2, %4 : vector<32x2xf32>
    %cst_5 = arith.constant 5.000000e-01 : f32
    %6 = vector.broadcast %cst_5 : f32 to vector<32x2xf32>
    %7 = arith.mulf %6, %5 : vector<32x2xf32>
    %cst_6 = arith.constant 0.707106769 : f32
    %8 = vector.broadcast %cst_6 : f32 to vector<32x2xf32>
    %9 = arith.mulf %5, %8 : vector<32x2xf32>
    %10 = math.absf %9 : vector<32x2xf32>
    %cst_7 = arith.constant 0.327591091 : f32
    %11 = vector.broadcast %cst_7 : f32 to vector<32x2xf32>
    %12 = arith.mulf %11, %10 : vector<32x2xf32>
    %cst_8 = arith.constant 1.000000e+00 : f32
    %13 = vector.broadcast %cst_8 : f32 to vector<32x2xf32>
    %14 = arith.addf %13, %12 : vector<32x2xf32>
    %15 = tpu.reciprocal %14 {approx = true} : vector<32x2xf32> -> vector<32x2xf32>
    %cst_9 = arith.constant 1.06140542 : f32
    %16 = vector.broadcast %cst_9 : f32 to vector<32x2xf32>
    %17 = arith.mulf %16, %15 : vector<32x2xf32>
    %cst_10 = arith.constant -1.45315206 : f32
    %18 = vector.broadcast %cst_10 : f32 to vector<32x2xf32>
    %19 = arith.addf %17, %18 : vector<32x2xf32>
    %20 = arith.mulf %19, %15 : vector<32x2xf32>
    %cst_11 = arith.constant 1.42141378 : f32
    %21 = vector.broadcast %cst_11 : f32 to vector<32x2xf32>
    %22 = arith.addf %20, %21 : vector<32x2xf32>
    %23 = arith.mulf %22, %15 : vector<32x2xf32>
    %cst_12 = arith.constant -0.284496725 : f32
    %24 = vector.broadcast %cst_12 : f32 to vector<32x2xf32>
    %25 = arith.addf %23, %24 : vector<32x2xf32>
    %26 = arith.mulf %25, %15 : vector<32x2xf32>
    %cst_13 = arith.constant 0.254829586 : f32
    %27 = vector.broadcast %cst_13 : f32 to vector<32x2xf32>
    %28 = arith.addf %26, %27 : vector<32x2xf32>
    %29 = arith.mulf %28, %15 : vector<32x2xf32>
    %cst_14 = arith.constant 0.000000e+00 : f32
    %30 = vector.broadcast %cst_14 : f32 to vector<32x2xf32>
    %31 = arith.subf %30, %10 : vector<32x2xf32>
    %32 = arith.mulf %31, %10 : vector<32x2xf32>
    %33 = math.exp %32 : vector<32x2xf32>
    %34 = arith.mulf %29, %33 : vector<32x2xf32>
    %cst_15 = arith.constant 1.000000e+00 : f32
    %35 = vector.broadcast %cst_15 : f32 to vector<32x2xf32>
    %36 = arith.subf %35, %34 : vector<32x2xf32>
    %cst_16 = arith.constant 0.000000e+00 : f32
    %37 = vector.broadcast %cst_16 : f32 to vector<32x2xf32>
    %38 = arith.cmpf oge, %9, %37 : vector<32x2xf32>
    %cst_17 = arith.constant 0.000000e+00 : f32
    %39 = vector.broadcast %cst_17 : f32 to vector<32x2xf32>
    %40 = arith.subf %39, %36 : vector<32x2xf32>
    %41 = arith.select %38, %36, %40 : vector<32x2xi1>, vector<32x2xf32>
    %cst_18 = arith.constant 1.000000e+00 : f32
    %42 = vector.broadcast %cst_18 : f32 to vector<32x2xf32>
    %43 = arith.addf %42, %41 : vector<32x2xf32>
    %44 = arith.mulf %7, %43 : vector<32x2xf32>
    %c0_19 = arith.constant 0 : index
    %c0_20 = arith.constant 0 : index
    %45 = vector.load %arg5[%c0_19, %c0_20] : memref<32x1xf32, #tpu.memory_space<vmem>>, vector<32x1xf32>
    %46 = vector.broadcast %45 : vector<32x1xf32> to vector<32x2xf32>
    %47 = arith.mulf %44, %46 : vector<32x2xf32>
    %cst_21 = arith.constant dense<0.000000e+00> : vector<2xf32>
    %48 = vector.multi_reduction <add>, %47, %cst_21 [0] : vector<32x2xf32> to vector<2xf32>
    %49 = vector.shape_cast %48 : vector<2xf32> to vector<1x2xf32>
    %c0_22 = arith.constant 0 : index
    %c0_23 = arith.constant 0 : index
    %50 = memref.load %arg6[%c0_22, %c0_23] : memref<1x1xf32, #tpu.memory_space<smem>>
    %51 = vector.broadcast %50 : f32 to vector<1x2xf32>
    %52 = arith.addf %49, %51 : vector<1x2xf32>
    %53 = arith.negf %52 : vector<1x2xf32>
    %54 = math.exp %53 : vector<1x2xf32>
    %cst_24 = arith.constant 1.000000e+00 : f32
    %55 = vector.broadcast %cst_24 : f32 to vector<1x2xf32>
    %56 = arith.addf %55, %54 : vector<1x2xf32>
    %57 = arith.divf %55, %56 : vector<1x2xf32>
    %c0_25 = arith.constant 0 : index
    %c0_26 = arith.constant 0 : index
    %58 = vector.load %arg2[%c0_25, %c0_26] : memref<32x2xf32, #tpu.memory_space<vmem>>, vector<32x2xf32>
    %cst_27 = arith.constant dense<0xFF800000> : vector<2xf32>
    %59 = vector.multi_reduction <maximumf>, %58, %cst_27 [0] : vector<32x2xf32> to vector<2xf32>
    %60 = vector.shape_cast %59 : vector<2xf32> to vector<1x2xf32>
    %61 = vector.broadcast %60 : vector<1x2xf32> to vector<32x2xf32>
    %62 = arith.subf %58, %61 : vector<32x2xf32>
    %63 = math.exp %62 : vector<32x2xf32>
    %c0_28 = arith.constant 0 : index
    %c0_29 = arith.constant 0 : index
    %64 = vector.load %arg8[%c0_28, %c0_29] : memref<32x32xf32, #tpu.memory_space<vmem>>, vector<32x32xf32>
    %cst_30 = arith.constant dense<0.000000e+00> : vector<32x2xf32>
    %65 = tpu.matmul %64, %63, %cst_30 {dimension_numbers = #tpu.dot_dimension_numbers<[1], [0], [0], [1], [0, 0, 1, 1], [], []>} : vector<32x32xf32>, vector<32x2xf32>, vector<32x2xf32> -> vector<32x2xf32>
    %c0_31 = arith.constant 0 : index
    %c0_32 = arith.constant 0 : index
    %66 = vector.load %arg7[%c0_31, %c0_32] : memref<32x1xf32, #tpu.memory_space<vmem>>, vector<32x1xf32>
    %cst_33 = arith.constant dense<0xFF800000> : vector<2xf32>
    %67 = vector.multi_reduction <maximumf>, %44, %cst_33 [0] : vector<32x2xf32> to vector<2xf32>
    %68 = vector.shape_cast %67 : vector<2xf32> to vector<1x2xf32>
    %cst_34 = arith.constant dense<0x7F800000> : vector<2xf32>
    %69 = vector.multi_reduction <minimumf>, %44, %cst_34 [0] : vector<32x2xf32> to vector<2xf32>
    %70 = vector.shape_cast %69 : vector<2xf32> to vector<1x2xf32>
    %cst_35 = arith.constant 0.000000e+00 : f32
    %71 = vector.broadcast %cst_35 : f32 to vector<32x1xf32>
    %72 = arith.cmpf oge, %66, %71 : vector<32x1xf32>
    %73 = vector.shape_cast %72 : vector<32x1xi1> to vector<32x1xi1>
    %74 = vector.broadcast %73 : vector<32x1xi1> to vector<32x2xi1>
    %75 = vector.shape_cast %68 : vector<1x2xf32> to vector<1x2xf32>
    %76 = vector.broadcast %75 : vector<1x2xf32> to vector<32x2xf32>
    %77 = vector.shape_cast %70 : vector<1x2xf32> to vector<1x2xf32>
    %78 = vector.broadcast %77 : vector<1x2xf32> to vector<32x2xf32>
    %79 = arith.select %74, %76, %78 : vector<32x2xi1>, vector<32x2xf32>
    %80 = vector.broadcast %66 : vector<32x1xf32> to vector<32x2xf32>
    %81 = arith.mulf %80, %79 : vector<32x2xf32>
    %82 = vector.shape_cast %66 : vector<32x1xf32> to vector<32x1x1xf32>
    %83 = vector.shape_cast %44 : vector<32x2xf32> to vector<1x32x2xf32>
    %84 = vector.broadcast %82 : vector<32x1x1xf32> to vector<32x32x2xf32>
    %85 = vector.broadcast %83 : vector<1x32x2xf32> to vector<32x32x2xf32>
    %86 = arith.mulf %84, %85 : vector<32x32x2xf32>
    %87 = vector.shape_cast %81 : vector<32x2xf32> to vector<32x1x2xf32>
    %88 = vector.broadcast %87 : vector<32x1x2xf32> to vector<32x32x2xf32>
    %89 = arith.subf %86, %88 : vector<32x32x2xf32>
    %90 = math.exp %89 : vector<32x32x2xf32>
    %cst_36 = arith.constant dense<0.000000e+00> : vector<32x2xf32>
    %91 = vector.multi_reduction <add>, %90, %cst_36 [1] : vector<32x32x2xf32> to vector<32x2xf32>
    %92 = tpu.reciprocal %91 {approx = true} : vector<32x2xf32> -> vector<32x2xf32>
    %93 = arith.mulf %63, %92 : vector<32x2xf32>
    %94 = vector.shape_cast %93 : vector<32x2xf32> to vector<32x1x2xf32>
    %95 = vector.broadcast %94 : vector<32x1x2xf32> to vector<32x32x2xf32>
    %96 = arith.mulf %90, %95 : vector<32x32x2xf32>
    %cst_37 = arith.constant dense<0.000000e+00> : vector<32x2xf32>
    %97 = vector.multi_reduction <add>, %96, %cst_37 [0] : vector<32x32x2xf32> to vector<32x2xf32>
    %98 = vector.broadcast %57 : vector<1x2xf32> to vector<32x2xf32>
    %99 = arith.mulf %98, %97 : vector<32x2xf32>
    %cst_38 = arith.constant 1.000000e+00 : f32
    %100 = vector.broadcast %cst_38 : f32 to vector<1x2xf32>
    %101 = arith.subf %100, %57 : vector<1x2xf32>
    %102 = vector.broadcast %101 : vector<1x2xf32> to vector<32x2xf32>
    %103 = arith.mulf %102, %65 : vector<32x2xf32>
    %104 = arith.addf %99, %103 : vector<32x2xf32>
    %105 = math.log %104 : vector<32x2xf32>
    %106 = vector.broadcast %60 : vector<1x2xf32> to vector<32x2xf32>
    %107 = arith.addf %106, %105 : vector<32x2xf32>
    %c0_39 = arith.constant 0 : index
    %c0_40 = arith.constant 0 : index
    %108 = vector.load %arg9[%c0_39, %c0_40] : memref<32x2xf32, #tpu.memory_space<vmem>>, vector<32x2xf32>
    tpu.vector_store %arg9[%c0_39, %c0_40], %107 {strides = array<i32>} : memref<32x2xf32, #tpu.memory_space<vmem>>, vector<32x2xf32>,
    return
  }
  func.func @transform_0(%arg0: i32) -> (i32, i32) {
    %c0_i32 = arith.constant 0 : i32
    %c0_i32_0 = arith.constant 0 : i32
    return %c0_i32, %arg0 : i32, i32
  }
  func.func @transform_1(%arg0: i32) -> (i32, i32) {
    %c0_i32 = arith.constant 0 : i32
    %c0_i32_0 = arith.constant 0 : i32
    return %c0_i32, %arg0 : i32, i32
  }
  func.func @transform_2(%arg0: i32) -> (i32, i32) {
    %c0_i32 = arith.constant 0 : i32
    %c0_i32_0 = arith.constant 0 : i32
    %c0_i32_1 = arith.constant 0 : i32
    return %c0_i32, %c0_i32_0 : i32, i32
  }
  func.func @transform_3(%arg0: i32) -> (i32, i32) {
    %c0_i32 = arith.constant 0 : i32
    %c0_i32_0 = arith.constant 0 : i32
    %c0_i32_1 = arith.constant 0 : i32
    return %c0_i32, %c0_i32_0 : i32, i32
  }
  func.func @transform_4(%arg0: i32) -> (i32, i32) {
    %c0_i32 = arith.constant 0 : i32
    %c0_i32_0 = arith.constant 0 : i32
    %c0_i32_1 = arith.constant 0 : i32
    return %c0_i32, %c0_i32_0 : i32, i32
  }
  func.func @transform_5(%arg0: i32) -> (i32, i32) {
    %c0_i32 = arith.constant 0 : i32
    %c0_i32_0 = arith.constant 0 : i32
    %c0_i32_1 = arith.constant 0 : i32
    return %c0_i32, %c0_i32_0 : i32, i32
  }
  func.func @transform_6(%arg0: i32) -> (i32, i32) {
    %c0_i32 = arith.constant 0 : i32
    %c0_i32_0 = arith.constant 0 : i32
    %c0_i32_1 = arith.constant 0 : i32
    return %c0_i32, %c0_i32_0 : i32, i32
  }
  func.func @transform_7(%arg0: i32) -> (i32, i32) {
    %c0_i32 = arith.constant 0 : i32
    %c0_i32_0 = arith.constant 0 : i32
    %c0_i32_1 = arith.constant 0 : i32
    return %c0_i32, %c0_i32_0 : i32, i32
  }
  func.func @transform_8(%arg0: i32) -> (i32, i32) {
    %c0_i32 = arith.constant 0 : i32
    %c0_i32_0 = arith.constant 0 : i32
    return %c0_i32, %arg0 : i32, i32
  }
}

</mosaic_0001>

<bundles_post_ra>
// kernel: tpu_custom_call.1
= control target key start
LH: loop header
LB: loop body
LE: loop exit
PB: predicated region body
PF: predicated region fallthrough
CT: control target
= control target key end

     0   :  { %v2630_v0 = vmov 0   ;;  %vm60_vm0 = vcmask 130048   ;;  %vm234_vm5 = vcmask 15360   ;;  %vm303_vm6 = vcmask 261120   ;;  %s4665_s4 = inlined_call_operand.vmem [shape: f32[32,1], index: 4, kind: input, shape index: {}]   ;;  %s4666_s3 = inlined_call_operand.vmem [shape: f32[32,1], index: 3, kind: input, shape index: {}]   ;;  %s4667_s0 = inlined_call_operand.vmem [shape: f32[16,2], index: 0, kind: input, shape index: {}]   ;;  %s4668_s2 = inlined_call_operand.vmem [shape: f32[32,16], index: 2, kind: input, shape index: {}]   ;;  %s4669_s6 = inlined_call_operand.vmem [shape: f32[32,1], index: 6, kind: input, shape index: {}]   ;;  %s4670_s1 = inlined_call_operand.vmem [shape: f32[32,2], index: 1, kind: input, shape index: {}]   ;;  %s4671_s7 = inlined_call_operand.vmem [shape: f32[32,32], index: 7, kind: input, shape index: {}]   ;;  %s4672_s5 = inlined_call_operand.<no memory space> [shape: f32[1,1], index: 5, kind: input, shape index: {}]   ;;  %s4673_s8 = inlined_call_operand.vmem [shape: f32[32,2], index: 8, kind: output, shape index: {}]  }
   0x1   :  { %2273 = vset.pattern.permute.xlu2 %v2630_v0  ;;  %2272 = vset.pattern.permute.xlu1 %v2630_v0  ;;  %v206_v1 = vld [vmem:[%s4665_s4] sm:$0xff]  ;;  %v38_v2 = vld [vmem:[%s4666_s3 + $0x10] sm:$0xff]  ;;  %v35_v4 = vld [vmem:[%s4667_s0 + $0x8] sm:$0xff]  ;;  %vm1703_vm15 = vcmask 1041409  }
   0x2   :  { %v36_v3 = vld [vmem:[%s4666_s3] sm:$0xff]  ;;  %2271 = vset.pattern.permute.xlu0 %v2630_v0  ;;  %212 = vperm.xlu2 %2273, %v206_v1   ;;  %v31_v7 = vld [vmem:[%s4668_s2 + $0x8] sm:$0xff]  ;;  %v39_v9 = vld [vmem:[%s4666_s3 + $0x18] sm:$0xff] }
   0x3   :  { %52 = vperm.xlu1 %2272, %v38_v2   ;;  %42 = vperm.xlu0 %2271, %v36_v3   ;;  %v34_v5 = vld [vmem:[%s4667_s0] sm:$0xff]  ;;  %v207_v8 = vld [vmem:[%s4665_s4 + $0x8] sm:$0xff]  ;;  %v32_v12 = vld [vmem:[%s4668_s2 + $0x10] sm:$0xff] }
   0x4   :  { %87 = vmatpush.msra.mxu0 %v35_v4  ;;  %2264 = vmatpush.msra.mxu3 %v35_v4  ;;  %v30_v6 = vld [vmem:[%s4668_s2] sm:$0xff]  ;;  %v37_v10 = vld [vmem:[%s4666_s3 + $0x8] sm:$0xff]  ;;  %v209_v14 = vld [vmem:[%s4665_s4 + $0x18] sm:$0xff] }
   0x5   :  { %v2711_v11 = vld [vmem:[%s4669_s6] sm:$0xff]  ;;  %v208_v15 = vld [vmem:[%s4665_s4 + $0x10] sm:$0xff]  ;;  %v2727_v16 = vld [vmem:[%s4669_s6 + $0x18] sm:$0xff] }
   0x6   :  { %88 = vmatpush.msra.mxu0 %v34_v5  ;;  %2265 = vmatpush.msra.mxu3 %v34_v5  ;;  %vm375_vm1 = vcmp.ge.f32.partialorder %v2711_v11, 0.0  ;;  %v2732_v17 = vld [vmem:[%s4669_s6 + $0x10] sm:$0xff]  ;;  %v2737_v18 = vld [vmem:[%s4669_s6 + $0x8] sm:$0xff]  ;;  %v33_v19 = vld [vmem:[%s4668_s2 + $0x18] sm:$0xff]  ;;  %vm378_vm2 = vcmp.ge.f32.partialorder %v2727_v16, 0.0  ;;  %v427_v23 = vrot.slane %v2711_v11, 1 }
   0x7   :  { %2255 = vmatmul.msk.f32.vlgmr.msra.gmra.mxu0 %vm60_vm0, %v30_v6  ;;  %2256 = vmatmul.msk.f32.vlgmr.msra.gmra.mxu3 %vm60_vm0, %v31_v7  ;;  %v379_v13 = vsel %vm375_vm1, 1, %v2630_v0  ;;  %vm377_vm3 = vcmp.ge.f32.partialorder %v2732_v17, 0.0  ;;  %vm376_vm4 = vcmp.ge.f32.partialorder %v2737_v18, 0.0  ;;  %v382_v20 = vsel %vm378_vm2, 1, %v2630_v0  ;;  %v270_v28 = vld [vmem:[%s4670_s1] sm:$0xff]  ;;  %v271_v29 = vld [vmem:[%s4670_s1 + $0x8] sm:$0xff] }
   0x8   :  { %v381_v21 = vsel %vm377_vm3, 1, %v2630_v0  ;;  %v380_v22 = vsel %vm376_vm4, 1, %v2630_v0  ;;  %v456_v24 = vperm.slane %v427_v23, 0  ;;  %v455_v25 = vperm.slane %v2711_v11, 0  ;;  %v272_v30 = vld [vmem:[%s4670_s1 + $0x10] sm:$0xff]  ;;  %v273_v32 = vld [vmem:[%s4670_s1 + $0x18] sm:$0xff] }
   0x9   :  { %v430_v26 = vrot.slane %v2711_v11, 4  ;;  %v429_v27 = vrot.slane %v2711_v11, 3  ;;  %v428_v31 = vrot.slane %v2711_v11, 2  ;;  %v274_v33 = vsel %vm234_vm5, %v270_v28, -inf }
   0xa   :  { %217 = vperm.xlu2 %2273, %v207_v8   ;;  %v275_v34 = vsel %vm234_vm5, %v271_v29, -inf  ;;  %v276_v35 = vsel %vm234_vm5, %v272_v30, -inf  ;;  %v277_v36 = vsel %vm234_vm5, %v273_v32, -inf  ;;  %v433_v44 = vrot.slane %v2711_v11, 7 }
   0xb   :  { %57 = vperm.xlu1 %2272, %v39_v9   ;;  %47 = vperm.xlu0 %2271, %v37_v10   ;;  %v278_v37 = vmax.f32 %v274_v33, %v275_v34  ;;  %v279_v38 = vmax.f32 %v276_v35, %v277_v36  ;;  %v459_v39 = vperm.slane %v430_v26, 0  ;;  %v458_v40 = vperm.slane %v429_v27, 0  ;;  %v302_v26 = vld [vmem:[%s4671_s7 + $0x18] sm:$0xff]  ;;  %v300_v33 = vld [vmem:[%s4671_s7 + $0x8] sm:$0xff] }
   0xc   :  { %v457_v41 = vperm.slane %v428_v31, 0  ;;  %v432_v45 = vrot.slane %v2711_v11, 6  ;;  %v431_v46 = vrot.slane %v2711_v11, 5  ;;  %v462_v49 = vperm.slane %v433_v44, 0 }
   0xd   :  { %v280_v42 = vmax.f32 %v278_v37, %v279_v38  ;;  %v435_v54 = vrot.slane %v2737_v18, 2  ;;  %v434_v55 = vrot.slane %v2737_v18, 1  ;;  %v463_v61 = vperm.slane %v2737_v18, 0 }
   0xe   :  { %v461_v50 = vperm.slane %v432_v45, 0  ;;  %v460_v51 = vperm.slane %v431_v46, 0  ;;  %v438_v1 = vrot.slane %v2737_v18, 5  ;;  %v437_v3 = vrot.slane %v2737_v18, 4 }
   0xf   :  { %2257 = vmatmul.msk.f32.gmra.mxu3 %vm60_vm0, %v32_v12  ;;  %v281_v43 = vrot.slane %v280_v42, 4  ;;  %v465_v58 = vperm.slane %v435_v54, 0  ;;  %v464_v60 = vperm.slane %v434_v55, 0  ;;  %v436_v4 = vrot.slane %v2737_v18, 3 }
  0x10   :  { %v468_v7 = vperm.slane %v438_v1, 0  ;;  %v467_v9 = vperm.slane %v437_v3, 0  ;;  %v442_v23 = vrot.slane %v2732_v17, 2  ;;  %v445_v31 = vrot.slane %v2732_v17, 5 }
  0x11   :  { %v282_v47 = vmax.f32 %v280_v42, %v281_v43  ;;  %v466_v10 = vperm.slane %v436_v4, 0  ;;  %v448_v37 = vrot.slane %v2727_v16, 1  ;;  %v447_v38 = vrot.slane %v2732_v17, 7 }
  0x12   :  { %384 = vperm.xlu2 %2273, %v379_v13   ;;  %v440_v13 = vrot.slane %v2737_v18, 7  ;;  %v476_v35 = vperm.slane %v445_v31, 0  ;;  %v451_v42 = vrot.slane %v2727_v16, 4  ;;  %v450_v43 = vrot.slane %v2727_v16, 3 }
  0x13   :  { %227 = vperm.xlu1 %2272, %v209_v14   ;;  %222 = vperm.xlu0 %2271, %v208_v15   ;;  %v283_v48 = vrot.slane %v282_v47, 2  ;;  %v439_v14 = vrot.slane %v2737_v18, 6  ;;  %v449_v44 = vrot.slane %v2727_v16, 2  ;;  %vm1707_vm1 = vcmask 1043459  }
  0x14   :  { %v483_v45 = vperm.slane %v451_v42, 0  ;;  %v482_v46 = vperm.slane %v450_v43, 0  ;;  %vm1709_vm2 = vcmask 1044484   ;;  %vm1711_vm3 = vcmask 1045509  }
  0x15   :  { %v284_v52 = vmax.f32 %v282_v47, %v283_v48  ;;  %v481_v47 = vperm.slane %v449_v44, 0  ;;  %v454_v48 = vrot.slane %v2727_v16, 7  ;;  %vm1713_vm4 = vcmask 1046534  }
  0x17   :  { %2258 = vmatmul.msk.f32.gmra.mxu3 %vm60_vm0, %v33_v19  ;;  %v285_v53 = vrot.slane %v284_v52, 1  ;;  %v301_v19 = vld [vmem:[%s4671_s7 + $0x10] sm:$0xff]  ;;  %vm1705_vm0 = vcmask 1042434  }
  0x19   :  { %v2776_v56 = vmax.f32 %v284_v52, %v285_v53 }
  0x1a   :  { %393 = vperm.xlu2 %2273, %v382_v20   ;;  %v471_v20 = vperm.slane %v2732_v17, 0 }
  0x1b   :  { %390 = vperm.xlu1 %2272, %v381_v21   ;;  %387 = vperm.xlu0 %2271, %v380_v22   ;;  %4750 = vst [vmem:[#allocation3_spill] sm:$0xff] %v2776_v56  ;;  %v290_v57 = vsub.f32 %v273_v32, %v2776_v56  ;;  %v289_v59 = vsub.f32 %v272_v30, %v2776_v56  ;;  %v470_v21 = vperm.slane %v440_v13, 0  ;;  %v469_v22 = vperm.slane %v439_v14, 0 }
  0x1c   :  { %v288_v0 = vsub.f32 %v271_v29, %v2776_v56  ;;  %v287_v5 = vsub.f32 %v270_v28, %v2776_v56  ;;  %v473_v28 = vperm.slane %v442_v23, 0  ;;  %v446_v30 = vrot.slane %v2732_v17, 6 }
  0x1d   :  { %v297_v62 = vmul.f32 1.442695, %v290_v57  ;;  %v295_v63 = vmul.f32 1.442695, %v289_v59  ;;  %v444_v32 = vrot.slane %v2732_v17, 4 }
  0x1e   :  { %v293_v2 = vmul.f32 1.442695, %v288_v0  ;;  %v291_v6 = vmul.f32 1.442695, %v287_v5  ;;  %v477_v34 = vperm.slane %v446_v30, 0 }
  0x1f   :  { %2274 = vpow2.f32 %v297_v62  ;;  %v475_v36 = vperm.slane %v444_v32, 0 }
  0x20   :  { %2276 = vpow2.f32 %v295_v63 }
  0x21   :  { %2278 = vpow2.f32 %v293_v2 }
  0x22   :  { %415 = vperm.xlu2 %2273, %v2732_v17   ;;  %2280 = vpow2.f32 %v291_v6 }
  0x23   :  { %410 = vperm.xlu1 %2272, %v2737_v18   ;;  %405 = vperm.xlu0 %2271, %v2711_v11   ;;  %v443_v18 = vrot.slane %v2732_v17, 3 }
  0x25   :  { %v2786_v8 = vpop.eup %2274  ;;  %v474_v27 = vperm.slane %v443_v18, 0 }
  0x26   :  { %4751 = vst [vmem:[#allocation4_spill] sm:$0xff] %v2786_v8  ;;  %v2788_v11 = vpop.eup %2276  ;;  %2266 = vmatpush.msra.mxu2 %v2786_v8  ;;  %328 = vmatpush.msra.mxu1 %v2786_v8 }
  0x27   :  { %4752 = vst [vmem:[#allocation5_spill] sm:$0xff] %v2788_v11  ;;  %v2792_v12 = vpop.eup %2278 }
  0x28   :  { %4753 = vst [vmem:[#allocation6_spill] sm:$0xff] %v2792_v12  ;;  %2267 = vmatpush.msra.mxu2 %v2788_v11  ;;  %329 = vmatpush.msra.mxu1 %v2788_v11  ;;  %v2799_v15 = vpop.eup %2280 }
  0x2a   :  { %492 = vperm.xlu2 %2273, %v456_v24   ;;  %2268 = vmatpush.msra.mxu2 %v2792_v12  ;;  %v441_v24 = vrot.slane %v2732_v17, 1  ;;  %v453_v17 = vrot.slane %v2727_v16, 6 }
  0x2b   :  { %488 = vperm.xlu1 %2272, %v455_v25   ;;  %420 = vperm.xlu0 %2271, %v2727_v16   ;;  %v299_v25 = vld [vmem:[%s4671_s7] sm:$0xff] }
  0x2c   :  { %2269 = vmatpush.msra.mxu2 %v2799_v15  ;;  %330 = vmatpush.msra.mxu1 %v2792_v12  ;;  %v472_v29 = vperm.slane %v441_v24, 0 }
  0x2d   :  { %2262 = vmatmul.msk.f32.vlgmr.msra.gmra.mxu2 %vm303_vm6, %v301_v19 }
  0x2e   :  { %331 = vmatpush.msra.mxu1 %v2799_v15 }
  0x2f   :  { %2260 = vmatmul.msk.f32.vlgmr.msra.gmra.mxu1 %vm303_vm6, %v299_v25 }
  0x32   :  { %504 = vperm.xlu2 %2273, %v459_v39   ;;  %v480_v39 = vperm.slane %v448_v37, 0 }
  0x33   :  { %500 = vperm.xlu1 %2272, %v458_v40   ;;  %496 = vperm.xlu0 %2271, %v457_v41   ;;  %v479_v40 = vperm.slane %v2727_v16, 0  ;;  %v478_v41 = vperm.slane %v447_v38, 0 }
  0x35   :  { %2263 = vmatmul.msk.f32.gmra.mxu2 %vm303_vm6, %v302_v26 }
  0x37   :  { %2261 = vmatmul.msk.f32.gmra.mxu1 %vm303_vm6, %v300_v33  ;;  %vm1715_vm6 = vcmask 1047559  }
  0x3a   :  { %516 = vperm.xlu2 %2273, %v462_v49   ;;  %v452_v49 = vrot.slane %v2727_v16, 5 }
  0x3b   :  { %512 = vperm.xlu1 %2272, %v461_v50   ;;  %508 = vperm.xlu0 %2271, %v460_v51   ;;  %v486_v50 = vperm.slane %v454_v48, 0  ;;  %v485_v51 = vperm.slane %v453_v17, 0 }
  0x3c   :  { %v484_v52 = vperm.slane %v452_v49, 0 }
  0x42   :  { %528 = vperm.xlu2 %2273, %v465_v58  }
  0x43   :  { %524 = vperm.xlu1 %2272, %v464_v60   ;;  %520 = vperm.xlu0 %2271, %v463_v61  }
  0x4a   :  { %540 = vperm.xlu2 %2273, %v468_v7  }
  0x4b   :  { %536 = vperm.xlu1 %2272, %v467_v9   ;;  %532 = vperm.xlu0 %2271, %v466_v10  }
  0x52   :  { %552 = vperm.xlu2 %2273, %v471_v20  }
  0x53   :  { %548 = vperm.xlu1 %2272, %v470_v21   ;;  %544 = vperm.xlu0 %2271, %v469_v22  }
  0x5a   :  { %564 = vperm.xlu2 %2273, %v474_v27  }
  0x5b   :  { %560 = vperm.xlu1 %2272, %v473_v28   ;;  %556 = vperm.xlu0 %2271, %v472_v29  }
  0x5c   :  { %v2836_v53 = vpop.permute.xlu2 %212 }
  0x5d   :  { %4754 = vst [vmem:[#allocation7_spill] sm:$0xff] %v2836_v53 }
  0x62   :  { %576 = vperm.xlu2 %2273, %v477_v34  }
  0x63   :  { %572 = vperm.xlu1 %2272, %v476_v35   ;;  %568 = vperm.xlu0 %2271, %v475_v36  }
  0x64   :  { %v2838_v57 = vpop.permute.xlu2 %217 }
  0x65   :  { %4755 = vst [vmem:[#allocation8_spill] sm:$0xff] %v2838_v57 }
  0x6a   :  { %588 = vperm.xlu2 %2273, %v480_v39  }
  0x6b   :  { %584 = vperm.xlu1 %2272, %v479_v40   ;;  %580 = vperm.xlu0 %2271, %v478_v41  }
  0x6c   :  { %v2851_v2 = vpop.permute.xlu2 %384 }
  0x6d   :  { %vm395_vm11 = vcmp.eq.s32.totalorder %v2851_v2, 1 }
  0x72   :  { %600 = vperm.xlu2 %2273, %v483_v45  }
  0x73   :  { %596 = vperm.xlu1 %2272, %v482_v46   ;;  %592 = vperm.xlu0 %2271, %v481_v47  }
  0x74   :  { %v2860_v21 = vpop.permute.xlu2 %393 }
  0x75   :  { %v43_v54 = vpop.permute.xlu0 %42  ;;  %v53_v4 = vpop.permute.xlu1 %52  ;;  %vm398_vm12 = vcmp.eq.s32.totalorder %v2860_v21, 1 }
  0x7a   :  { %612 = vperm.xlu2 %2273, %v486_v50  }
  0x7b   :  { %608 = vperm.xlu1 %2272, %v485_v51   ;;  %604 = vperm.xlu0 %2271, %v484_v52  }
  0x7c   :  { %v2868_v43 = vpop.permute.xlu2 %415 }
  0x7d   :  { %v48_v16 = vpop.permute.xlu0 %47  ;;  %v58_v18 = vpop.permute.xlu1 %57 }
  0x84   :  { %v90_v55 = vpop.f32.mrf.mxu0 }
  0x85   :  { %v2840_v58 = vadd.f32 %v90_v55, %v43_v54 }
  0x87   :  { %v2843_v59 = vmul.f32 0.70710677, %v2840_v58 }
  0x89   :  { %v110_v60 = vand.u32 2147483647, %v2843_v59  ;;  %vm186_vm8 = vcmp.ge.f32.partialorder %v2843_v59, 0.0 }
  0x8a   :  { %v93_v61 = vpop.f32.mrf.mxu3 }
  0x8b   :  { %v114_v62 = vmul.f32 0.3275911, %v110_v60  ;;  %v2846_v63 = vadd.f32 %v93_v61, %v48_v16  ;;  %v162_v33 = vsub.f32 0.0, %v110_v60 }
  0x8d   :  { %v118_v0 = vadd.f32 1.0, %v114_v62  ;;  %v2849_v1 = vmul.f32 0.70710677, %v2846_v63  ;;  %v166_v40 = vmul.f32 %v162_v33, %v110_v60 }
  0x8f   :  { %2282 = vrcp.f32 %v118_v0  ;;  %v111_v3 = vand.u32 2147483647, %v2849_v1  ;;  %v170_v49 = vmul.f32 1.442695, %v166_v40  ;;  %vm187_vm7 = vcmp.ge.f32.partialorder %v2849_v1, 0.0 }
  0x90   :  { %v102_v1 = vmul.f32 0.5, %v2840_v58 }
  0x91   :  { %v115_v5 = vmul.f32 0.3275911, %v111_v3  ;;  %v163_v30 = vsub.f32 0.0, %v111_v3 }
  0x92   :  { %v96_v6 = vpop.f32.mrf.mxu3 }
  0x93   :  { %v119_v7 = vadd.f32 1.0, %v115_v5  ;;  %v2854_v9 = vadd.f32 %v96_v6, %v53_v4  ;;  %v167_v38 = vmul.f32 %v163_v30, %v111_v3 }
  0x95   :  { %v2283_v10 = vpop.eup %2282  ;;  %2284 = vrcp.f32 %v119_v7  ;;  %v2857_v13 = vmul.f32 0.70710677, %v2854_v9  ;;  %v172_v17 = vmul.f32 1.442695, %v167_v38 }
  0x96   :  { %v126_v14 = vmul.f32 1.0614054, %v2283_v10 }
  0x97   :  { %v112_v19 = vand.u32 2147483647, %v2857_v13  ;;  %vm188_vm9 = vcmp.ge.f32.partialorder %v2857_v13, 0.0 }
  0x98   :  { %v130_v20 = vadd.f32 -1.4531521, %v126_v14  ;;  %v2870_v14 = vpop.permute.xlu2 %492 }
  0x99   :  { %v116_v22 = vmul.f32 0.3275911, %v112_v19  ;;  %v164_v44 = vsub.f32 0.0, %v112_v19 }
  0x9a   :  { %v134_v23 = vmul.f32 %v2283_v10, %v130_v20  ;;  %v99_v24 = vpop.f32.mrf.mxu3  ;;  %v2872_v20 = vpop.permute.xlu1 %227 }
  0x9b   :  { %v2285_v25 = vpop.eup %2284  ;;  %v120_v26 = vadd.f32 1.0, %v116_v22  ;;  %v2862_v27 = vadd.f32 %v99_v24, %v58_v18  ;;  %v168_v52 = vmul.f32 %v164_v44, %v112_v19  ;;  %4756 = vst [vmem:[#allocation9_spill] sm:$0xff] %v2872_v20  ;;  %v2874_v22 = vpop.permute.xlu0 %222 }
  0x9c   :  { %v138_v28 = vadd.f32 1.4214138, %v134_v23  ;;  %v127_v29 = vmul.f32 1.0614054, %v2285_v25  ;;  %4757 = vst [vmem:[#allocation10_spill] sm:$0xff] %v2874_v22 }
  0x9d   :  { %2286 = vrcp.f32 %v120_v26  ;;  %v2865_v31 = vmul.f32 0.70710677, %v2862_v27  ;;  %v174_v0 = vmul.f32 1.442695, %v168_v52 }
  0x9e   :  { %v142_v32 = vmul.f32 %v2283_v10, %v138_v28  ;;  %v131_v34 = vadd.f32 -1.4531521, %v127_v29 }
  0x9f   :  { %v113_v35 = vand.u32 2147483647, %v2865_v31  ;;  %vm189_vm10 = vcmp.ge.f32.partialorder %v2865_v31, 0.0 }
  0xa0   :  { %v135_v36 = vmul.f32 %v2285_v25, %v131_v34  ;;  %v146_v37 = vadd.f32 -0.28449672, %v142_v32  ;;  %v2876_v44 = vpop.permute.xlu2 %504 }
  0xa1   :  { %v117_v39 = vmul.f32 0.3275911, %v113_v35  ;;  %v165_v3 = vsub.f32 0.0, %v113_v35 }
  0xa2   :  { %v139_v41 = vadd.f32 1.4214138, %v135_v36  ;;  %v150_v48 = vmul.f32 %v2283_v10, %v146_v37 }
  0xa3   :  { %v2287_v42 = vpop.eup %2286  ;;  %v121_v45 = vadd.f32 1.0, %v117_v39  ;;  %v169_v24 = vmul.f32 %v165_v3, %v113_v35  ;;  %v103_v3 = vmul.f32 0.5, %v2846_v63  ;;  %v105_v63 = vmul.f32 0.5, %v2862_v27 }
  0xa4   :  { %v143_v46 = vmul.f32 %v2285_v25, %v139_v41  ;;  %v128_v47 = vmul.f32 1.0614054, %v2287_v42  ;;  %v154_v16 = vadd.f32 0.2548296, %v150_v48 }
  0xa5   :  { %2288 = vrcp.f32 %v121_v45  ;;  %v176_v34 = vmul.f32 1.442695, %v169_v24  ;;  %v2878_v45 = vpop.permute.xlu1 %390 }
  0xa6   :  { %v147_v50 = vadd.f32 -0.28449672, %v143_v46  ;;  %v132_v51 = vadd.f32 -1.4531521, %v128_v47  ;;  %2290 = vpow2.f32 %v172_v17  ;;  %v158_v7 = vmul.f32 %v2283_v10, %v154_v16  ;;  %v2880_v46 = vpop.permute.xlu0 %387 }
  0xa7   :  { %2292 = vpow2.f32 %v170_v49  ;;  %vm396_vm13 = vcmp.eq.s32.totalorder %v2880_v46, 1  ;;  %vm397_vm14 = vcmp.eq.s32.totalorder %v2878_v45, 1 }
  0xa8   :  { %v151_v54 = vmul.f32 %v2285_v25, %v147_v50  ;;  %v136_v55 = vmul.f32 %v2287_v42, %v132_v51  ;;  %2294 = vpow2.f32 %v174_v0 }
  0xa9   :  { %2296 = vpow2.f32 %v176_v34 }
  0xaa   :  { %v155_v60 = vadd.f32 0.2548296, %v151_v54  ;;  %v140_v61 = vadd.f32 1.4214138, %v136_v55 }
  0xab   :  { %v2289_v62 = vpop.eup %2288 }
  0xac   :  { %v159_v4 = vmul.f32 %v2285_v25, %v155_v60  ;;  %v144_v5 = vmul.f32 %v2287_v42, %v140_v61  ;;  %v129_v6 = vmul.f32 1.0614054, %v2289_v62  ;;  %v2291_v23 = vpop.eup %2290 }
  0xad   :  { %v2293_v26 = vpop.eup %2292 }
  0xae   :  { %v148_v19 = vadd.f32 -0.28449672, %v144_v5  ;;  %v133_v18 = vadd.f32 -1.4531521, %v129_v6  ;;  %v179_v28 = vmul.f32 %v2291_v23, %v159_v4  ;;  %v178_v32 = vmul.f32 %v2293_v26, %v158_v7  ;;  %v2295_v38 = vpop.eup %2294  ;;  %v2886_v5 = vpop.permute.xlu2 %516 }
  0xaf   :  { %v2297_v52 = vpop.eup %2296  ;;  %v411_v6 = vpop.permute.xlu1 %410 }
  0xb0   :  { %v152_v29 = vmul.f32 %v2287_v42, %v148_v19  ;;  %v137_v30 = vmul.f32 %v2289_v62, %v133_v18  ;;  %v183_v10 = vsub.f32 1.0, %v179_v28  ;;  %v182_v39 = vsub.f32 1.0, %v178_v32  ;;  %v406_v59 = vpop.permute.xlu0 %405 }
  0xb1   :  { %v104_v19 = vmul.f32 0.5, %v2854_v9 }
  0xb2   :  { %v156_v25 = vadd.f32 0.2548296, %v152_v29  ;;  %v141_v33 = vadd.f32 1.4214138, %v137_v30  ;;  %v191_v35 = vsub.f32 0.0, %v183_v10  ;;  %v190_v17 = vsub.f32 0.0, %v182_v39 }
  0xb4   :  { %v160_v36 = vmul.f32 %v2287_v42, %v156_v25  ;;  %v145_v37 = vmul.f32 %v2289_v62, %v141_v33  ;;  %v195_v42 = vsel %vm187_vm7, %v183_v10, %v191_v35  ;;  %v194_v54 = vsel %vm186_vm8, %v182_v39, %v190_v17 }
  0xb5   :  { %v199_v60 = vadd.f32 1.0, %v195_v42  ;;  %v198_v61 = vadd.f32 1.0, %v194_v54 }
  0xb6   :  { %v180_v40 = vmul.f32 %v2295_v38, %v160_v36  ;;  %v149_v41 = vadd.f32 -0.28449672, %v145_v37  ;;  %v2916_v36 = vpop.permute.xlu2 %528 }
  0xb7   :  { %v2893_v13 = vmul.f32 %v198_v61, %v102_v1  ;;  %v489_v37 = vpop.permute.xlu1 %488 }
  0xb8   :  { %v184_v47 = vsub.f32 1.0, %v180_v40  ;;  %v153_v48 = vmul.f32 %v2289_v62, %v149_v41  ;;  %v421_v40 = vpop.permute.xlu0 %420 }
  0xb9   :  { %v349_v9 = vsel %vm234_vm5, %v2893_v13, -inf  ;;  %v362_v31 = vsel %vm234_vm5, %v2893_v13, inf  ;;  %v2945_v2 = vmul.f32 %v2870_v14, %v2893_v13  ;;  %v2949_v21 = vmul.f32 %v2876_v44, %v2893_v13 }
  0xba   :  { %v192_v49 = vsub.f32 0.0, %v184_v47  ;;  %v157_v50 = vadd.f32 0.2548296, %v153_v48  ;;  %v615_v46 = vmul.f32 %v489_v37, %v2893_v13 }
  0xbc   :  { %v161_v51 = vmul.f32 %v2289_v62, %v157_v50  ;;  %v196_v55 = vsel %vm188_vm9, %v184_v47, %v192_v49  ;;  %v2889_v62 = vmul.f32 %v199_v60, %v103_v3 }
  0xbd   :  { %v200_v4 = vadd.f32 1.0, %v196_v55 }
  0xbe   :  { %v181_v16 = vmul.f32 %v2297_v52, %v161_v51  ;;  %v350_v58 = vsel %vm234_vm5, %v2889_v62, -inf  ;;  %v363_v28 = vsel %vm234_vm5, %v2889_v62, inf  ;;  %v2918_v51 = vpop.permute.xlu2 %540 }
  0xbf   :  { %v2895_v23 = vmul.f32 %v200_v4, %v104_v19  ;;  %v353_v25 = vmax.f32 %v349_v9, %v350_v58  ;;  %v366_v34 = vmin.f32 %v362_v31, %v363_v28  ;;  %v2920_v52 = vpop.permute.xlu1 %500  ;;  %v616_v28 = vmul.f32 %v489_v37, %v2889_v62 }
  0xc0   :  { %v185_v0 = vsub.f32 1.0, %v181_v16  ;;  %v2922_v16 = vpop.permute.xlu0 %496 }
  0xc1   :  { %v351_v29 = vsel %vm234_vm5, %v2895_v23, -inf  ;;  %v364_v30 = vsel %vm234_vm5, %v2895_v23, inf  ;;  %v2969_v31 = vmul.f32 %v2922_v16, %v2893_v13  ;;  %v625_v56 = vmul.f32 %v2922_v16, %v2895_v23 }
  0xc2   :  { %v193_v7 = vsub.f32 0.0, %v185_v0 }
  0xc4   :  { %v197_v18 = vsel %vm189_vm10, %v185_v0, %v193_v7 }
  0xc5   :  { %v201_v24 = vadd.f32 1.0, %v197_v18 }
  0xc7   :  { %v2898_v26 = vmul.f32 %v201_v24, %v105_v63  ;;  %v2961_v63 = vmul.f32 %v2918_v51, %v2893_v13  ;;  %v627_v24 = vmul.f32 %v2920_v52, %v2893_v13 }
  0xc9   :  { %v352_v27 = vsel %vm234_vm5, %v2898_v26, -inf  ;;  %v365_v32 = vsel %vm234_vm5, %v2898_v26, inf }
  0xca   :  { %v354_v33 = vmax.f32 %v351_v29, %v352_v27  ;;  %v367_v10 = vmin.f32 %v364_v30, %v365_v32  ;;  %v2971_v29 = vpop.permute.xlu2 %552  ;;  %v2973_v27 = vpop.permute.xlu1 %512  ;;  %v617_v30 = vmul.f32 %v489_v37, %v2895_v23 }
  0xcb   :  { %v3050_v8 = vmul.f32 %v2971_v29, %v2895_v23  ;;  %v3056_v20 = vmul.f32 %v2973_v27, %v2895_v23 }
  0xcc   :  { %v355_v38 = vmax.f32 %v353_v25, %v354_v33  ;;  %v368_v39 = vmin.f32 %v366_v34, %v367_v10  ;;  %v2979_v25 = vmul.f32 %v2971_v29, %v2893_v13  ;;  %v2983_v33 = vmul.f32 %v2973_v27, %v2893_v13  ;;  %v2985_v34 = vpop.permute.xlu0 %508 }
  0xcd   :  { %v2989_v10 = vmul.f32 %v2876_v44, %v2889_v62 }
  0xce   :  { %v356_v41 = vrot.slane %v355_v38, 4  ;;  %v369_v35 = vrot.slane %v368_v39, 4 }
  0xd0   :  { %v357_v47 = vmax.f32 %v355_v38, %v356_v41  ;;  %v370_v48 = vmin.f32 %v368_v39, %v369_v35  ;;  %v618_v38 = vmul.f32 %v489_v37, %v2898_v26  ;;  %v2999_v41 = vmul.f32 %v2886_v5, %v2889_v62 }
  0xd1   :  { %v656_v35 = vmul.f32 %v2916_v36, %v2889_v62  ;;  %v3007_v37 = vmul.f32 %v2918_v51, %v2889_v62 }
  0xd2   :  { %v358_v17 = vrot.slane %v357_v47, 2  ;;  %v371_v49 = vrot.slane %v370_v48, 2 }
  0xd4   :  { %v359_v50 = vmax.f32 %v357_v47, %v358_v17  ;;  %v372_v42 = vmin.f32 %v370_v48, %v371_v49 }
  0xd6   :  { %v360_v54 = vrot.slane %v359_v50, 1  ;;  %v373_v55 = vrot.slane %v372_v42, 1 }
  0xd8   :  { %v2924_v60 = vmax.f32 %v359_v50, %v360_v54  ;;  %v2926_v61 = vmin.f32 %v372_v42, %v373_v55  ;;  %v628_v50 = vmul.f32 %v2920_v52, %v2889_v62  ;;  %v624_v54 = vmul.f32 %v2922_v16, %v2889_v62 }
  0xda   :  { %v400_v0 = vsel %vm396_vm13, %v2924_v60, %v2926_v61  ;;  %v399_v3 = vsel %vm395_vm11, %v2924_v60, %v2926_v61  ;;  %v402_v4 = vsel %vm398_vm12, %v2924_v60, %v2926_v61 }
  0xdb   :  { %v2937_v1 = vmul.f32 %v411_v6, %v400_v0  ;;  %v2939_v7 = vmul.f32 %v406_v59, %v399_v3  ;;  %v2941_v19 = vmul.f32 %v421_v40, %v402_v4  ;;  %v2955_v6 = vmul.f32 %v2886_v5, %v2893_v13 }
  0xdc   :  { %v655_v59 = vmul.f32 %v2916_v36, %v2893_v13  ;;  %v2995_v40 = vmul.f32 %v2985_v34, %v2893_v13  ;;  %v3018_v0 = vmul.f32 %v2971_v29, %v2889_v62  ;;  %v3022_v4 = vmul.f32 %v2973_v27, %v2889_v62 }
  0xdd   :  { %4758 = vst [vmem:[#allocation11_spill] sm:$0xff] %v2941_v19  ;;  %v775_v18 = vperm.slane %v2939_v7, 0  ;;  %v755_v58 = vrot.slane %v2937_v1, 2  ;;  %v749_v32 = vrot.slane %v2939_v7, 3  ;;  %v748_v55 = vrot.slane %v2939_v7, 2 }
  0xde   :  { %v752_v12 = vrot.slane %v2939_v7, 6 }
  0xdf   :  { %v839_v9 = vsub.f32 %v615_v46, %v775_v18  ;;  %v840_v39 = vsub.f32 %v616_v28, %v775_v18  ;;  %v841_v47 = vsub.f32 %v617_v30, %v775_v18  ;;  %v3003_v17 = vperm.slane %v755_v58, 0 }
  0xe0   :  { %v842_v49 = vsub.f32 %v618_v38, %v775_v18  ;;  %v3011_v42 = vperm.slane %v749_v32, 0  ;;  %v3026_v46 = vmul.f32 %v2870_v14, %v2889_v62  ;;  %v3030_v18 = vmul.f32 %v2886_v5, %v2895_v23 }
  0xe1   :  { %v967_v48 = vmul.f32 1.442695, %v839_v9  ;;  %v969_v3 = vmul.f32 1.442695, %v840_v39  ;;  %v657_v58 = vmul.f32 %v2916_v36, %v2895_v23  ;;  %v971_v28 = vmul.f32 1.442695, %v841_v47 }
  0xe2   :  { %v3036_v9 = vmul.f32 %v2985_v34, %v2889_v62  ;;  %v879_v30 = vsub.f32 %v655_v59, %v3003_v17  ;;  %v973_v32 = vmul.f32 1.442695, %v842_v49  ;;  %v3041_v38 = vmul.f32 %v2918_v51, %v2895_v23 }
  0xe3   :  { %2298 = vpow2.f32 %v967_v48  ;;  %v629_v39 = vmul.f32 %v2920_v52, %v2895_v23  ;;  %v851_v48 = vsub.f32 %v627_v24, %v3011_v42  ;;  %v777_v47 = vperm.slane %v748_v55, 0 }
  0xe4   :  { %2300 = vpow2.f32 %v969_v3  ;;  %v758_v59 = vrot.slane %v2937_v1, 5  ;;  %v852_v49 = vsub.f32 %v628_v50, %v3011_v42  ;;  %v3060_v24 = vmul.f32 %v2916_v36, %v2898_v26 }
  0xe5   :  { %v880_v22 = vsub.f32 %v656_v35, %v3003_v17  ;;  %2302 = vpow2.f32 %v971_v28  ;;  %v401_v55 = vsel %vm397_vm14, %v2924_v60, %v2926_v61  ;;  %v1047_v57 = vmul.f32 1.442695, %v879_v30 }
  0xe6   :  { %2304 = vpow2.f32 %v973_v32  ;;  %v3071_v50 = vmul.f32 %v2918_v51, %v2898_v26  ;;  %v853_v53 = vsub.f32 %v629_v39, %v3011_v42  ;;  %v630_v36 = vmul.f32 %v2920_v52, %v2898_v26 }
  0xe7   :  { %v991_v35 = vmul.f32 1.442695, %v851_v48  ;;  %v626_v28 = vmul.f32 %v2922_v16, %v2898_v26  ;;  %v847_v45 = vsub.f32 %v2969_v31, %v777_v47  ;;  %v788_v60 = vperm.slane %v758_v59, 0 }
  0xe8   :  { %v993_v61 = vmul.f32 1.442695, %v852_v49  ;;  %v848_v11 = vsub.f32 %v624_v54, %v777_v47  ;;  %v3080_v30 = vmul.f32 %v2868_v43, %v401_v55  ;;  %v1049_v32 = vmul.f32 1.442695, %v880_v22 }
  0xe9   :  { %v3067_v3 = vpop.eup %2298  ;;  %v849_v39 = vsub.f32 %v625_v56, %v777_v47  ;;  %v881_v48 = vsub.f32 %v657_v58, %v3003_v17  ;;  %2306 = vpow2.f32 %v1047_v57  ;;  %v995_v16 = vmul.f32 1.442695, %v853_v53 }
  0xea   :  { %v1223_v51 = vsel %vm234_vm5, %v3067_v3, 0.0  ;;  %v3085_v52 = vpop.eup %2300  ;;  %v850_v31 = vsub.f32 %v626_v28, %v777_v47  ;;  %v882_v43 = vsub.f32 %v3060_v24, %v3003_v17  ;;  %2308 = vpow2.f32 %v991_v35 }
  0xeb   :  { %v3088_v59 = vpop.eup %2302  ;;  %v1224_v22 = vsel %vm234_vm5, %v3085_v52, 0.0  ;;  %v983_v54 = vmul.f32 1.442695, %v847_v45  ;;  %v891_v55 = vsub.f32 %v2961_v63, %v788_v60  ;;  %2310 = vpow2.f32 %v993_v61 }
  0xec   :  { %v3094_v56 = vpop.eup %2304  ;;  %v1225_v49 = vadd.f32 %v1224_v22, %v1223_v51  ;;  %v985_v58 = vmul.f32 1.442695, %v848_v11  ;;  %2312 = vpow2.f32 %v1049_v32  ;;  %v1226_v53 = vsel %vm234_vm5, %v3088_v59, 0.0 }
  0xed   :  { %v854_v57 = vsub.f32 %v630_v36, %v3011_v42  ;;  %v987_v47 = vmul.f32 1.442695, %v849_v39  ;;  %v1051_v17 = vmul.f32 1.442695, %v881_v48  ;;  %2314 = vpow2.f32 %v995_v16 }
  0xee   :  { %v1227_v24 = vadd.f32 %v1226_v53, %v1225_v49  ;;  %v989_v28 = vmul.f32 1.442695, %v850_v31  ;;  %v1228_v35 = vsel %vm234_vm5, %v3094_v56, 0.0  ;;  %v892_v45 = vsub.f32 %v3007_v37, %v788_v60 }
  0xef   :  { %v893_v63 = vsub.f32 %v3041_v38, %v788_v60  ;;  %2316 = vpow2.f32 %v983_v54  ;;  %v3104_v11 = vpop.eup %2306  ;;  %v3107_v32 = vperm.slane %v3080_v30, 0  ;;  %v3111_v42 = vmul.f32 %v2870_v14, %v2895_v23 }
  0xf0   :  { %4759 = vst [vmem:[#allocation12_spill] sm:$0xff] %v3104_v11  ;;  %v1229_v61 = vadd.f32 %v1228_v35, %v1227_v24  ;;  %2318 = vpow2.f32 %v985_v58  ;;  %v3113_v36 = vpop.eup %2308  ;;  %v894_v51 = vsub.f32 %v3071_v50, %v788_v60  ;;  %v997_v39 = vmul.f32 1.442695, %v854_v57 }
  0xf1   :  { %2320 = vpow2.f32 %v987_v47  ;;  %v3116_v37 = vperm.slane %v752_v12, 0  ;;  %v3118_v38 = vpop.eup %2310  ;;  %v1071_v48 = vmul.f32 1.442695, %v891_v55  ;;  %v3122_v16 = vmul.f32 %v2971_v29, %v2898_v26 }
  0xf2   :  { %2322 = vpow2.f32 %v989_v28  ;;  %v3126_v31 = vmul.f32 %v2973_v27, %v2898_v26  ;;  %v3128_v22 = vpop.eup %2312  ;;  %v1053_v50 = vmul.f32 1.442695, %v882_v43  ;;  %v1073_v60 = vmul.f32 1.442695, %v892_v45 }
  0xf3   :  { %4760 = vst [vmem:[#allocation13_spill] sm:$0xff] %v3128_v22  ;;  %2324 = vpow2.f32 %v1051_v17  ;;  %v1075_v54 = vmul.f32 1.442695, %v893_v63  ;;  %v3130_v12 = vpop.eup %2314  ;;  %v1230_v49 = vrot.slane %v1229_v61, 4  ;;  %v1262_v55 = vsel %vm234_vm5, %v3113_v36, 0.0 }
  0xf4   :  { %4761 = vst [vmem:[#allocation14_spill] sm:$0xff] %v3130_v12  ;;  %v1263_v29 = vsel %vm234_vm5, %v3118_v38, 0.0  ;;  %v903_v58 = vsub.f32 %v2979_v25, %v3107_v32  ;;  %v1353_v53 = vsel %vm234_vm5, %v3104_v11, 0.0  ;;  %v1077_v43 = vmul.f32 1.442695, %v894_v51 }
  0xf5   :  { %v3138_v27 = vpop.eup %2316  ;;  %2326 = vpow2.f32 %v997_v39  ;;  %v863_v57 = vsub.f32 %v2983_v33, %v3116_v37  ;;  %v1354_v17 = vsel %vm234_vm5, %v3128_v22, 0.0  ;;  %v904_v25 = vsub.f32 %v3018_v0, %v3107_v32 }
  0xf6   :  { %v3144_v47 = vpop.eup %2318  ;;  %2328 = vpow2.f32 %v1071_v48  ;;  %v1249_v24 = vsel %vm234_vm5, %v3138_v27, 0.0  ;;  %v1264_v35 = vadd.f32 %v1263_v29, %v1262_v55  ;;  %v864_v33 = vsub.f32 %v3022_v4, %v3116_v37 }
  0xf7   :  { %v3152_v28 = vpop.eup %2320  ;;  %2330 = vpow2.f32 %v1073_v60  ;;  %v1250_v45 = vsel %vm234_vm5, %v3144_v47, 0.0  ;;  %v1231_v51 = vadd.f32 %v1230_v49, %v1229_v61  ;;  %v1095_v48 = vmul.f32 1.442695, %v903_v58 }
  0xf8   :  { %v3158_v63 = vpop.eup %2322  ;;  %2332 = vpow2.f32 %v1053_v50  ;;  %v1251_v39 = vadd.f32 %v1250_v45, %v1249_v24  ;;  %v1355_v22 = vadd.f32 %v1354_v17, %v1353_v53  ;;  %v1252_v0 = vsel %vm234_vm5, %v3152_v28, 0.0 }
  0xf9   :  { %v3160_v11 = vpop.eup %2324  ;;  %v865_v60 = vsub.f32 %v3056_v20, %v3116_v37  ;;  %v1015_v55 = vmul.f32 1.442695, %v863_v57  ;;  %2334 = vpow2.f32 %v1075_v54  ;;  %v1265_v4 = vsel %vm234_vm5, %v3130_v12, 0.0 }
  0xfa   :  { %4762 = vst [vmem:[#allocation15_spill] sm:$0xff] %v3160_v11  ;;  %v1253_v29 = vadd.f32 %v1252_v0, %v1251_v39  ;;  %v1097_v19 = vmul.f32 1.442695, %v904_v25  ;;  %2336 = vpow2.f32 %v1077_v43  ;;  %v1266_v61 = vadd.f32 %v1265_v4, %v1264_v35 }
  0xfb   :  { %v3168_v50 = vpop.eup %2326  ;;  %v1254_v49 = vsel %vm234_vm5, %v3158_v63, 0.0  ;;  %v1017_v58 = vmul.f32 1.442695, %v864_v33  ;;  %v1232_v17 = vrot.slane %v1231_v51, 2  ;;  %2338 = vpow2.f32 %v1095_v48 }
  0xfc   :  { %v3172_v53 = vpop.eup %2328  ;;  %v1255_v24 = vadd.f32 %v1254_v49, %v1253_v29  ;;  %v866_v20 = vsub.f32 %v3126_v31, %v3116_v37  ;;  %v1356_v57 = vsel %vm234_vm5, %v3160_v11, 0.0  ;;  %v905_v43 = vsub.f32 %v3050_v8, %v3107_v32 }
  0xfd   :  { %4763 = vst [vmem:[#allocation16_spill] sm:$0xff] %v3172_v53  ;;  %v3176_v54 = vpop.eup %2330  ;;  %2340 = vpow2.f32 %v1015_v55  ;;  %v1019_v25 = vmul.f32 1.442695, %v865_v60  ;;  %v1267_v45 = vsel %vm234_vm5, %v3168_v50, 0.0  ;;  %v906_v39 = vsub.f32 %v3122_v16, %v3107_v32 }
  0xfe   :  { %4764 = vst [vmem:[#allocation17_spill] sm:$0xff] %v3176_v54  ;;  %v3182_v35 = vpop.eup %2332  ;;  %v1256_v33 = vrot.slane %v1255_v24, 4  ;;  %2342 = vpow2.f32 %v1097_v19  ;;  %v1357_v37 = vadd.f32 %v1356_v57, %v1355_v22  ;;  %v1392_v31 = vsel %vm234_vm5, %v3172_v53, 0.0 }
  0xff   :  { %4765 = vst [vmem:[#allocation18_spill] sm:$0xff] %v3182_v35  ;;  %v1268_v48 = vadd.f32 %v1267_v45, %v1266_v61  ;;  %2344 = vpow2.f32 %v1017_v58  ;;  %v3190_v0 = vpop.eup %2334  ;;  %v1233_v8 = vadd.f32 %v1232_v17, %v1231_v51  ;;  %v1393_v60 = vsel %vm234_vm5, %v3176_v54, 0.0 }
 0x100   :  { %4766 = vst [vmem:[#allocation19_spill] sm:$0xff] %v3190_v0  ;;  %v1257_v55 = vadd.f32 %v1256_v33, %v1255_v24  ;;  %v1021_v4 = vmul.f32 1.442695, %v866_v20  ;;  %v3194_v29 = vpop.eup %2336  ;;  %2346 = vpow2.f32 %v1019_v25  ;;  %v3198_v19 = vmul.f32 %v2870_v14, %v2898_v26 }
 0x101   :  { %4767 = vst [vmem:[#allocation20_spill] sm:$0xff] %v3194_v29  ;;  %v3202_v32 = vmul.f32 %v2876_v44, %v2895_v23  ;;  %v3206_v16 = vmul.f32 %v2985_v34, %v2895_v23  ;;  %v3208_v22 = vpop.eup %2338  ;;  %v1358_v51 = vsel %vm234_vm5, %v3182_v35, 0.0  ;;  %v1099_v49 = vmul.f32 1.442695, %v905_v43 }
 0x102   :  { %4768 = vst [vmem:[#allocation21_spill] sm:$0xff] %v3208_v22  ;;  %v1258_v61 = vrot.slane %v1257_v55, 2  ;;  %v747_v58 = vrot.slane %v2939_v7, 1  ;;  %v1359_v14 = vadd.f32 %v1358_v51, %v1357_v37  ;;  %v1394_v24 = vadd.f32 %v1393_v60, %v1392_v31 }
 0x103   :  { %v3213_v17 = vpop.eup %2340  ;;  %v1269_v20 = vrot.slane %v1268_v48, 4  ;;  %v3217_v57 = vmul.f32 %v2876_v44, %v2898_v26  ;;  %v1234_v45 = vrot.slane %v1233_v8, 1  ;;  %v1101_v33 = vmul.f32 1.442695, %v906_v39 }
 0x104   :  { %4769 = vst [vmem:[#allocation22_spill] sm:$0xff] %v3213_v17  ;;  %v3219_v25 = vpop.eup %2342  ;;  %2348 = vpow2.f32 %v1021_v4  ;;  %v1301_v53 = vsel %vm234_vm5, %v3213_v17, 0.0  ;;  %v1259_v11 = vadd.f32 %v1258_v61, %v1257_v55  ;;  %v3227_v37 = vmul.f32 %v2985_v34, %v2898_v26 }
 0x105   :  { %4770 = vst [vmem:[#allocation23_spill] sm:$0xff] %v3219_v25  ;;  %v3223_v43 = vpop.eup %2344  ;;  %v3231_v31 = vmul.f32 %v2886_v5, %v2898_v26  ;;  %v750_v44 = vrot.slane %v2939_v7, 4  ;;  %v1395_v39 = vsel %vm234_vm5, %v3190_v0, 0.0  ;;  %2350 = vpow2.f32 %v1099_v49 }
 0x106   :  { %4771 = vst [vmem:[#allocation24_spill] sm:$0xff] %v3223_v43  ;;  %v1302_v60 = vsel %vm234_vm5, %v3223_v43, 0.0  ;;  %v776_v4 = vperm.slane %v747_v58, 0  ;;  %v3238_v51 = vpop.eup %2346  ;;  %v1360_v55 = vrot.slane %v1359_v14, 4  ;;  %v1396_v61 = vadd.f32 %v1395_v39, %v1394_v24 }
 0x107   :  { %4772 = vst [vmem:[#allocation25_spill] sm:$0xff] %v3238_v51  ;;  %v1270_v34 = vadd.f32 %v1269_v20, %v1268_v48  ;;  %v1303_v54 = vadd.f32 %v1302_v60, %v1301_v53  ;;  %v1235_v35 = vadd.f32 %v1234_v45, %v1233_v8  ;;  %2352 = vpow2.f32 %v1101_v33 }
 0x108   :  { %v1431_v5 = vsel %vm234_vm5, %v3208_v22, 0.0  ;;  %v1432_v17 = vsel %vm234_vm5, %v3219_v25, 0.0  ;;  %v1260_v0 = vrot.slane %v1259_v11, 1  ;;  %v1304_v49 = vsel %vm234_vm5, %v3238_v51, 0.0 }
 0x109   :  { %v751_v58 = vrot.slane %v2939_v7, 5  ;;  %v779_v43 = vperm.slane %v750_v44, 0  ;;  %v1397_v53 = vsel %vm234_vm5, %v3194_v29, 0.0  ;;  %v1305_v48 = vadd.f32 %v1304_v49, %v1303_v54 }
 0x10a   :  { %v3247_v12 = vpop.eup %2348  ;;  %v843_v8 = vsub.f32 %v2945_v2, %v776_v4  ;;  %v844_v24 = vsub.f32 %v3026_v46, %v776_v4  ;;  %v3253_v20 = vadd.f32 %v1360_v55, %v1359_v14  ;;  %v3255_v45 = vadd.f32 %v1397_v53, %v1396_v61 }
 0x10b   :  { %4773 = vst [vmem:[#allocation26_spill] sm:$0xff] %v3247_v12  ;;  %v1271_v33 = vrot.slane %v1270_v34, 2  ;;  %v845_v39 = vsub.f32 %v3111_v42, %v776_v4  ;;  %v3258_v60 = vpop.eup %2350  ;;  %2354 = vrcp.f32 %v1235_v35  ;;  %v1433_v44 = vadd.f32 %v1432_v17, %v1431_v5 }
 0x10c   :  { %4774 = vst [vmem:[#allocation27_spill] sm:$0xff] %v3258_v60  ;;  %v753_v22 = vrot.slane %v2939_v7, 7  ;;  %v846_v25 = vsub.f32 %v3198_v19, %v776_v4  ;;  %v1261_v54 = vadd.f32 %v1260_v0, %v1259_v11  ;;  %v1306_v2 = vsel %vm234_vm5, %v3247_v12, 0.0 }
 0x10d   :  { %v780_v46 = vperm.slane %v751_v58, 0  ;;  %v855_v14 = vsub.f32 %v2949_v21, %v779_v43  ;;  %v3265_v55 = vpop.eup %2352  ;;  %v1307_v61 = vadd.f32 %v1306_v2, %v1305_v48  ;;  %v856_v42 = vsub.f32 %v2989_v10, %v779_v43 }
 0x10e   :  { %4775 = vst [vmem:[#allocation28_spill] sm:$0xff] %v3265_v55  ;;  %v975_v49 = vmul.f32 1.442695, %v843_v8  ;;  %v977_v53 = vmul.f32 1.442695, %v844_v24  ;;  %v3268_v35 = vadd.f32 %v1271_v33, %v1270_v34  ;;  %v1434_v7 = vsel %vm234_vm5, %v3258_v60, 0.0 }
 0x10f   :  { %v857_v11 = vsub.f32 %v3202_v32, %v779_v43  ;;  %v979_v0 = vmul.f32 1.442695, %v845_v39  ;;  %v782_v19 = vperm.slane %v753_v22, 0  ;;  %v858_v17 = vsub.f32 %v3217_v57, %v779_v43 }
 0x110   :  { %2356 = vpow2.f32 %v975_v49  ;;  %v981_v21 = vmul.f32 1.442695, %v846_v25  ;;  %v3276_v4 = vsel %vm234_vm5, %v3265_v55, 0.0  ;;  %v859_v10 = vsub.f32 %v2995_v40, %v780_v46 }
 0x111   :  { %2358 = vrcp.f32 %v1261_v54  ;;  %v999_v34 = vmul.f32 1.442695, %v855_v14  ;;  %v3279_v5 = vpop.eup %2354  ;;  %v1308_v58 = vrot.slane %v1307_v61, 4  ;;  %v860_v48 = vsub.f32 %v3036_v9, %v780_v46 }
 0x112   :  { %2360 = vpow2.f32 %v977_v53  ;;  %v1001_v32 = vmul.f32 1.442695, %v856_v42  ;;  %v861_v22 = vsub.f32 %v3206_v16, %v780_v46  ;;  %v862_v57 = vsub.f32 %v3227_v37, %v780_v46 }
 0x113   :  { %2362 = vpow2.f32 %v979_v0  ;;  %v1003_v25 = vmul.f32 1.442695, %v857_v11  ;;  %v867_v43 = vsub.f32 %v2955_v6, %v782_v19  ;;  %v868_v8 = vsub.f32 %v2999_v41, %v782_v19  ;;  %v565_v6 = vpop.permute.xlu2 %564 }
 0x114   :  { %2364 = vpow2.f32 %v981_v21  ;;  %v1005_v40 = vmul.f32 1.442695, %v858_v17  ;;  %v3286_v24 = vadd.f32 %v1434_v7, %v1433_v44  ;;  %v869_v33 = vsub.f32 %v3030_v18, %v782_v19 }
 0x115   :  { %v870_v9 = vsub.f32 %v3231_v31, %v782_v19  ;;  %2366 = vpow2.f32 %v999_v34  ;;  %v3293_v37 = vadd.f32 %v1308_v58, %v1307_v61  ;;  %v1007_v54 = vmul.f32 1.442695, %v859_v10 }
 0x116   :  { %v3290_v39 = vpop.eup %2356  ;;  %2368 = vpow2.f32 %v1001_v32  ;;  %v1009_v41 = vmul.f32 1.442695, %v860_v48  ;;  %v1011_v44 = vmul.f32 1.442695, %v861_v22  ;;  %v1013_v31 = vmul.f32 1.442695, %v862_v57 }
 0x117   :  { %v3295_v2 = vpop.eup %2358  ;;  %2370 = vpow2.f32 %v1003_v25  ;;  %v1236_v18 = vsel %vm234_vm5, %v3290_v39, 0.0  ;;  %v1023_v14 = vmul.f32 1.442695, %v867_v43  ;;  %v1025_v42 = vmul.f32 1.442695, %v868_v8 }
 0x118   :  { %v3299_v46 = vpop.eup %2360  ;;  %2372 = vpow2.f32 %v1005_v40  ;;  %v1027_v61 = vmul.f32 1.442695, %v869_v33  ;;  %v1029_v53 = vmul.f32 1.442695, %v870_v9  ;;  %v691_v11 = vmul.f32 %v565_v6, %v2893_v13 }
 0x119   :  { %v3301_v49 = vpop.eup %2362  ;;  %v1237_v7 = vsel %vm234_vm5, %v3299_v46, 0.0  ;;  %2374 = vpow2.f32 %v1007_v54  ;;  %v692_v17 = vmul.f32 %v565_v6, %v2889_v62  ;;  %v763_v21 = vrot.slane %v3080_v30, 3 }
 0x11a   :  { %v3306_v0 = vpop.eup %2364  ;;  %v1238_v19 = vadd.f32 %v1237_v7, %v1236_v18  ;;  %2376 = vpow2.f32 %v1009_v41  ;;  %v1239_v34 = vsel %vm234_vm5, %v3301_v49, 0.0  ;;  %v693_v58 = vmul.f32 %v565_v6, %v2895_v23 }
 0x11b   :  { %v3310_v10 = vpop.eup %2366  ;;  %v694_v48 = vmul.f32 %v565_v6, %v2898_v26  ;;  %2378 = vpow2.f32 %v1011_v44  ;;  %v794_v25 = vperm.slane %v763_v21, 0  ;;  %v1241_v8 = vsel %vm234_vm5, %v3306_v0, 0.0 }
 0x11c   :  { %v3316_v32 = vpop.eup %2368  ;;  %v1240_v22 = vadd.f32 %v1239_v34, %v1238_v19  ;;  %v1275_v57 = vsel %vm234_vm5, %v3310_v10, 0.0  ;;  %2380 = vpow2.f32 %v1013_v31  ;;  %v754_v33 = vrot.slane %v2937_v1, 1 }
 0x11d   :  { %v3320_v43 = vpop.eup %2370  ;;  %v1276_v40 = vsel %vm234_vm5, %v3316_v32, 0.0  ;;  %2382 = vpow2.f32 %v1023_v14  ;;  %v915_v18 = vsub.f32 %v691_v11, %v794_v25  ;;  %v916_v31 = vsub.f32 %v692_v17, %v794_v25 }
 0x11e   :  { %v3327_v9 = vpop.eup %2372  ;;  %v1242_v54 = vadd.f32 %v1241_v8, %v1240_v22  ;;  %v1277_v6 = vadd.f32 %v1276_v40, %v1275_v57  ;;  %v1278_v41 = vsel %vm234_vm5, %v3320_v43, 0.0  ;;  %2384 = vpow2.f32 %v1025_v42 }
 0x11f   :  { %v1280_v44 = vsel %vm234_vm5, %v3327_v9, 0.0  ;;  %v3333_v7 = vpop.eup %2374  ;;  %2386 = vpow2.f32 %v1027_v61  ;;  %v917_v34 = vsub.f32 %v693_v58, %v794_v25  ;;  %v918_v22 = vsub.f32 %v694_v48, %v794_v25 }
 0x120   :  { %v1243_v19 = vrot.slane %v1242_v54, 4  ;;  %v1279_v21 = vadd.f32 %v1278_v41, %v1277_v6  ;;  %v3335_v16 = vpop.eup %2376  ;;  %2388 = vpow2.f32 %v1029_v53  ;;  %v1288_v14 = vsel %vm234_vm5, %v3333_v7, 0.0 }
 0x121   :  { %v1119_v57 = vmul.f32 1.442695, %v915_v18  ;;  %v3339_v42 = vpop.eup %2378  ;;  %v1289_v11 = vsel %vm234_vm5, %v3335_v16, 0.0  ;;  %v1121_v17 = vmul.f32 1.442695, %v916_v31  ;;  %v3361_v60 = vperm.slane %v754_v33, 0 }
 0x122   :  { %4776 = vst [vmem:[#allocation29_spill] sm:$0xff] %v3339_v42  ;;  %v1244_v8 = vadd.f32 %v1243_v19, %v1242_v54  ;;  %v1281_v40 = vadd.f32 %v1280_v44, %v1279_v21  ;;  %v3343_v61 = vpop.eup %2380  ;;  %v1290_v6 = vadd.f32 %v1289_v11, %v1288_v14  ;;  %v1291_v58 = vsel %vm234_vm5, %v3339_v42, 0.0  ;;  %v3351_v44 = vpop.permute.xlu1 %524 }
 0x123   :  { %2390 = vpow2.f32 %v1119_v57  ;;  %v1123_v53 = vmul.f32 1.442695, %v917_v34  ;;  %v3347_v41 = vpop.eup %2382  ;;  %v1293_v54 = vsel %vm234_vm5, %v3343_v61, 0.0  ;;  %v1125_v21 = vmul.f32 1.442695, %v918_v22 }
 0x124   :  { %4777 = vst [vmem:[#allocation30_spill] sm:$0xff] %v3347_v41  ;;  %v1245_v48 = vrot.slane %v1244_v8, 2  ;;  %v1282_v25 = vrot.slane %v1281_v40, 4  ;;  %2392 = vpow2.f32 %v1121_v17  ;;  %v3353_v18 = vpop.eup %2384  ;;  %v1292_v31 = vadd.f32 %v1291_v58, %v1290_v6 }
 0x125   :  { %4778 = vst [vmem:[#allocation31_spill] sm:$0xff] %v3353_v18  ;;  %v1314_v19 = vsel %vm234_vm5, %v3347_v41, 0.0  ;;  %2394 = vpow2.f32 %v1123_v53  ;;  %v3357_v14 = vpop.eup %2386  ;;  %v1315_v11 = vsel %vm234_vm5, %v3353_v18, 0.0  ;;  %v1310_v55 = vrot.slane %v3293_v37, 2 }
 0x126   :  { %4779 = vst [vmem:[#allocation32_spill] sm:$0xff] %v3357_v14  ;;  %v1246_v34 = vadd.f32 %v1245_v48, %v1244_v8  ;;  %v1283_v57 = vadd.f32 %v1282_v25, %v1281_v40  ;;  %v3363_v17 = vpop.eup %2388  ;;  %v1294_v29 = vadd.f32 %v1293_v54, %v1292_v31  ;;  %v1316_v6 = vadd.f32 %v1315_v11, %v1314_v19 }
 0x127   :  { %4780 = vst [vmem:[#allocation33_spill] sm:$0xff] %v3363_v17  ;;  %v651_v58 = vmul.f32 %v3351_v44, %v2893_v13  ;;  %v1317_v8 = vsel %vm234_vm5, %v3357_v14, 0.0  ;;  %2396 = vpow2.f32 %v1125_v21  ;;  %v1319_v25 = vsel %vm234_vm5, %v3363_v17, 0.0 }
 0x128   :  { %v1247_v53 = vrot.slane %v1246_v34, 1  ;;  %v1284_v22 = vrot.slane %v1283_v57, 2  ;;  %v1295_v48 = vrot.slane %v1294_v29, 4  ;;  %v1318_v33 = vadd.f32 %v1317_v8, %v1316_v6 }
 0x129   :  { %v3370_v40 = vpop.eup %2390  ;;  %v652_v54 = vmul.f32 %v3351_v44, %v2889_v62  ;;  %v875_v14 = vsub.f32 %v651_v58, %v3361_v60  ;;  %v4784_v17 = vrot.slane %v3268_v35, 1 }
 0x12a   :  { %4781 = vst [vmem:[#allocation34_spill] sm:$0xff] %v3370_v40  ;;  %v3376_v31 = vpop.eup %2392  ;;  %v1248_v19 = vadd.f32 %v1247_v53, %v1246_v34  ;;  %v1285_v11 = vadd.f32 %v1284_v22, %v1283_v57  ;;  %v1470_v18 = vsel %vm234_vm5, %v3370_v40, 0.0  ;;  %v1296_v41 = vadd.f32 %v1295_v48, %v1294_v29 }
 0x12b   :  { %4782 = vst [vmem:[#allocation35_spill] sm:$0xff] %v3376_v31  ;;  %v3381_v21 = vpop.eup %2394  ;;  %v1320_v51 = vadd.f32 %v1319_v25, %v1318_v33  ;;  %v1471_v6 = vsel %vm234_vm5, %v3376_v31, 0.0  ;;  %v876_v8 = vsub.f32 %v652_v54, %v3361_v60  ;;  %v1274_v12 = vadd.f32 %v4784_v17, %v3268_v35 }
 0x12c   :  { %4783 = vst [vmem:[#allocation36_spill] sm:$0xff] %v3381_v21  ;;  %v1286_v34 = vrot.slane %v1285_v11, 1  ;;  %2398 = vrcp.f32 %v1248_v19  ;;  %v1472_v57 = vadd.f32 %v1471_v6, %v1470_v18  ;;  %v1311_v53 = vadd.f32 %v1310_v55, %v3293_v37 }
 0x12d   :  { %v1297_v22 = vrot.slane %v1296_v41, 2  ;;  %v1321_v58 = vrot.slane %v1320_v51, 4  ;;  %v1473_v29 = vsel %vm234_vm5, %v3381_v21, 0.0  ;;  %v3392_v48 = vpop.eup %2396  ;;  %v1399_v33 = vrot.slane %v3255_v45, 4 }
 0x12e   :  { %4785 = vst [vmem:[#allocation37_spill] sm:$0xff] %v3392_v48  ;;  %v1437_v25 = vadd.f32 %v3276_v4, %v3286_v24  ;;  %v1474_v54 = vadd.f32 %v1473_v29, %v1472_v57  ;;  %v1039_v40 = vmul.f32 1.442695, %v875_v14  ;;  %v1041_v18 = vmul.f32 1.442695, %v876_v8 }
 0x12f   :  { %v1298_v35 = vadd.f32 %v1297_v22, %v1296_v41  ;;  %v1322_v17 = vadd.f32 %v1321_v58, %v1320_v51  ;;  %2400 = vrcp.f32 %v1274_v12  ;;  %v1287_v55 = vadd.f32 %v1286_v34, %v1285_v11 }
 0x130   :  { %v653_v37 = vmul.f32 %v3351_v44, %v2895_v23  ;;  %v1312_v19 = vrot.slane %v1311_v53, 1  ;;  %v1475_v31 = vsel %vm234_vm5, %v3392_v48, 0.0  ;;  %v1438_v4 = vrot.slane %v1437_v25, 4 }
 0x131   :  { %v1299_v6 = vrot.slane %v1298_v35, 1  ;;  %v1323_v21 = vrot.slane %v1322_v17, 2  ;;  %v1476_v24 = vadd.f32 %v1475_v31, %v1474_v54  ;;  %2402 = vpow2.f32 %v1039_v40 }
 0x132   :  { %v2399_v42 = vpop.eup %2398  ;;  %v877_v14 = vsub.f32 %v653_v37, %v3361_v60  ;;  %2404 = vpow2.f32 %v1041_v18  ;;  %v1362_v11 = vrot.slane %v3253_v20, 2  ;;  %v1400_v8 = vadd.f32 %v1399_v33, %v3255_v45 }
 0x133   :  { %v1300_v51 = vadd.f32 %v1299_v6, %v1298_v35  ;;  %v1324_v41 = vadd.f32 %v1323_v21, %v1322_v17  ;;  %v1704_v12 = vsel %vm1703_vm15, %v2399_v42, %v3279_v5  ;;  %2406 = vrcp.f32 %v1287_v55  ;;  %v521_v42 = vpop.permute.xlu0 %520 }
 0x134   :  { %v654_v34 = vmul.f32 %v3351_v44, %v2898_v26  ;;  %v1313_v57 = vadd.f32 %v1312_v19, %v1311_v53  ;;  %v1706_v40 = vsel %vm1705_vm0, %v3295_v2, %v1704_v12  ;;  %v1477_v21 = vrot.slane %v1476_v24, 4 }
 0x135   :  { %v1325_v31 = vrot.slane %v1324_v41, 1  ;;  %v2401_v22 = vpop.eup %2400  ;;  %v1043_v5 = vmul.f32 1.442695, %v877_v14  ;;  %v1439_v29 = vadd.f32 %v1438_v4, %v1437_v25  ;;  %2408 = vrcp.f32 %v1300_v51 }
 0x136   :  { %v878_v58 = vsub.f32 %v654_v34, %v3361_v60  ;;  %v3412_v45 = vperm.slane %v2937_v1, 0  ;;  %v1363_v44 = vadd.f32 %v1362_v11, %v3253_v20  ;;  %v1708_v53 = vsel %vm1707_vm1, %v2401_v22, %v1706_v40 }
 0x137   :  { %v3414_v33 = vpop.eup %2402  ;;  %v1401_v2 = vrot.slane %v1400_v8, 2  ;;  %2410 = vrcp.f32 %v1313_v57  ;;  %v1326_v35 = vadd.f32 %v1325_v31, %v1324_v41  ;;  %v647_v60 = vmul.f32 %v521_v42, %v2893_v13 }
 0x138   :  { %4786 = vst [vmem:[#allocation38_spill] sm:$0xff] %v3414_v33  ;;  %v3418_v54 = vpop.eup %2404  ;;  %v1478_v25 = vadd.f32 %v1477_v21, %v1476_v24  ;;  %2412 = vpow2.f32 %v1043_v5  ;;  %v1045_v18 = vmul.f32 1.442695, %v878_v58  ;;  %v648_v55 = vmul.f32 %v521_v42, %v2889_v62 }
 0x139   :  { %v2407_v17 = vpop.eup %2406  ;;  %v1440_v37 = vrot.slane %v1439_v29, 2  ;;  %v871_v19 = vsub.f32 %v647_v60, %v3412_v45  ;;  %v1364_v6 = vrot.slane %v1363_v44, 1  ;;  %v1402_v51 = vadd.f32 %v1401_v2, %v1400_v8 }
 0x13a   :  { %v1710_v20 = vsel %vm1709_vm2, %v2407_v17, %v1708_v53  ;;  %v872_v4 = vsub.f32 %v648_v55, %v3412_v45  ;;  %2414 = vrcp.f32 %v1326_v35  ;;  %v1340_v41 = vsel %vm234_vm5, %v3414_v33, 0.0 }
 0x13b   :  { %v2409_v14 = vpop.eup %2408  ;;  %v1341_v24 = vsel %vm234_vm5, %v3418_v54, 0.0  ;;  %v1479_v11 = vrot.slane %v1478_v25, 2  ;;  %2416 = vpow2.f32 %v1045_v18  ;;  %v1441_v57 = vadd.f32 %v1440_v37, %v1439_v29 }
 0x13c   :  { %v1712_v12 = vsel %vm1711_vm3, %v2409_v14, %v1710_v20  ;;  %v649_v31 = vmul.f32 %v521_v42, %v2895_v23  ;;  %v1031_v40 = vmul.f32 1.442695, %v871_v19  ;;  %v1342_v8 = vadd.f32 %v1341_v24, %v1340_v41  ;;  %v577_v20 = vpop.permute.xlu2 %576 }
 0x13d   :  { %v2411_v34 = vpop.eup %2410  ;;  %v1033_v21 = vmul.f32 1.442695, %v872_v4  ;;  %v766_v58 = vrot.slane %v3080_v30, 6  ;;  %v650_v53 = vmul.f32 %v521_v42, %v2898_v26  ;;  %v1365_v35 = vadd.f32 %v1364_v6, %v1363_v44 }
 0x13e   :  { %v3431_v22 = vpop.eup %2412  ;;  %v1714_v5 = vsel %vm1713_vm4, %v2411_v34, %v1712_v12  ;;  %v873_v2 = vsub.f32 %v649_v31, %v3412_v45  ;;  %v1403_v60 = vrot.slane %v1402_v51, 1  ;;  %v1480_v17 = vadd.f32 %v1479_v11, %v1478_v25 }
 0x13f   :  { %4787 = vst [vmem:[#allocation39_spill] sm:$0xff] %v3431_v22  ;;  %v1442_v18 = vrot.slane %v1441_v57, 1  ;;  %v1343_v55 = vsel %vm234_vm5, %v3431_v22, 0.0  ;;  %v874_v37 = vsub.f32 %v650_v53, %v3412_v45  ;;  %2418 = vpow2.f32 %v1031_v40 }
 0x140   :  { %v2415_v29 = vpop.eup %2414  ;;  %v1344_v14 = vadd.f32 %v1343_v55, %v1342_v8  ;;  %2420 = vpow2.f32 %v1033_v21  ;;  %v797_v42 = vperm.slane %v766_v58, 0  ;;  %v1035_v41 = vmul.f32 1.442695, %v873_v2 }
 0x141   :  { %v3440_v19 = vpop.eup %2416  ;;  %v1716_v4 = vsel %vm1715_vm6, %v2415_v29, %v1714_v5  ;;  %2422 = vrcp.f32 %v1365_v35  ;;  %v1404_v44 = vadd.f32 %v1403_v60, %v1402_v51  ;;  %v1481_v25 = vrot.slane %v1480_v17, 1 }
 0x142   :  { %4788 = vst [vmem:[#allocation40_spill] sm:$0xff] %v3440_v19  ;;  %v703_v6 = vmul.f32 %v577_v20, %v2893_v13  ;;  %v3445_v24 = vmul.f32 %v2799_v15, %v1716_v4  ;;  %v1345_v45 = vsel %vm234_vm5, %v3440_v19, 0.0  ;;  %v1037_v12 = vmul.f32 1.442695, %v874_v37 }
 0x143   :  { %v704_v11 = vmul.f32 %v577_v20, %v2889_v62  ;;  %v1443_v34 = vadd.f32 %v1442_v18, %v1441_v57  ;;  %v1346_v31 = vadd.f32 %v1345_v45, %v1344_v14  ;;  %v705_v40 = vmul.f32 %v577_v20, %v2895_v23  ;;  %v537_v57 = vpop.permute.xlu1 %536 }
 0x144   :  { %v927_v8 = vsub.f32 %v703_v6, %v797_v42  ;;  %2424 = vpow2.f32 %v1035_v41  ;;  %v706_v51 = vmul.f32 %v577_v20, %v2898_v26  ;;  %v1482_v15 = vadd.f32 %v1481_v25, %v1480_v17 }
 0x145   :  { %v3451_v21 = vpop.eup %2418  ;;  %v928_v58 = vsub.f32 %v704_v11, %v797_v42  ;;  %2426 = vrcp.f32 %v1404_v44  ;;  %v929_v53 = vsub.f32 %v705_v40, %v797_v42  ;;  %v1750_v2 = vrot.slane %v3445_v24, 1 }
 0x146   :  { %4789 = vst [vmem:[#allocation41_spill] sm:$0xff] %v3451_v21  ;;  %v3454_v5 = vpop.eup %2420  ;;  %2428 = vpow2.f32 %v1037_v12  ;;  %v930_v35 = vsub.f32 %v706_v51, %v797_v42  ;;  %v1347_v29 = vrot.slane %v1346_v31, 4  ;;  %v1143_v18 = vmul.f32 1.442695, %v927_v8 }
 0x147   :  { %v3457_v60 = vpop.eup %2422  ;;  %2430 = vrcp.f32 %v1443_v34  ;;  %v1751_v55 = vrot.slane %v3445_v24, 2  ;;  %v1327_v37 = vsel %vm234_vm5, %v3451_v21, 0.0  ;;  %v1328_v20 = vsel %vm234_vm5, %v3454_v5, 0.0 }
 0x148   :  { %v1145_v17 = vmul.f32 1.442695, %v928_v58  ;;  %2432 = vrcp.f32 %v1482_v15  ;;  %v1147_v4 = vmul.f32 1.442695, %v929_v53  ;;  %v3465_v14 = vmul.f32 %v537_v57, %v2893_v13 }
 0x149   :  { %v3468_v42 = vmul.f32 %v537_v57, %v2889_v62  ;;  %v1752_v44 = vrot.slane %v3445_v24, 3  ;;  %v1778_v25 = vperm.slane %v3445_v24, 0  ;;  %v1779_v6 = vperm.slane %v1750_v2, 0 }
 0x14a   :  { %v3470_v41 = vpop.eup %2424  ;;  %v1149_v45 = vmul.f32 1.442695, %v930_v35  ;;  %v3476_v11 = vadd.f32 %v1347_v29, %v1346_v31  ;;  %v1329_v34 = vadd.f32 %v1328_v20, %v1327_v37  ;;  %2434 = vpow2.f32 %v1143_v18 }
 0x14b   :  { %4790 = vst [vmem:[#allocation42_spill] sm:$0xff] %v3470_v41  ;;  %v3474_v12 = vpop.eup %2426  ;;  %v3479_v40 = vmul.f32 %v537_v57, %v2895_v23  ;;  %v1753_v51 = vrot.slane %v3445_v24, 4  ;;  %v1754_v58 = vrot.slane %v3445_v24, 5  ;;  %v1780_v15 = vperm.slane %v1751_v55, 0 }
 0x14c   :  { %v3481_v8 = vpop.eup %2428  ;;  %2436 = vpow2.f32 %v1145_v17  ;;  %v1755_v2 = vrot.slane %v3445_v24, 6  ;;  %v1756_v31 = vrot.slane %v3445_v24, 7  ;;  %v1330_v35 = vsel %vm234_vm5, %v3470_v41, 0.0 }
 0x14d   :  { %4791 = vst [vmem:[#allocation43_spill] sm:$0xff] %v3481_v8  ;;  %v3485_v53 = vpop.eup %2430  ;;  %v3492_v29 = vmul.f32 %v537_v57, %v2898_v26  ;;  %v1781_v18 = vperm.slane %v1752_v44, 0  ;;  %v1845_v37 = vmul.f32 %v3094_v56, %v1778_v25  ;;  %v1849_v20 = vmul.f32 %v3306_v0, %v1779_v6 }
 0x14e   :  { %4792 = vst [vmem:[#allocation44_spill] sm:$0xff] %v3485_v53  ;;  %2438 = vpow2.f32 %v1147_v4  ;;  %v3496_v55 = vpop.eup %2432  ;;  %v3499_v48 = vadd.f32 %v1330_v35, %v1329_v34  ;;  %v3503_v24 = vsel %vm234_vm5, %v3481_v8, 0.0  ;;  %v1782_v53 = vperm.slane %v1753_v51, 0 }
 0x14f   :  { %4793 = vst [vmem:[#allocation45_spill] sm:$0xff] %v3496_v55  ;;  %2440 = vpow2.f32 %v1149_v45  ;;  %v1783_v57 = vperm.slane %v1754_v58, 0  ;;  %v1853_v44 = vmul.f32 %v3158_v63, %v1780_v15  ;;  %v757_v56 = vrot.slane %v2937_v1, 4 }
 0x150   :  { %v3507_v22 = vpop.eup %2434  ;;  %v1784_v0 = vperm.slane %v1755_v2, 0  ;;  %v1785_v4 = vperm.slane %v1756_v31, 0  ;;  %v1842_v55 = vmul.f32 %v3067_v3, %v1778_v25  ;;  %v3511_v34 = vmul.f32 %v3085_v52, %v1778_v25 }
 0x151   :  { %4794 = vst [vmem:[#allocation46_spill] sm:$0xff] %v3507_v22  ;;  %v3516_v17 = vmul.f32 %v3088_v59, %v1778_v25  ;;  %v1857_v45 = vmul.f32 %v3168_v50, %v1781_v18  ;;  %v2159_v63 = vsel %vm234_vm5, %v1845_v37, 0.0  ;;  %v2160_v51 = vsel %vm234_vm5, %v1849_v20, 0.0  ;;  %v4798_v20 = vld [vmem:[#allocation14_spill] sm:$0xff] }
 0x152   :  { %v3513_v35 = vpop.eup %2436  ;;  %v1846_v58 = vmul.f32 %v3290_v39, %v1779_v6  ;;  %v1847_v2 = vmul.f32 %v3299_v46, %v1779_v6  ;;  %v3524_v3 = vmul.f32 %v3301_v49, %v1779_v6  ;;  %v2161_v52 = vadd.f32 %v2160_v51, %v2159_v63 }
 0x153   :  { %4795 = vst [vmem:[#allocation47_spill] sm:$0xff] %v3513_v35  ;;  %v1850_v33 = vmul.f32 %v3138_v27, %v1780_v15  ;;  %v3530_v59 = vmul.f32 %v3144_v47, %v1780_v15  ;;  %v1861_v50 = vmul.f32 %v3327_v9, %v1782_v53  ;;  %v2162_v25 = vsel %vm234_vm5, %v1853_v44, 0.0 }
 0x154   :  { %v3526_v31 = vpop.eup %2438  ;;  %v3537_v39 = vmul.f32 %v3152_v28, %v1780_v15  ;;  %v1854_v46 = vmul.f32 %v3113_v36, %v1781_v18  ;;  %v3541_v49 = vmul.f32 %v3118_v38, %v1781_v18  ;;  %v2163_v6 = vadd.f32 %v2162_v25, %v2161_v52 }
 0x155   :  { %4796 = vst [vmem:[#allocation48_spill] sm:$0xff] %v3526_v31  ;;  %v3534_v37 = vpop.eup %2440  ;;  %v3544_v27 = vmul.f32 %v4798_v20, %v1781_v18  ;;  %v1858_v47 = vmul.f32 %v3310_v10, %v1782_v53  ;;  %v1865_v9 = vmul.f32 %v3343_v61, %v1783_v57  ;;  %v2164_v44 = vsel %vm234_vm5, %v1857_v45, 0.0  ;;  %v4799_v18 = vld [vmem:[#allocation29_spill] sm:$0xff]  ;;  %v4800_v10 = vld [vmem:[#allocation26_spill] sm:$0xff] }
 0x156   :  { %4797 = vst [vmem:[#allocation49_spill] sm:$0xff] %v3534_v37  ;;  %v3550_v63 = vmul.f32 %v3316_v32, %v1782_v53  ;;  %v3553_v28 = vmul.f32 %v3320_v43, %v1782_v53  ;;  %v1862_v36 = vmul.f32 %v3333_v7, %v1783_v57  ;;  %v2165_v38 = vadd.f32 %v2164_v44, %v2163_v6  ;;  %v4801_v45 = vld [vmem:[#allocation22_spill] sm:$0xff]  ;;  %v4802_v32 = vld [vmem:[#allocation24_spill] sm:$0xff]  ;;  %v4803_v43 = vld [vmem:[#allocation25_spill] sm:$0xff] }
 0x157   :  { %v3557_v15 = vmul.f32 %v3335_v16, %v1783_v57  ;;  %v3560_v51 = vmul.f32 %v4799_v18, %v1783_v57  ;;  %v1869_v52 = vmul.f32 %v4800_v10, %v1784_v0  ;;  %v2166_v61 = vsel %vm234_vm5, %v1861_v50, 0.0  ;;  %v4804_v6 = vld [vmem:[#allocation30_spill] sm:$0xff]  ;;  %v4805_v16 = vld [vmem:[#allocation33_spill] sm:$0xff]  ;;  %v4806_v10 = vld [vmem:[#allocation31_spill] sm:$0xff] }
 0x158   :  { %v1866_v25 = vmul.f32 %v4801_v45, %v1784_v0  ;;  %v3566_v20 = vmul.f32 %v4802_v32, %v1784_v0  ;;  %v3569_v53 = vmul.f32 %v4803_v43, %v1784_v0  ;;  %v2167_v7 = vadd.f32 %v2166_v61, %v2165_v38  ;;  %v4807_v50 = vld [vmem:[#allocation32_spill] sm:$0xff] }
 0x159   :  { %v3572_v44 = vmul.f32 %v4804_v6, %v1785_v4  ;;  %v1873_v41 = vmul.f32 %v4805_v16, %v1785_v4  ;;  %v2168_v57 = vsel %vm234_vm5, %v1865_v9, 0.0  ;;  %v787_v18 = vperm.slane %v757_v56, 0 }
 0x15a   :  { %v3577_v21 = vmul.f32 %v4806_v10, %v1785_v4  ;;  %v3580_v45 = vmul.f32 %v4807_v50, %v1785_v4  ;;  %v1970_v32 = vsel %vm234_vm5, %v1842_v55, 0.0  ;;  %v2169_v19 = vadd.f32 %v2168_v57, %v2167_v7 }
 0x15b   :  { %v1971_v0 = vsel %vm234_vm5, %v1846_v58, 0.0  ;;  %v1973_v38 = vsel %vm234_vm5, %v1850_v33, 0.0  ;;  %v2170_v61 = vsel %vm234_vm5, %v1869_v52, 0.0  ;;  %v887_v43 = vsub.f32 %v3465_v14, %v787_v18 }
 0x15c   :  { %v1975_v9 = vsel %vm234_vm5, %v1854_v46, 0.0  ;;  %v2171_v56 = vadd.f32 %v2170_v61, %v2169_v19  ;;  %v888_v6 = vsub.f32 %v3468_v42, %v787_v18  ;;  %v889_v16 = vsub.f32 %v3479_v40, %v787_v18  ;;  %v533_v46 = vpop.permute.xlu0 %532  ;;  %v4810_v61 = vld [vmem:[#allocation11_spill] sm:$0xff] }
 0x15d   :  { %v2172_v4 = vsel %vm234_vm5, %v1873_v41, 0.0  ;;  %v4808_v55 = vrot.slane %v3476_v11, 2  ;;  %v890_v58 = vsub.f32 %v3492_v29, %v787_v18  ;;  %v1063_v33 = vmul.f32 1.442695, %v887_v43 }
 0x15e   :  { %v1972_v57 = vadd.f32 %v1971_v0, %v1970_v32  ;;  %v3596_v52 = vsel %vm234_vm5, %v1858_v47, 0.0  ;;  %v3598_v14 = vadd.f32 %v2172_v4, %v2171_v56  ;;  %v1065_v19 = vmul.f32 1.442695, %v888_v6 }
 0x15f   :  { %v1350_v7 = vadd.f32 %v4808_v55, %v3476_v11  ;;  %v3601_v42 = vsel %vm234_vm5, %v1862_v36, 0.0  ;;  %v1333_v41 = vadd.f32 %v3503_v24, %v3499_v48  ;;  %2442 = vpow2.f32 %v1063_v33 }
 0x160   :  { %4809 = vst [vmem:[#allocation14_spill] sm:$0xff] %v3598_v14  ;;  %v1067_v40 = vmul.f32 1.442695, %v889_v16  ;;  %v3606_v11 = vsel %vm234_vm5, %v1866_v25, 0.0  ;;  %v2033_v29 = vsel %vm234_vm5, %v3511_v34, 0.0  ;;  %2444 = vpow2.f32 %v1065_v19 }
 0x161   :  { %v756_v47 = vrot.slane %v2937_v1, 3  ;;  %v2034_v18 = vsel %vm234_vm5, %v1847_v2, 0.0  ;;  %v1351_v10 = vrot.slane %v1350_v7, 1  ;;  %v1069_v50 = vmul.f32 1.442695, %v890_v58 }
 0x162   :  { %v659_v36 = vmul.f32 %v533_v46, %v2893_v13  ;;  %v660_v32 = vmul.f32 %v533_v46, %v2889_v62  ;;  %v661_v48 = vmul.f32 %v533_v46, %v2895_v23  ;;  %v662_v24 = vmul.f32 %v533_v46, %v2898_v26 }
 0x163   :  { %v786_v25 = vperm.slane %v756_v47, 0  ;;  %v2036_v0 = vsel %vm234_vm5, %v3530_v59, 0.0  ;;  %v1334_v34 = vrot.slane %v1333_v41, 4  ;;  %2446 = vpow2.f32 %v1067_v40 }
 0x164   :  { %v768_v43 = vrot.slane %v4810_v61, 1  ;;  %v1974_v55 = vadd.f32 %v1973_v38, %v1972_v57  ;;  %v3623_v58 = vsel %vm234_vm5, %v3541_v49, 0.0  ;;  %v1352_v33 = vadd.f32 %v1351_v10, %v1350_v7  ;;  %v3639_v57 = vpop.permute.xlu2 %588 }
 0x165   :  { %v883_v56 = vsub.f32 %v659_v36, %v786_v25  ;;  %v884_v2 = vsub.f32 %v660_v32, %v786_v25  ;;  %v885_v6 = vsub.f32 %v661_v48, %v786_v25  ;;  %v886_v16 = vsub.f32 %v662_v24, %v786_v25  ;;  %v3619_v4 = vpop.eup %2442  ;;  %v549_v25 = vpop.permute.xlu1 %548 }
 0x166   :  { %4811 = vst [vmem:[#allocation29_spill] sm:$0xff] %v3619_v4  ;;  %2448 = vpow2.f32 %v1069_v50  ;;  %v3625_v19 = vpop.eup %2444  ;;  %v2035_v59 = vadd.f32 %v2034_v18, %v2033_v29  ;;  %v3629_v46 = vsel %vm234_vm5, %v3550_v63, 0.0  ;;  %v3633_v36 = vsel %vm234_vm5, %v3516_v17, 0.0 }
 0x167   :  { %4812 = vst [vmem:[#allocation26_spill] sm:$0xff] %v3625_v19  ;;  %v1055_v40 = vmul.f32 1.442695, %v883_v56  ;;  %v1057_v47 = vmul.f32 1.442695, %v884_v2  ;;  %v1509_v38 = vsel %vm234_vm5, %v3507_v22, 0.0  ;;  %v3641_v29 = vadd.f32 %v1334_v34, %v1333_v41 }
 0x168   :  { %v1510_v49 = vsel %vm234_vm5, %v3513_v35, 0.0  ;;  %v1059_v7 = vmul.f32 1.442695, %v885_v6  ;;  %v1061_v63 = vmul.f32 1.442695, %v886_v16  ;;  %v3643_v18 = vperm.slane %v768_v43, 0 }
 0x169   :  { %2450 = vpow2.f32 %v1055_v40  ;;  %v3645_v10 = vpop.eup %2446  ;;  %v1379_v17 = vsel %vm234_vm5, %v3619_v4, 0.0  ;;  %v1380_v50 = vsel %vm234_vm5, %v3625_v19, 0.0  ;;  %v760_v32 = vrot.slane %v2937_v1, 7 }
 0x16a   :  { %4813 = vst [vmem:[#allocation22_spill] sm:$0xff] %v3645_v10  ;;  %2452 = vrcp.f32 %v1352_v33  ;;  %v3652_v48 = vadd.f32 %v1975_v9, %v1974_v55  ;;  %v3656_v41 = vsel %vm234_vm5, %v3524_v3, 0.0  ;;  %v715_v24 = vmul.f32 %v3639_v57, %v2893_v13 }
 0x16b   :  { %2454 = vpow2.f32 %v1057_v47  ;;  %v3662_v43 = vadd.f32 %v2036_v0, %v2035_v59  ;;  %v3664_v56 = vadd.f32 %v1510_v49, %v1509_v38  ;;  %v3668_v2 = vsel %vm234_vm5, %v3526_v31, 0.0 }
 0x16c   :  { %v3660_v34 = vpop.eup %2448  ;;  %2456 = vpow2.f32 %v1059_v7  ;;  %v1336_v9 = vrot.slane %v3641_v29, 2  ;;  %v1381_v3 = vadd.f32 %v1380_v50, %v1379_v17  ;;  %v939_v6 = vsub.f32 %v715_v24, %v3643_v18  ;;  %v545_v24 = vpop.permute.xlu0 %544 }
 0x16d   :  { %4814 = vst [vmem:[#allocation24_spill] sm:$0xff] %v3660_v34  ;;  %2458 = vpow2.f32 %v1061_v63  ;;  %v716_v16 = vmul.f32 %v3639_v57, %v2889_v62  ;;  %v675_v55 = vmul.f32 %v549_v25, %v2893_v13  ;;  %v676_v0 = vmul.f32 %v549_v25, %v2889_v62 }
 0x16e   :  { %v790_v33 = vperm.slane %v760_v32, 0  ;;  %v1382_v40 = vsel %vm234_vm5, %v3645_v10, 0.0  ;;  %v1384_v47 = vsel %vm234_vm5, %v3660_v34, 0.0  ;;  %v677_v38 = vmul.f32 %v549_v25, %v2895_v23 }
 0x16f   :  { %v3676_v59 = vpop.eup %2450  ;;  %v678_v49 = vmul.f32 %v549_v25, %v2898_v26  ;;  %v940_v17 = vsub.f32 %v716_v16, %v3643_v18  ;;  %v1383_v22 = vadd.f32 %v1382_v40, %v1381_v3  ;;  %v1167_v35 = vmul.f32 1.442695, %v939_v6 }
 0x170   :  { %4815 = vst [vmem:[#allocation25_spill] sm:$0xff] %v3676_v59  ;;  %v3684_v7 = vpop.eup %2452  ;;  %v1366_v63 = vsel %vm234_vm5, %v3676_v59, 0.0  ;;  %v899_v50 = vsub.f32 %v675_v55, %v790_v33  ;;  %v900_v32 = vsub.f32 %v676_v0, %v790_v33  ;;  %v901_v10 = vsub.f32 %v677_v38, %v790_v33 }
 0x171   :  { %v3689_v31 = vpop.eup %2454  ;;  %v902_v4 = vsub.f32 %v678_v49, %v790_v33  ;;  %v759_v59 = vrot.slane %v2937_v1, 6  ;;  %v671_v0 = vmul.f32 %v545_v24, %v2893_v13  ;;  %v672_v3 = vmul.f32 %v545_v24, %v2889_v62 }
 0x172   :  { %4816 = vst [vmem:[#allocation30_spill] sm:$0xff] %v3689_v31  ;;  %v3691_v34 = vpop.eup %2456  ;;  %v1367_v25 = vsel %vm234_vm5, %v3689_v31, 0.0  ;;  %v1087_v14 = vmul.f32 1.442695, %v899_v50  ;;  %v1089_v19 = vmul.f32 1.442695, %v900_v32  ;;  %v1385_v38 = vadd.f32 %v1384_v47, %v1383_v22 }
 0x173   :  { %v3696_v8 = vpop.eup %2458  ;;  %v1368_v16 = vadd.f32 %v1367_v25, %v1366_v63  ;;  %v1091_v55 = vmul.f32 1.442695, %v901_v10  ;;  %v1369_v6 = vsel %vm234_vm5, %v3691_v34, 0.0  ;;  %v1093_v33 = vmul.f32 1.442695, %v902_v4 }
 0x174   :  { %2460 = vpow2.f32 %v1087_v14  ;;  %v789_v40 = vperm.slane %v759_v59, 0  ;;  %v673_v50 = vmul.f32 %v545_v24, %v2895_v23  ;;  %v1371_v1 = vsel %vm234_vm5, %v3696_v8, 0.0 }
 0x175   :  { %v1370_v49 = vadd.f32 %v1369_v6, %v1368_v16  ;;  %2462 = vpow2.f32 %v1089_v19  ;;  %v717_v25 = vmul.f32 %v3639_v57, %v2895_v23  ;;  %v1169_v31 = vmul.f32 1.442695, %v940_v17 }
 0x176   :  { %2464 = vpow2.f32 %v1091_v55  ;;  %v895_v10 = vsub.f32 %v671_v0, %v789_v40  ;;  %v896_v63 = vsub.f32 %v672_v3, %v789_v40  ;;  %v674_v14 = vmul.f32 %v545_v24, %v2898_v26 }
 0x177   :  { %v1372_v32 = vadd.f32 %v1371_v1, %v1370_v49  ;;  %v1337_v4 = vadd.f32 %v1336_v9, %v3641_v29  ;;  %v718_v22 = vmul.f32 %v3639_v57, %v2898_v26  ;;  %2466 = vpow2.f32 %v1093_v33 }
 0x178   :  { %v897_v19 = vsub.f32 %v673_v50, %v789_v40  ;;  %v941_v47 = vsub.f32 %v717_v25, %v3643_v18  ;;  %v898_v16 = vsub.f32 %v674_v14, %v789_v40  ;;  %v1079_v55 = vmul.f32 1.442695, %v895_v10  ;;  %v601_v50 = vpop.permute.xlu2 %600 }
 0x179   :  { %v1373_v59 = vrot.slane %v1372_v32, 4  ;;  %v1514_v3 = vsel %vm234_vm5, %v3534_v37, 0.0  ;;  %v1386_v17 = vrot.slane %v1385_v38, 4  ;;  %2468 = vpow2.f32 %v1167_v35 }
 0x17a   :  { %v3712_v0 = vpop.eup %2460  ;;  %v1081_v24 = vmul.f32 1.442695, %v896_v63  ;;  %v942_v57 = vsub.f32 %v718_v22, %v3643_v18  ;;  %2470 = vpow2.f32 %v1169_v31  ;;  %v1513_v40 = vadd.f32 %v3668_v2, %v3664_v56 }
 0x17b   :  { %4817 = vst [vmem:[#allocation33_spill] sm:$0xff] %v3712_v0  ;;  %v3716_v6 = vpop.eup %2462  ;;  %v1374_v29 = vadd.f32 %v1373_v59, %v1372_v32  ;;  %v1418_v9 = vsel %vm234_vm5, %v3712_v0, 0.0  ;;  %2472 = vpow2.f32 %v1079_v55  ;;  %v1083_v35 = vmul.f32 1.442695, %v897_v19 }
 0x17c   :  { %v3721_v33 = vpop.eup %2464  ;;  %v1419_v49 = vsel %vm234_vm5, %v3716_v6, 0.0  ;;  %v1338_v1 = vrot.slane %v1337_v4, 1  ;;  %v1171_v10 = vmul.f32 1.442695, %v941_v47  ;;  %v1085_v32 = vmul.f32 1.442695, %v898_v16 }
 0x17d   :  { %4818 = vst [vmem:[#allocation31_spill] sm:$0xff] %v3721_v33  ;;  %v1420_v63 = vadd.f32 %v1419_v49, %v1418_v9  ;;  %v3727_v18 = vpop.eup %2466  ;;  %v1387_v31 = vadd.f32 %v1386_v17, %v1385_v38  ;;  %v1421_v25 = vsel %vm234_vm5, %v3721_v33, 0.0  ;;  %2474 = vpow2.f32 %v1081_v24 }
 0x17e   :  { %v771_v14 = vrot.slane %v4810_v61, 4  ;;  %v1375_v56 = vrot.slane %v1374_v29, 2  ;;  %v1173_v2 = vmul.f32 1.442695, %v942_v57  ;;  %v727_v59 = vmul.f32 %v601_v50, %v2893_v13 }
 0x17f   :  { %v1422_v22 = vadd.f32 %v1421_v25, %v1420_v63  ;;  %v3733_v19 = vpop.eup %2468  ;;  %v1423_v47 = vsel %vm234_vm5, %v3727_v18, 0.0  ;;  %2476 = vpow2.f32 %v1083_v35  ;;  %v728_v16 = vmul.f32 %v601_v50, %v2889_v62 }
 0x180   :  { %4819 = vst [vmem:[#allocation32_spill] sm:$0xff] %v3733_v19  ;;  %v803_v38 = vperm.slane %v771_v14, 0  ;;  %v3738_v55 = vpop.eup %2470  ;;  %v1339_v17 = vadd.f32 %v1338_v1, %v1337_v4  ;;  %v1515_v24 = vadd.f32 %v1514_v3, %v1513_v40  ;;  %2478 = vpow2.f32 %v1085_v32 }
 0x181   :  { %4820 = vst [vmem:[#allocation11_spill] sm:$0xff] %v3738_v55  ;;  %v1424_v9 = vadd.f32 %v1423_v47, %v1422_v22  ;;  %v3740_v49 = vpop.eup %2472  ;;  %v1388_v57 = vrot.slane %v1387_v31, 2  ;;  %2480 = vpow2.f32 %v1171_v10  ;;  %v1376_v37 = vadd.f32 %v1375_v56, %v1374_v29 }
 0x182   :  { %4821 = vst [vmem:[#allocation50_spill] sm:$0xff] %v3740_v49  ;;  %v951_v63 = vsub.f32 %v727_v59, %v803_v38  ;;  %v952_v25 = vsub.f32 %v728_v16, %v803_v38  ;;  %v1405_v35 = vsel %vm234_vm5, %v3740_v49, 0.0  ;;  %v729_v0 = vmul.f32 %v601_v50, %v2895_v23 }
 0x183   :  { %v1425_v33 = vrot.slane %v1424_v9, 4  ;;  %v3745_v14 = vpop.eup %2474  ;;  %2482 = vpow2.f32 %v1173_v2  ;;  %v1548_v4 = vsel %vm234_vm5, %v3733_v19, 0.0  ;;  %v1549_v1 = vsel %vm234_vm5, %v3738_v55, 0.0  ;;  %v561_v55 = vpop.permute.xlu1 %560 }
 0x184   :  { %v1191_v3 = vmul.f32 1.442695, %v951_v63  ;;  %v1193_v40 = vmul.f32 1.442695, %v952_v25  ;;  %v1406_v29 = vsel %vm234_vm5, %v3745_v14, 0.0  ;;  %v953_v32 = vsub.f32 %v729_v0, %v803_v38 }
 0x185   :  { %v1426_v10 = vadd.f32 %v1425_v33, %v1424_v9  ;;  %v3753_v56 = vpop.eup %2476  ;;  %v1389_v22 = vadd.f32 %v1388_v57, %v1387_v31  ;;  %v1407_v59 = vadd.f32 %v1406_v29, %v1405_v35  ;;  %v762_v2 = vrot.slane %v3080_v30, 2 }
 0x186   :  { %4822 = vst [vmem:[#allocation51_spill] sm:$0xff] %v3753_v56  ;;  %2484 = vpow2.f32 %v1191_v3  ;;  %v3756_v47 = vpop.eup %2478  ;;  %v1377_v16 = vrot.slane %v1376_v37, 1  ;;  %v1408_v63 = vsel %vm234_vm5, %v3753_v56, 0.0  ;;  %v730_v25 = vmul.f32 %v601_v50, %v2898_v26 }
 0x187   :  { %2486 = vpow2.f32 %v1193_v40  ;;  %v3761_v33 = vpop.eup %2480  ;;  %v2098_v0 = vadd.f32 %v3656_v41, %v3633_v36  ;;  %v1550_v31 = vadd.f32 %v1549_v1, %v1548_v4  ;;  %v1409_v9 = vadd.f32 %v1408_v63, %v1407_v59 }
 0x188   :  { %4823 = vst [vmem:[#allocation52_spill] sm:$0xff] %v3761_v33  ;;  %2488 = vrcp.f32 %v1339_v17  ;;  %v1427_v57 = vrot.slane %v1426_v10, 2  ;;  %v1410_v35 = vsel %vm234_vm5, %v3756_v47, 0.0  ;;  %v954_v3 = vsub.f32 %v730_v25, %v803_v38 }
 0x189   :  { %v1195_v29 = vmul.f32 1.442695, %v953_v32  ;;  %v3767_v19 = vpop.eup %2482  ;;  %v1516_v56 = vrot.slane %v1515_v24, 4  ;;  %v1390_v50 = vrot.slane %v1389_v22, 1  ;;  %v1411_v40 = vadd.f32 %v1410_v35, %v1409_v9 }
 0x18a   :  { %4824 = vst [vmem:[#allocation53_spill] sm:$0xff] %v3767_v19  ;;  %v3769_v49 = vperm.slane %v762_v2, 0  ;;  %v2099_v36 = vsel %vm234_vm5, %v3537_v39, 0.0  ;;  %v2101_v41 = vsel %vm234_vm5, %v3544_v27, 0.0  ;;  %v1378_v17 = vadd.f32 %v1377_v16, %v1376_v37 }
 0x18b   :  { %v1551_v4 = vsel %vm234_vm5, %v3761_v33, 0.0  ;;  %v2100_v1 = vadd.f32 %v2099_v36, %v2098_v0  ;;  %v1412_v59 = vrot.slane %v1411_v40, 4  ;;  %v687_v63 = vmul.f32 %v561_v55, %v2893_v13 }
 0x18c   :  { %v3777_v38 = vpop.eup %2484  ;;  %v1552_v32 = vadd.f32 %v1551_v4, %v1550_v31  ;;  %v1428_v2 = vadd.f32 %v1427_v57, %v1426_v10  ;;  %2490 = vpow2.f32 %v1195_v29  ;;  %v1197_v9 = vmul.f32 1.442695, %v954_v3 }
 0x18d   :  { %4825 = vst [vmem:[#allocation54_spill] sm:$0xff] %v3777_v38  ;;  %v3780_v25 = vpop.eup %2486  ;;  %v688_v39 = vmul.f32 %v561_v55, %v2889_v62  ;;  %v1517_v27 = vadd.f32 %v1516_v56, %v1515_v24  ;;  %v1391_v37 = vadd.f32 %v1390_v50, %v1389_v22  ;;  %v1413_v16 = vadd.f32 %v1412_v59, %v1411_v40 }
 0x18e   :  { %4826 = vst [vmem:[#allocation55_spill] sm:$0xff] %v3780_v25  ;;  %v2489_v35 = vpop.eup %2488  ;;  %v911_v33 = vsub.f32 %v687_v63, %v3769_v49  ;;  %2492 = vrcp.f32 %v1378_v17  ;;  %v1553_v31 = vsel %vm234_vm5, %v3767_v19, 0.0  ;;  %v1587_v3 = vsel %vm234_vm5, %v3777_v38, 0.0  ;;  %v4843_v38 = vld [vmem:[#allocation14_spill] sm:$0xff] }
 0x18f   :  { %v1717_v0 = vsel %vm1703_vm15, %v3684_v7, %v2489_v35  ;;  %v912_v36 = vsub.f32 %v688_v39, %v3769_v49  ;;  %v1554_v10 = vadd.f32 %v1553_v31, %v1552_v32  ;;  %v1414_v57 = vrot.slane %v1413_v16, 2 }
 0x190   :  { %v1588_v24 = vsel %vm234_vm5, %v3780_v25, 0.0  ;;  %v1978_v56 = vadd.f32 %v3596_v52, %v3652_v48  ;;  %v2039_v7 = vadd.f32 %v3623_v58, %v3662_v43  ;;  %v1429_v22 = vrot.slane %v1428_v2, 1 }
 0x191   :  { %2494 = vpow2.f32 %v1197_v9  ;;  %v2102_v29 = vadd.f32 %v2101_v41, %v2100_v1  ;;  %v1415_v50 = vadd.f32 %v1414_v57, %v1413_v16  ;;  %v1111_v40 = vmul.f32 1.442695, %v911_v33 }
 0x192   :  { %2496 = vrcp.f32 %v1391_v37  ;;  %v3797_v17 = vpop.eup %2490  ;;  %v1718_v4 = vsel %vm1705_vm0, %v3457_v60, %v1717_v0  ;;  %v1589_v32 = vadd.f32 %v1588_v24, %v1587_v3  ;;  %v689_v59 = vmul.f32 %v561_v55, %v2895_v23 }
 0x193   :  { %4827 = vst [vmem:[#allocation56_spill] sm:$0xff] %v3797_v17  ;;  %v1113_v63 = vmul.f32 1.442695, %v912_v36  ;;  %v2103_v52 = vsel %vm234_vm5, %v3553_v28, 0.0  ;;  %v1518_v48 = vrot.slane %v1517_v27, 2  ;;  %v1555_v58 = vrot.slane %v1554_v10, 4 }
 0x194   :  { %v1416_v43 = vrot.slane %v1415_v50, 1  ;;  %v2493_v9 = vpop.eup %2492  ;;  %v1980_v41 = vadd.f32 %v3601_v42, %v1978_v56  ;;  %v2041_v33 = vadd.f32 %v3629_v46, %v2039_v7  ;;  %v1430_v1 = vadd.f32 %v1429_v22, %v1428_v2 }
 0x195   :  { %v913_v39 = vsub.f32 %v689_v59, %v3769_v49  ;;  %v1719_v60 = vsel %vm1707_vm1, %v2493_v9, %v1718_v4  ;;  %v1590_v37 = vsel %vm234_vm5, %v3797_v17, 0.0  ;;  %2498 = vpow2.f32 %v1111_v40 }
 0x196   :  { %v1417_v35 = vadd.f32 %v1416_v43, %v1415_v50  ;;  %v2104_v28 = vadd.f32 %v2103_v52, %v2102_v29  ;;  %v1591_v0 = vadd.f32 %v1590_v37, %v1589_v32  ;;  %v690_v31 = vmul.f32 %v561_v55, %v2898_v26  ;;  %v557_v52 = vpop.permute.xlu0 %556 }
 0x197   :  { %v3810_v16 = vpop.eup %2494  ;;  %2500 = vpow2.f32 %v1113_v63  ;;  %v2042_v46 = vsel %vm234_vm5, %v3557_v15, 0.0  ;;  %v1519_v2 = vadd.f32 %v1518_v48, %v1517_v27  ;;  %v1556_v36 = vadd.f32 %v1555_v58, %v1554_v10 }
 0x198   :  { %4828 = vst [vmem:[#allocation57_spill] sm:$0xff] %v3810_v16  ;;  %v2497_v42 = vpop.eup %2496  ;;  %2502 = vrcp.f32 %v1417_v35  ;;  %v2105_v57 = vsel %vm234_vm5, %v3560_v51, 0.0  ;;  %v914_v24 = vsub.f32 %v690_v31, %v3769_v49  ;;  %v2043_v56 = vadd.f32 %v2042_v46, %v2041_v33 }
 0x199   :  { %v1720_v3 = vsel %vm1709_vm2, %v2497_v42, %v1719_v60  ;;  %2504 = vrcp.f32 %v1430_v1  ;;  %v1592_v55 = vsel %vm234_vm5, %v3810_v16, 0.0  ;;  %v1115_v7 = vmul.f32 1.442695, %v913_v39 }
 0x19a   :  { %v761_v22 = vrot.slane %v3080_v30, 1  ;;  %v1982_v15 = vadd.f32 %v3606_v11, %v1980_v41  ;;  %v1983_v27 = vsel %vm234_vm5, %v3572_v44, 0.0  ;;  %v2106_v10 = vadd.f32 %v2105_v57, %v2104_v28  ;;  %v613_v28 = vpop.permute.xlu2 %612 }
 0x19b   :  { %v1593_v29 = vadd.f32 %v1592_v55, %v1591_v0  ;;  %v3825_v51 = vpop.eup %2498  ;;  %v2044_v50 = vsel %vm234_vm5, %v3566_v20, 0.0  ;;  %v1520_v49 = vrot.slane %v1519_v2, 1  ;;  %v1557_v40 = vrot.slane %v1556_v36, 2 }
 0x19c   :  { %4829 = vst [vmem:[#allocation58_spill] sm:$0xff] %v3825_v51  ;;  %v1721_v4 = vsel %vm1711_vm3, %v3474_v12, %v1720_v3  ;;  %v2046_v11 = vsel %vm234_vm5, %v3577_v21, 0.0  ;;  %v2107_v44 = vsel %vm234_vm5, %v3569_v53, 0.0  ;;  %v2109_v59 = vsel %vm234_vm5, %v3580_v45, 0.0 }
 0x19d   :  { %v3831_v32 = vpop.eup %2500  ;;  %v1117_v63 = vmul.f32 1.442695, %v914_v24  ;;  %v2045_v20 = vadd.f32 %v2044_v50, %v2043_v56  ;;  %2506 = vpow2.f32 %v1115_v7  ;;  %v792_v58 = vperm.slane %v761_v22, 0 }
 0x19e   :  { %v2503_v48 = vpop.eup %2502  ;;  %v774_v43 = vrot.slane %v4810_v61, 7  ;;  %v3840_v9 = vadd.f32 %v1983_v27, %v1982_v15  ;;  %v2108_v41 = vadd.f32 %v2107_v44, %v2106_v10  ;;  %v1594_v33 = vrot.slane %v1593_v29, 4 }
 0x19f   :  { %v2505_v12 = vpop.eup %2504  ;;  %v1722_v21 = vsel %vm1713_vm4, %v2503_v48, %v1721_v4  ;;  %v1521_v1 = vadd.f32 %v1520_v49, %v1519_v2  ;;  %v1558_v53 = vadd.f32 %v1557_v40, %v1556_v36  ;;  %v683_v45 = vmul.f32 %v557_v52, %v2893_v13  ;;  %v4830_v2 = vld [vmem:[#allocation6_spill] sm:$0xff] }
 0x1a0   :  { %v1723_v39 = vsel %vm1715_vm6, %v2505_v12, %v1722_v21  ;;  %2508 = vpow2.f32 %v1117_v63  ;;  %v1457_v60 = vsel %vm234_vm5, %v3825_v51, 0.0  ;;  %v1458_v35 = vsel %vm234_vm5, %v3831_v32, 0.0 }
 0x1a1   :  { %v684_v37 = vmul.f32 %v557_v52, %v2889_v62  ;;  %v3850_v0 = vadd.f32 %v2046_v11, %v2045_v20  ;;  %v685_v31 = vmul.f32 %v557_v52, %v2895_v23  ;;  %v907_v42 = vsub.f32 %v683_v45, %v792_v58 }
 0x1a2   :  { %v806_v46 = vperm.slane %v774_v43, 0  ;;  %v3854_v36 = vmul.f32 %v4830_v2, %v1723_v39  ;;  %v1595_v57 = vadd.f32 %v1594_v33, %v1593_v29  ;;  %v686_v3 = vmul.f32 %v557_v52, %v2898_v26 }
 0x1a3   :  { %v908_v24 = vsub.f32 %v684_v37, %v792_v58  ;;  %v3857_v56 = vpop.eup %2506  ;;  %v3859_v55 = vadd.f32 %v2109_v59, %v2108_v41  ;;  %v1459_v7 = vadd.f32 %v1458_v35, %v1457_v60  ;;  %v909_v22 = vsub.f32 %v685_v31, %v792_v58 }
 0x1a4   :  { %4831 = vst [vmem:[#allocation6_spill] sm:$0xff] %v3857_v56  ;;  %v739_v15 = vmul.f32 %v613_v28, %v2893_v13  ;;  %2510 = vrcp.f32 %v1521_v1  ;;  %v1559_v27 = vrot.slane %v1558_v53, 1  ;;  %v910_v10 = vsub.f32 %v686_v3, %v792_v58 }
 0x1a5   :  { %v740_v50 = vmul.f32 %v613_v28, %v2889_v62  ;;  %v1103_v49 = vmul.f32 1.442695, %v907_v42  ;;  %v741_v40 = vmul.f32 %v613_v28, %v2895_v23  ;;  %v742_v29 = vmul.f32 %v613_v28, %v2898_v26  ;;  %v573_v28 = vpop.permute.xlu1 %572 }
 0x1a6   :  { %v963_v4 = vsub.f32 %v739_v15, %v806_v46  ;;  %v3865_v11 = vpop.eup %2508  ;;  %v1757_v44 = vrot.slane %v3854_v36, 1  ;;  %v1596_v59 = vrot.slane %v1595_v57, 2  ;;  %v1460_v63 = vsel %vm234_vm5, %v3857_v56, 0.0 }
 0x1a7   :  { %v1105_v52 = vmul.f32 1.442695, %v908_v24  ;;  %v1461_v48 = vadd.f32 %v1460_v63, %v1459_v7  ;;  %v1107_v20 = vmul.f32 1.442695, %v909_v22  ;;  %v964_v58 = vsub.f32 %v740_v50, %v806_v46 }
 0x1a8   :  { %v965_v43 = vsub.f32 %v741_v40, %v806_v46  ;;  %v3870_v12 = vadd.f32 %v1559_v27, %v1558_v53  ;;  %v1758_v41 = vrot.slane %v3854_v36, 2  ;;  %v3874_v21 = vperm.slane %v3854_v36, 0 }
 0x1a9   :  { %v1109_v33 = vmul.f32 1.442695, %v910_v10  ;;  %v1462_v1 = vsel %vm234_vm5, %v3865_v11, 0.0  ;;  %2512 = vpow2.f32 %v1103_v49  ;;  %v966_v39 = vsub.f32 %v742_v29, %v806_v46 }
 0x1aa   :  { %v1215_v45 = vmul.f32 1.442695, %v963_v4  ;;  %v3878_v60 = vpop.eup %2510  ;;  %v1759_v35 = vrot.slane %v3854_v36, 3  ;;  %v3881_v37 = vperm.slane %v1757_v44, 0  ;;  %v3883_v53 = vadd.f32 %v1596_v59, %v1595_v57 }
 0x1ab   :  { %2514 = vpow2.f32 %v1105_v52  ;;  %v1463_v31 = vadd.f32 %v1462_v1, %v1461_v48  ;;  %v1217_v42 = vmul.f32 1.442695, %v964_v58  ;;  %v1219_v2 = vmul.f32 1.442695, %v965_v43 }
 0x1ac   :  { %2516 = vpow2.f32 %v1107_v20  ;;  %v1760_v3 = vrot.slane %v3854_v36, 4  ;;  %v3886_v24 = vperm.slane %v1758_v41, 0  ;;  %v1875_v46 = vmul.f32 %v3454_v5, %v3874_v21  ;;  %v3904_v5 = vpop.permute.xlu0 %568 }
 0x1ad   :  { %2518 = vpow2.f32 %v1109_v33  ;;  %v1221_v7 = vmul.f32 1.442695, %v966_v39  ;;  %v3891_v22 = vmul.f32 %v573_v28, %v2893_v13  ;;  %v3894_v57 = vmul.f32 %v573_v28, %v2889_v62  ;;  %v4835_v39 = vld [vmem:[#allocation43_spill] sm:$0xff] }
 0x1ae   :  { %2520 = vpow2.f32 %v1215_v45  ;;  %v1761_v15 = vrot.slane %v3854_v36, 5  ;;  %v3897_v27 = vperm.slane %v1759_v35, 0  ;;  %v1879_v10 = vmul.f32 %v3418_v54, %v3881_v37  ;;  %v4833_v54 = vld [vmem:[#allocation13_spill] sm:$0xff]  ;;  %v4836_v35 = vld [vmem:[#allocation30_spill] sm:$0xff] }
 0x1af   :  { %v3902_v50 = vmul.f32 %v573_v28, %v2895_v23  ;;  %v3906_v49 = vpop.eup %2512  ;;  %v1464_v40 = vrot.slane %v1463_v31, 4  ;;  %2522 = vpow2.f32 %v1217_v42  ;;  %v3909_v29 = vmul.f32 %v573_v28, %v2898_v26 }
 0x1b0   :  { %4832 = vst [vmem:[#allocation59_spill] sm:$0xff] %v3906_v49  ;;  %v765_v4 = vrot.slane %v3080_v30, 5  ;;  %v1762_v59 = vrot.slane %v3854_v36, 6  ;;  %v3915_v63 = vperm.slane %v1760_v3, 0  ;;  %v1883_v52 = vmul.f32 %v4833_v54, %v3886_v24  ;;  %v4838_v54 = vld [vmem:[#allocation40_spill] sm:$0xff] }
 0x1b1   :  { %v3912_v44 = vpop.eup %2514  ;;  %v2048_v48 = vsel %vm234_vm5, %v1875_v46, 0.0  ;;  %v1763_v58 = vrot.slane %v3854_v36, 7  ;;  %2524 = vpow2.f32 %v1219_v2  ;;  %v3926_v41 = vmul.f32 %v3904_v5, %v2893_v13 }
 0x1b2   :  { %v3920_v20 = vpop.eup %2516  ;;  %v2049_v43 = vadd.f32 %v2048_v48, %v3850_v0  ;;  %v3930_v1 = vperm.slane %v1761_v15, 0  ;;  %v1877_v45 = vmul.f32 %v4835_v39, %v3874_v21  ;;  %v1887_v28 = vmul.f32 %v4836_v35, %v3897_v27  ;;  %v4839_v39 = vld [vmem:[#allocation26_spill] sm:$0xff] }
 0x1b3   :  { %4834 = vst [vmem:[#allocation13_spill] sm:$0xff] %v3920_v20  ;;  %v3928_v33 = vpop.eup %2518  ;;  %v2050_v42 = vsel %vm234_vm5, %v1879_v10, 0.0  ;;  %v3939_v2 = vadd.f32 %v1464_v40, %v1463_v31  ;;  %v1444_v3 = vsel %vm234_vm5, %v3906_v49, 0.0  ;;  %v1445_v46 = vsel %vm234_vm5, %v3912_v44, 0.0 }
 0x1b4   :  { %v3937_v36 = vpop.eup %2520  ;;  %v2051_v0 = vadd.f32 %v2050_v42, %v2049_v43  ;;  %v3945_v15 = vperm.slane %v1762_v59, 0  ;;  %v1881_v48 = vmul.f32 %v4838_v54, %v3881_v37  ;;  %v1891_v35 = vmul.f32 %v4839_v39, %v3915_v63  ;;  %v4841_v42 = vld [vmem:[#allocation18_spill] sm:$0xff]  ;;  %v4842_v59 = vld [vmem:[#allocation17_spill] sm:$0xff] }
 0x1b5   :  { %4837 = vst [vmem:[#allocation43_spill] sm:$0xff] %v3937_v36  ;;  %v2052_v10 = vsel %vm234_vm5, %v1883_v52, 0.0  ;;  %v3952_v16 = vpop.eup %2522  ;;  %v3954_v31 = vperm.slane %v1763_v58, 0  ;;  %2526 = vpow2.f32 %v1221_v7  ;;  %v796_v43 = vperm.slane %v765_v4, 0 }
 0x1b6   :  { %4840 = vst [vmem:[#allocation30_spill] sm:$0xff] %v3952_v16  ;;  %v2053_v40 = vadd.f32 %v2052_v10, %v2051_v0  ;;  %v1885_v19 = vmul.f32 %v4841_v42, %v3886_v24  ;;  %v1895_v25 = vmul.f32 %v4842_v59, %v3930_v1  ;;  %v2054_v54 = vsel %vm234_vm5, %v1887_v28, 0.0  ;;  %v4847_v59 = vld [vmem:[#allocation42_spill] sm:$0xff] }
 0x1b7   :  { %v2174_v17 = vsel %vm234_vm5, %v1877_v45, 0.0  ;;  %v3962_v39 = vpop.eup %2524  ;;  %v1446_v0 = vadd.f32 %v1445_v46, %v1444_v3  ;;  %v1889_v7 = vmul.f32 %v3696_v8, %v3897_v27  ;;  %v1899_v4 = vmul.f32 %v3745_v14, %v3945_v15 }
 0x1b8   :  { %v2055_v52 = vadd.f32 %v2054_v54, %v2053_v40  ;;  %v2175_v56 = vadd.f32 %v2174_v17, %v4843_v38  ;;  %v2056_v10 = vsel %vm234_vm5, %v1891_v35, 0.0  ;;  %v2176_v28 = vsel %vm234_vm5, %v1881_v48, 0.0  ;;  %v4844_v17 = vld [vmem:[#allocation24_spill] sm:$0xff] }
 0x1b9   :  { %v1447_v40 = vsel %vm234_vm5, %v3920_v20, 0.0  ;;  %v3976_v38 = vmul.f32 %v3904_v5, %v2889_v62  ;;  %v1893_v3 = vmul.f32 %v4844_v17, %v3915_v63  ;;  %v1903_v8 = vmul.f32 %v3716_v6, %v3954_v31  ;;  %v4850_v20 = vld [vmem:[#allocation39_spill] sm:$0xff] }
 0x1ba   :  { %v2057_v42 = vadd.f32 %v2056_v10, %v2055_v52  ;;  %v2177_v45 = vadd.f32 %v2176_v28, %v2175_v56  ;;  %v2058_v14 = vsel %vm234_vm5, %v1895_v25, 0.0  ;;  %v2178_v46 = vsel %vm234_vm5, %v1885_v19, 0.0  ;;  %v4846_v56 = vld [vmem:[#allocation41_spill] sm:$0xff]  ;;  %v4848_v28 = vld [vmem:[#allocation20_spill] sm:$0xff]  ;;  %v4849_v19 = vld [vmem:[#allocation38_spill] sm:$0xff] }
 0x1bb   :  { %v3984_v48 = vpop.eup %2526  ;;  %v1874_v35 = vmul.f32 %v4846_v56, %v3874_v21  ;;  %v3990_v54 = vmul.f32 %v4847_v59, %v3874_v21  ;;  %v1897_v17 = vmul.f32 %v4848_v28, %v3930_v1  ;;  %v2060_v6 = vsel %vm234_vm5, %v1899_v4, 0.0 }
 0x1bc   :  { %4845 = vst [vmem:[#allocation40_spill] sm:$0xff] %v3984_v48  ;;  %v2059_v52 = vadd.f32 %v2058_v14, %v2057_v42  ;;  %v2179_v10 = vadd.f32 %v2178_v46, %v2177_v45  ;;  %v2180_v25 = vsel %vm234_vm5, %v1889_v7, 0.0  ;;  %v1448_v58 = vadd.f32 %v1447_v40, %v1446_v0  ;;  %v4851_v42 = vld [vmem:[#allocation12_spill] sm:$0xff] }
 0x1bd   :  { %v1878_v51 = vmul.f32 %v4849_v19, %v3881_v37  ;;  %v4000_v56 = vmul.f32 %v4850_v20, %v3881_v37  ;;  %v1882_v45 = vmul.f32 %v4851_v42, %v3886_v24  ;;  %v1901_v14 = vmul.f32 %v3756_v47, %v3945_v15 }
 0x1be   :  { %v2061_v49 = vadd.f32 %v2060_v6, %v2059_v52  ;;  %v2181_v21 = vadd.f32 %v2180_v25, %v2179_v10  ;;  %v2062_v4 = vsel %vm234_vm5, %v1903_v8, 0.0  ;;  %v2182_v7 = vsel %vm234_vm5, %v1893_v3, 0.0  ;;  %v4852_v8 = vld [vmem:[#allocation15_spill] sm:$0xff]  ;;  %v4853_v3 = vld [vmem:[#allocation25_spill] sm:$0xff] }
 0x1bf   :  { %v1905_v0 = vmul.f32 %v3727_v18, %v3954_v31  ;;  %v1449_v37 = vsel %vm234_vm5, %v3928_v33, 0.0  ;;  %v2184_v20 = vsel %vm234_vm5, %v1897_v17, 0.0  ;;  %v923_v52 = vsub.f32 %v3891_v22, %v796_v43 }
 0x1c0   :  { %v4010_v40 = vadd.f32 %v2062_v4, %v2061_v49  ;;  %v2183_v46 = vadd.f32 %v2182_v7, %v2181_v21  ;;  %v1450_v59 = vadd.f32 %v1449_v37, %v1448_v58  ;;  %v924_v47 = vsub.f32 %v3894_v57, %v796_v43  ;;  %v4854_v57 = vld [vmem:[#allocation29_spill] sm:$0xff]  ;;  %v585_v7 = vpop.permute.xlu1 %584  ;;  %v4858_v37 = vld [vmem:[#allocation19_spill] sm:$0xff] }
 0x1c1   :  { %v4019_v10 = vmul.f32 %v4852_v8, %v3886_v24  ;;  %v1886_v18 = vmul.f32 %v4853_v3, %v3897_v27  ;;  %v925_v28 = vsub.f32 %v3902_v50, %v796_v43  ;;  %v2186_v6 = vsel %vm234_vm5, %v1901_v14, 0.0  ;;  %v4855_v14 = vld [vmem:[#allocation22_spill] sm:$0xff] }
 0x1c2   :  { %v2185_v49 = vadd.f32 %v2184_v20, %v2183_v46  ;;  %v926_v25 = vsub.f32 %v3909_v29, %v796_v43  ;;  %v1135_v17 = vmul.f32 1.442695, %v923_v52  ;;  %v1137_v58 = vmul.f32 1.442695, %v924_v47  ;;  %v4859_v20 = vld [vmem:[#allocation50_spill] sm:$0xff] }
 0x1c3   :  { %v4028_v22 = vmul.f32 %v3691_v34, %v3897_v27  ;;  %v1890_v24 = vmul.f32 %v4854_v57, %v3915_v63  ;;  %v1139_v21 = vmul.f32 1.442695, %v925_v28  ;;  %v2188_v42 = vsel %vm234_vm5, %v1905_v0, 0.0  ;;  %v4857_v27 = vld [vmem:[#allocation16_spill] sm:$0xff] }
 0x1c4   :  { %v2187_v19 = vadd.f32 %v2186_v6, %v2185_v49  ;;  %v1451_v4 = vrot.slane %v1450_v59, 4  ;;  %2528 = vpow2.f32 %v1135_v17  ;;  %v1141_v50 = vmul.f32 1.442695, %v926_v25 }
 0x1c5   :  { %v4035_v29 = vmul.f32 %v4855_v14, %v3915_v63  ;;  %2530 = vpow2.f32 %v1137_v58  ;;  %v764_v34 = vrot.slane %v3080_v30, 4  ;;  %v4042_v46 = vmul.f32 %v4857_v27, %v3930_v1 }
 0x1c6   :  { %v4037_v43 = vadd.f32 %v2188_v42, %v2187_v19  ;;  %v4046_v0 = vmul.f32 %v4858_v37, %v3930_v1  ;;  %v4050_v52 = vmul.f32 %v4859_v20, %v3945_v15  ;;  %2532 = vpow2.f32 %v1139_v21 }
 0x1c7   :  { %v1985_v63 = vsel %vm234_vm5, %v1874_v35, 0.0  ;;  %v697_v47 = vmul.f32 %v3904_v5, %v2895_v23  ;;  %v795_v8 = vperm.slane %v764_v34, 0  ;;  %v711_v3 = vmul.f32 %v585_v7, %v2893_v13 }
 0x1c8   :  { %4856 = vst [vmem:[#allocation26_spill] sm:$0xff] %v4037_v43  ;;  %v1452_v49 = vadd.f32 %v1451_v4, %v1450_v59  ;;  %2534 = vpow2.f32 %v1141_v50  ;;  %v698_v28 = vmul.f32 %v3904_v5, %v2898_v26  ;;  %v712_v1 = vmul.f32 %v585_v7, %v2889_v62 }
 0x1c9   :  { %v919_v6 = vsub.f32 %v3926_v41, %v795_v8  ;;  %v920_v25 = vsub.f32 %v3976_v38, %v795_v8  ;;  %v921_v17 = vsub.f32 %v697_v47, %v795_v8  ;;  %v4062_v35 = vperm.slane %v4810_v61, 0 }
 0x1ca   :  { %v4064_v58 = vpop.eup %2528  ;;  %v1986_v57 = vadd.f32 %v1985_v63, %v3840_v9  ;;  %v1987_v59 = vsel %vm234_vm5, %v1878_v51, 0.0  ;;  %v4069_v19 = vsel %vm234_vm5, %v1882_v45, 0.0  ;;  %v922_v5 = vsub.f32 %v698_v28, %v795_v8 }
 0x1cb   :  { %4860 = vst [vmem:[#allocation18_spill] sm:$0xff] %v4064_v58  ;;  %v4071_v21 = vpop.eup %2530  ;;  %v1496_v41 = vsel %vm234_vm5, %v4064_v58, 0.0  ;;  %v1127_v38 = vmul.f32 1.442695, %v919_v6  ;;  %v1129_v42 = vmul.f32 1.442695, %v920_v25  ;;  %v935_v4 = vsub.f32 %v711_v3, %v4062_v35  ;;  %v581_v3 = vpop.permute.xlu0 %580 }
 0x1cc   :  { %v4076_v50 = vpop.eup %2532  ;;  %v1453_v14 = vrot.slane %v1452_v49, 2  ;;  %v1497_v9 = vsel %vm234_vm5, %v4071_v21, 0.0  ;;  %v1131_v51 = vmul.f32 1.442695, %v921_v17  ;;  %v936_v45 = vsub.f32 %v712_v1, %v4062_v35 }
 0x1cd   :  { %4861 = vst [vmem:[#allocation17_spill] sm:$0xff] %v4076_v50  ;;  %v1498_v34 = vadd.f32 %v1497_v9, %v1496_v41  ;;  %2536 = vpow2.f32 %v1127_v38  ;;  %v1133_v27 = vmul.f32 1.442695, %v922_v5  ;;  %v713_v37 = vmul.f32 %v585_v7, %v2895_v23 }
 0x1ce   :  { %v4082_v20 = vpop.eup %2534  ;;  %v4085_v63 = vsel %vm234_vm5, %v1886_v18, 0.0  ;;  %v4088_v47 = vsel %vm234_vm5, %v1890_v24, 0.0  ;;  %v1499_v8 = vsel %vm234_vm5, %v4076_v50, 0.0  ;;  %2538 = vpow2.f32 %v1129_v42  ;;  %v4107_v42 = vpop.permute.xlu1 %596 }
 0x1cf   :  { %v4092_v28 = vadd.f32 %v1987_v59, %v1986_v57  ;;  %v2111_v1 = vsel %vm234_vm5, %v3990_v54, 0.0  ;;  %v1500_v6 = vadd.f32 %v1499_v8, %v1498_v34  ;;  %v1159_v25 = vmul.f32 1.442695, %v935_v4 }
 0x1d0   :  { %v4097_v17 = vadd.f32 %v2111_v1, %v3859_v55  ;;  %v1454_v18 = vadd.f32 %v1453_v14, %v1452_v49  ;;  %2540 = vpow2.f32 %v1131_v51  ;;  %v1161_v5 = vmul.f32 1.442695, %v936_v45 }
 0x1d1   :  { %2542 = vpow2.f32 %v1133_v27  ;;  %v714_v24 = vmul.f32 %v585_v7, %v2898_v26  ;;  %v937_v41 = vsub.f32 %v713_v37, %v4062_v35  ;;  %v707_v38 = vmul.f32 %v581_v3, %v2893_v13 }
 0x1d2   :  { %v1501_v57 = vsel %vm234_vm5, %v4082_v20, 0.0  ;;  %v708_v54 = vmul.f32 %v581_v3, %v2889_v62  ;;  %v709_v59 = vmul.f32 %v581_v3, %v2895_v23  ;;  %v767_v55 = vrot.slane %v3080_v30, 7 }
 0x1d3   :  { %v4109_v49 = vpop.eup %2536  ;;  %v4863_v7 = vrot.slane %v3939_v2, 2  ;;  %v1502_v14 = vadd.f32 %v1501_v57, %v1500_v6  ;;  %2544 = vpow2.f32 %v1159_v25  ;;  %v710_v9 = vmul.f32 %v581_v3, %v2898_v26 }
 0x1d4   :  { %4862 = vst [vmem:[#allocation14_spill] sm:$0xff] %v4109_v49  ;;  %v4115_v51 = vpop.eup %2538  ;;  %v1455_v45 = vrot.slane %v1454_v18, 1  ;;  %v1483_v34 = vsel %vm234_vm5, %v4109_v49, 0.0  ;;  %2546 = vpow2.f32 %v1161_v5  ;;  %v798_v30 = vperm.slane %v767_v55, 0 }
 0x1d5   :  { %v1467_v4 = vadd.f32 %v4863_v7, %v3939_v2  ;;  %v1484_v27 = vsel %vm234_vm5, %v4115_v51, 0.0  ;;  %v938_v37 = vsub.f32 %v714_v24, %v4062_v35  ;;  %v1163_v8 = vmul.f32 1.442695, %v937_v41 }
 0x1d6   :  { %v723_v2 = vmul.f32 %v4107_v42, %v2893_v13  ;;  %v4124_v1 = vpop.eup %2540  ;;  %v1485_v3 = vadd.f32 %v1484_v27, %v1483_v34  ;;  %v931_v6 = vsub.f32 %v707_v38, %v798_v30  ;;  %v932_v25 = vsub.f32 %v708_v54, %v798_v30 }
 0x1d7   :  { %4864 = vst [vmem:[#allocation24_spill] sm:$0xff] %v4124_v1  ;;  %v933_v57 = vsub.f32 %v709_v59, %v798_v30  ;;  %v4126_v7 = vpop.eup %2542  ;;  %v1503_v50 = vrot.slane %v1502_v14, 4  ;;  %v1486_v5 = vsel %vm234_vm5, %v4124_v1, 0.0  ;;  %v934_v55 = vsub.f32 %v710_v9, %v798_v30 }
 0x1d8   :  { %v770_v58 = vrot.slane %v4810_v61, 3  ;;  %v1487_v35 = vadd.f32 %v1486_v5, %v1485_v3  ;;  %v1151_v24 = vmul.f32 1.442695, %v931_v6  ;;  %v1153_v41 = vmul.f32 1.442695, %v932_v25 }
 0x1d9   :  { %v724_v49 = vmul.f32 %v4107_v42, %v2889_v62  ;;  %v4133_v43 = vpop.eup %2544  ;;  %v1488_v38 = vsel %vm234_vm5, %v4126_v7, 0.0  ;;  %2548 = vpow2.f32 %v1163_v8  ;;  %v1155_v54 = vmul.f32 1.442695, %v933_v57 }
 0x1da   :  { %v1157_v59 = vmul.f32 1.442695, %v934_v55  ;;  %v4137_v34 = vpop.eup %2546  ;;  %v1489_v27 = vadd.f32 %v1488_v38, %v1487_v35  ;;  %v1165_v9 = vmul.f32 1.442695, %v938_v37  ;;  %2550 = vpow2.f32 %v1151_v24 }
 0x1db   :  { %4865 = vst [vmem:[#allocation41_spill] sm:$0xff] %v4137_v34  ;;  %v4139_v30 = vperm.slane %v770_v58, 0  ;;  %v1468_v3 = vrot.slane %v1467_v4, 1  ;;  %v1456_v6 = vadd.f32 %v1455_v45, %v1454_v18  ;;  %v1504_v25 = vadd.f32 %v1503_v50, %v1502_v14 }
 0x1dc   :  { %2552 = vpow2.f32 %v1153_v41  ;;  %v1490_v5 = vrot.slane %v1489_v27, 4  ;;  %v725_v1 = vmul.f32 %v4107_v42, %v2895_v23  ;;  %v1535_v57 = vsel %vm234_vm5, %v4133_v43, 0.0 }
 0x1dd   :  { %2554 = vpow2.f32 %v1155_v54  ;;  %v947_v8 = vsub.f32 %v723_v2, %v4139_v30  ;;  %v1536_v37 = vsel %vm234_vm5, %v4137_v34, 0.0  ;;  %v948_v58 = vsub.f32 %v724_v49, %v4139_v30 }
 0x1de   :  { %2556 = vpow2.f32 %v1157_v59  ;;  %v2113_v50 = vsel %vm234_vm5, %v4000_v56, 0.0  ;;  %v1491_v18 = vadd.f32 %v1490_v5, %v1489_v27  ;;  %v2115_v2 = vsel %vm234_vm5, %v4019_v10, 0.0 }
 0x1df   :  { %2558 = vpow2.f32 %v1165_v9  ;;  %v1183_v14 = vmul.f32 1.442695, %v947_v8  ;;  %v4151_v45 = vpop.eup %2548  ;;  %v2114_v55 = vadd.f32 %v2113_v50, %v4097_v17  ;;  %v1505_v35 = vrot.slane %v1504_v25, 2 }
 0x1e0   :  { %v1185_v24 = vmul.f32 1.442695, %v948_v58  ;;  %v4156_v41 = vpop.eup %2550  ;;  %v1469_v38 = vadd.f32 %v1468_v3, %v1467_v4  ;;  %v1626_v49 = vsel %vm234_vm5, %v3937_v36, 0.0  ;;  %v1492_v54 = vrot.slane %v1491_v18, 2 }
 0x1e1   :  { %v1537_v56 = vadd.f32 %v1536_v37, %v1535_v57  ;;  %2560 = vrcp.f32 %v1456_v6  ;;  %v1522_v27 = vsel %vm234_vm5, %v4156_v41, 0.0  ;;  %v726_v17 = vmul.f32 %v4107_v42, %v2898_v26 }
 0x1e2   :  { %v4160_v59 = vpop.eup %2552  ;;  %v949_v10 = vsub.f32 %v725_v1, %v4139_v30  ;;  %v1627_v4 = vsel %vm234_vm5, %v3952_v16, 0.0  ;;  %v1493_v3 = vadd.f32 %v1492_v54, %v1491_v18  ;;  %2562 = vpow2.f32 %v1183_v14  ;;  %v593_v18 = vpop.permute.xlu0 %592 }
 0x1e3   :  { %v4167_v9 = vpop.eup %2554  ;;  %v1523_v5 = vsel %vm234_vm5, %v4160_v59, 0.0  ;;  %v1506_v6 = vadd.f32 %v1505_v35, %v1504_v25  ;;  %v1538_v57 = vsel %vm234_vm5, %v4151_v45, 0.0  ;;  %2564 = vpow2.f32 %v1185_v24 }
 0x1e4   :  { %v4173_v8 = vpop.eup %2556  ;;  %v1524_v37 = vadd.f32 %v1523_v5, %v1522_v27  ;;  %2566 = vrcp.f32 %v1469_v38  ;;  %v1494_v1 = vrot.slane %v1493_v3, 1  ;;  %v1539_v58 = vadd.f32 %v1538_v57, %v1537_v56 }
 0x1e5   :  { %v4177_v42 = vpop.eup %2558  ;;  %v1525_v50 = vsel %vm234_vm5, %v4167_v9, 0.0  ;;  %v950_v14 = vsub.f32 %v726_v17, %v4139_v30  ;;  %v1187_v16 = vmul.f32 1.442695, %v949_v10  ;;  %v769_v25 = vrot.slane %v4810_v61, 2 }
 0x1e6   :  { %4866 = vst [vmem:[#allocation42_spill] sm:$0xff] %v4177_v42  ;;  %v1526_v54 = vadd.f32 %v1525_v50, %v1524_v37  ;;  %v1990_v35 = vadd.f32 %v4069_v19, %v4092_v28  ;;  %v2116_v27 = vadd.f32 %v2115_v2, %v2114_v55  ;;  %v1628_v24 = vadd.f32 %v1627_v4, %v1626_v49 }
 0x1e7   :  { %v1527_v38 = vsel %vm234_vm5, %v4173_v8, 0.0  ;;  %v2561_v5 = vpop.eup %2560  ;;  %v1507_v56 = vrot.slane %v1506_v6, 1  ;;  %v1540_v57 = vsel %vm234_vm5, %v4177_v42, 0.0  ;;  %v719_v37 = vmul.f32 %v593_v18, %v2893_v13  ;;  %v4867_v42 = vld [vmem:[#allocation44_spill] sm:$0xff] }
 0x1e8   :  { %v1528_v34 = vadd.f32 %v1527_v38, %v1526_v54  ;;  %v4190_v30 = vpop.eup %2562  ;;  %v2117_v17 = vsel %vm234_vm5, %v4028_v22, 0.0  ;;  %v1495_v10 = vadd.f32 %v1494_v1, %v1493_v3  ;;  %v1541_v19 = vadd.f32 %v1540_v57, %v1539_v58 }
 0x1e9   :  { %v720_v28 = vmul.f32 %v593_v18, %v2889_v62  ;;  %v4195_v55 = vpop.eup %2564  ;;  %2568 = vpow2.f32 %v1187_v16  ;;  %v1189_v49 = vmul.f32 1.442695, %v950_v14  ;;  %v4197_v4 = vperm.slane %v769_v25, 0 }
 0x1ea   :  { %v1529_v2 = vrot.slane %v1528_v34, 4  ;;  %v2567_v50 = vpop.eup %2566  ;;  %v1992_v54 = vadd.f32 %v4085_v63, %v1990_v35  ;;  %v2118_v38 = vadd.f32 %v2117_v17, %v2116_v27  ;;  %v1724_v36 = vsel %vm1703_vm15, %v2561_v5, %v4867_v42  ;;  %v4868_v27 = vld [vmem:[#allocation51_spill] sm:$0xff] }
 0x1eb   :  { %v1629_v22 = vsel %vm234_vm5, %v3962_v39, 0.0  ;;  %v1508_v1 = vadd.f32 %v1507_v56, %v1506_v6  ;;  %v943_v57 = vsub.f32 %v719_v37, %v4197_v4  ;;  %2570 = vrcp.f32 %v1495_v10 }
 0x1ec   :  { %v1630_v3 = vadd.f32 %v1629_v22, %v1628_v24  ;;  %v1530_v58 = vadd.f32 %v1529_v2, %v1528_v34  ;;  %v1574_v16 = vsel %vm234_vm5, %v4190_v30, 0.0  ;;  %v1575_v14 = vsel %vm234_vm5, %v4195_v55, 0.0  ;;  %v4869_v2 = vld [vmem:[#allocation45_spill] sm:$0xff] }
 0x1ed   :  { %v944_v63 = vsub.f32 %v720_v28, %v4197_v4  ;;  %v1725_v25 = vsel %vm1705_vm0, %v2567_v50, %v1724_v36  ;;  %v1542_v42 = vrot.slane %v1541_v19, 4  ;;  %2572 = vpow2.f32 %v1189_v49 }
 0x1ee   :  { %v1531_v35 = vrot.slane %v1530_v58, 2  ;;  %v1900_v6 = vmul.f32 %v4868_v27, %v3945_v15  ;;  %v1994_v34 = vadd.f32 %v4088_v47, %v1992_v54  ;;  %v2119_v24 = vsel %vm234_vm5, %v4035_v29, 0.0 }
 0x1ef   :  { %v721_v5 = vmul.f32 %v593_v18, %v2895_v23  ;;  %v4217_v56 = vpop.eup %2568  ;;  %2574 = vrcp.f32 %v1508_v1  ;;  %v1576_v17 = vadd.f32 %v1575_v14, %v1574_v16  ;;  %v1175_v10 = vmul.f32 1.442695, %v943_v57 }
 0x1f0   :  { %v1532_v37 = vadd.f32 %v1531_v35, %v1530_v58  ;;  %v2120_v36 = vadd.f32 %v2119_v24, %v2118_v38  ;;  %v1631_v28 = vsel %vm234_vm5, %v3984_v48, 0.0  ;;  %v1726_v15 = vsel %vm1707_vm1, %v4869_v2, %v1725_v25  ;;  %v4872_v35 = vld [vmem:[#allocation31_spill] sm:$0xff] }
 0x1f1   :  { %v1177_v49 = vmul.f32 1.442695, %v944_v63  ;;  %v1995_v47 = vsel %vm234_vm5, %v4042_v46, 0.0  ;;  %v1632_v29 = vadd.f32 %v1631_v28, %v1630_v3  ;;  %v1543_v50 = vadd.f32 %v1542_v42, %v1541_v19  ;;  %v2571_v22 = vpop.eup %2570  ;;  %v4871_v19 = vld [vmem:[#allocation33_spill] sm:$0xff] }
 0x1f2   :  { %v1533_v54 = vrot.slane %v1532_v37, 1  ;;  %v2121_v1 = vsel %vm234_vm5, %v4046_v0, 0.0  ;;  %v1577_v38 = vsel %vm234_vm5, %v4217_v56, 0.0  ;;  %v722_v58 = vmul.f32 %v593_v18, %v2898_v26 }
 0x1f3   :  { %v945_v57 = vsub.f32 %v721_v5, %v4197_v4  ;;  %v4231_v16 = vpop.eup %2572  ;;  %v1727_v14 = vsel %vm1709_vm2, %v2571_v22, %v1726_v15  ;;  %v1578_v46 = vadd.f32 %v1577_v38, %v1576_v17  ;;  %2576 = vpow2.f32 %v1175_v10  ;;  %v609_v5 = vpop.permute.xlu1 %608 }
 0x1f4   :  { %4870 = vst [vmem:[#allocation20_spill] sm:$0xff] %v4231_v16  ;;  %v1534_v63 = vadd.f32 %v1533_v54, %v1532_v37  ;;  %v1902_v3 = vmul.f32 %v4871_v19, %v3954_v31  ;;  %v1996_v25 = vadd.f32 %v1995_v47, %v1994_v34  ;;  %v2122_v42 = vadd.f32 %v2121_v1, %v2120_v36 }
 0x1f5   :  { %2578 = vpow2.f32 %v1177_v49  ;;  %v2575_v0 = vpop.eup %2574  ;;  %v1904_v27 = vmul.f32 %v4872_v35, %v3954_v31  ;;  %v1633_v18 = vrot.slane %v1632_v29, 4  ;;  %v1544_v24 = vrot.slane %v1543_v50, 2 }
 0x1f6   :  { %2580 = vrcp.f32 %v1534_v63  ;;  %v1997_v28 = vsel %vm234_vm5, %v4050_v52, 0.0  ;;  %v1728_v37 = vsel %vm1711_vm3, %v2575_v0, %v1727_v14  ;;  %v1579_v17 = vsel %vm234_vm5, %v4231_v16, 0.0  ;;  %v4873_v0 = vld [vmem:[#allocation5_spill] sm:$0xff] }
 0x1f7   :  { %v773_v34 = vrot.slane %v4810_v61, 6  ;;  %v2123_v10 = vsel %vm234_vm5, %v1900_v6, 0.0  ;;  %v1580_v36 = vadd.f32 %v1579_v17, %v1578_v46  ;;  %v946_v2 = vsub.f32 %v722_v58, %v4197_v4 }
 0x1f8   :  { %v1179_v31 = vmul.f32 1.442695, %v945_v57  ;;  %2582 = vrcp.f32 %v3870_v12  ;;  %v1998_v15 = vadd.f32 %v1997_v28, %v1996_v25  ;;  %v2124_v49 = vadd.f32 %v2123_v10, %v2122_v42 }
 0x1f9   :  { %v735_v47 = vmul.f32 %v609_v5, %v2893_v13  ;;  %v4248_v52 = vpop.eup %2576  ;;  %v4251_v22 = vadd.f32 %v1633_v18, %v1632_v29  ;;  %v1545_v1 = vadd.f32 %v1544_v24, %v1543_v50  ;;  %v1729_v6 = vsel %vm1713_vm4, %v3878_v60, %v1728_v37 }
 0x1fa   :  { %v1999_v4 = vsel %vm234_vm5, %v1902_v3, 0.0  ;;  %v2125_v12 = vsel %vm234_vm5, %v1904_v27, 0.0  ;;  %v736_v58 = vmul.f32 %v609_v5, %v2889_v62  ;;  %v805_v57 = vperm.slane %v773_v34, 0  ;;  %v605_v34 = vpop.permute.xlu0 %604 }
 0x1fb   :  { %v4255_v38 = vpop.eup %2578  ;;  %v1581_v63 = vrot.slane %v1580_v36, 4  ;;  %2584 = vpow2.f32 %v1179_v31  ;;  %v1181_v46 = vmul.f32 1.442695, %v946_v2  ;;  %v737_v29 = vmul.f32 %v609_v5, %v2895_v23 }
 0x1fc   :  { %v2581_v14 = vpop.eup %2580  ;;  %v4261_v19 = vadd.f32 %v1999_v4, %v1998_v15  ;;  %v4263_v50 = vadd.f32 %v2125_v12, %v2124_v49  ;;  %v959_v25 = vsub.f32 %v735_v47, %v805_v57  ;;  %v1546_v42 = vrot.slane %v1545_v1, 1 }
 0x1fd   :  { %v1730_v60 = vsel %vm1715_vm6, %v2581_v14, %v1729_v6  ;;  %v772_v27 = vrot.slane %v4810_v61, 5  ;;  %v1561_v24 = vsel %vm234_vm5, %v4248_v52, 0.0  ;;  %v1562_v28 = vsel %vm234_vm5, %v4255_v38, 0.0  ;;  %v4874_v61 = vld [vmem:[#allocation7_spill] sm:$0xff]  ;;  %v4875_v6 = vld [vmem:[#allocation8_spill] sm:$0xff] }
 0x1fe   :  { %v1744_v35 = vmul.f32 %v4873_v0, %v1730_v60  ;;  %v4269_v18 = vpop.eup %2582  ;;  %v738_v37 = vmul.f32 %v609_v5, %v2898_v26  ;;  %v960_v17 = vsub.f32 %v736_v58, %v805_v57  ;;  %v1582_v2 = vadd.f32 %v1581_v63, %v1580_v36 }
 0x1ff   :  { %2586 = vpow2.f32 %v1181_v46  ;;  %v961_v31 = vsub.f32 %v737_v29, %v805_v57  ;;  %v1207_v49 = vmul.f32 1.442695, %v959_v25  ;;  %v4278_v47 = vmul.f32 %v4874_v61, %v2893_v13 }
 0x200   :  { %v1767_v10 = vrot.slane %v1744_v35, 4  ;;  %v1768_v15 = vrot.slane %v1744_v35, 5  ;;  %v4282_v4 = vmul.f32 %v4875_v6, %v2889_v62  ;;  %v4286_v14 = vadd.f32 %v1546_v42, %v1545_v1 }
 0x201   :  { %v4284_v12 = vpop.eup %2584  ;;  %v1769_v5 = vrot.slane %v1744_v35, 6  ;;  %v1563_v58 = vadd.f32 %v1562_v28, %v1561_v24  ;;  %v731_v36 = vmul.f32 %v605_v34, %v2893_v13  ;;  %v1770_v63 = vrot.slane %v1744_v35, 7 }
 0x202   :  { %v962_v46 = vsub.f32 %v738_v37, %v805_v57  ;;  %v1209_v29 = vmul.f32 1.442695, %v960_v17  ;;  %v732_v60 = vmul.f32 %v605_v34, %v2889_v62  ;;  %v1764_v25 = vrot.slane %v1744_v35, 1 }
 0x203   :  { %v4290_v0 = vperm.slane %v1767_v10, 0  ;;  %v1583_v61 = vrot.slane %v1582_v2, 2  ;;  %v1211_v54 = vmul.f32 1.442695, %v961_v31  ;;  %v4292_v6 = vperm.slane %v1768_v15, 0 }
 0x204   :  { %v1564_v1 = vsel %vm234_vm5, %v4284_v12, 0.0  ;;  %2588 = vpow2.f32 %v1207_v49  ;;  %v4296_v42 = vperm.slane %v772_v27, 0  ;;  %v1765_v13 = vrot.slane %v1744_v35, 2 }
 0x205   :  { %v4298_v24 = vpop.eup %2586  ;;  %v4300_v57 = vperm.slane %v1744_v35, 0  ;;  %v4302_v28 = vperm.slane %v1769_v5, 0  ;;  %v1565_v62 = vadd.f32 %v1564_v1, %v1563_v58  ;;  %v4304_v37 = vperm.slane %v1770_v63, 0 }
 0x206   :  { %4876 = vst [vmem:[#allocation38_spill] sm:$0xff] %v4298_v24  ;;  %2590 = vpow2.f32 %v1209_v29  ;;  %v733_v17 = vmul.f32 %v605_v34, %v2895_v23  ;;  %v955_v10 = vsub.f32 %v731_v36, %v4296_v42  ;;  %v1766_v31 = vrot.slane %v1744_v35, 3  ;;  %v4877_v35 = vld [vmem:[#allocation23_spill] sm:$0xff] }
 0x207   :  { %v4308_v15 = vperm.slane %v1764_v25, 0  ;;  %v4312_v27 = vmul.f32 %v4126_v7, %v4290_v0  ;;  %v1213_v49 = vmul.f32 1.442695, %v962_v46  ;;  %v4316_v5 = vmul.f32 %v4082_v20, %v4292_v6  ;;  %v4878_v7 = vld [vmem:[#allocation49_spill] sm:$0xff] }
 0x208   :  { %v1566_v58 = vsel %vm234_vm5, %v4298_v24, 0.0  ;;  %v734_v63 = vmul.f32 %v605_v34, %v2898_v26  ;;  %v956_v29 = vsub.f32 %v732_v60, %v4296_v42  ;;  %v4322_v36 = vperm.slane %v1765_v13, 0 }
 0x209   :  { %v1907_v25 = vmul.f32 %v4877_v35, %v4300_v57  ;;  %v4328_v1 = vmul.f32 %v4878_v7, %v4302_v28  ;;  %v1567_v46 = vadd.f32 %v1566_v58, %v1565_v62  ;;  %v4334_v20 = vmul.f32 %v4160_v59, %v4304_v37 }
 0x20a   :  { %v4330_v3 = vpop.eup %2588  ;;  %v4338_v34 = vmul.f32 %v4173_v8, %v4304_v37  ;;  %v957_v60 = vsub.f32 %v733_v17, %v4296_v42  ;;  %v1199_v13 = vmul.f32 1.442695, %v955_v10  ;;  %v4341_v16 = vperm.slane %v1766_v31, 0  ;;  %v4880_v8 = vld [vmem:[#allocation10_spill] sm:$0xff] }
 0x20b   :  { %v1911_v35 = vmul.f32 %v3912_v44, %v4308_v15  ;;  %v4345_v7 = vadd.f32 %v1583_v61, %v1582_v2  ;;  %2592 = vpow2.f32 %v1211_v54  ;;  %v958_v59 = vsub.f32 %v734_v63, %v4296_v42  ;;  %v4881_v44 = vld [vmem:[#allocation9_spill] sm:$0xff]  ;;  %v4883_v63 = vld [vmem:[#allocation35_spill] sm:$0xff] }
 0x20c   :  { %v4347_v62 = vpop.eup %2590  ;;  %2594 = vpow2.f32 %v1213_v49  ;;  %v1201_v58 = vmul.f32 1.442695, %v956_v29  ;;  %v4352_v24 = vmul.f32 %v4880_v8, %v2895_v23  ;;  %v1915_v17 = vmul.f32 %v3831_v32, %v4322_v36  ;;  %v4882_v23 = vld [vmem:[#allocation28_spill] sm:$0xff] }
 0x20d   :  { %4879 = vst [vmem:[#allocation39_spill] sm:$0xff] %v4347_v62  ;;  %v2064_v10 = vsel %vm234_vm5, %v1907_v25, 0.0  ;;  %v1568_v31 = vrot.slane %v1567_v46, 4  ;;  %v4359_v2 = vmul.f32 %v4881_v44, %v2898_v26  ;;  %v1613_v61 = vsel %vm234_vm5, %v4330_v3, 0.0 }
 0x20e   :  { %v2065_v54 = vadd.f32 %v2064_v10, %v4010_v40  ;;  %2596 = vpow2.f32 %v1199_v13  ;;  %v1203_v42 = vmul.f32 1.442695, %v957_v60  ;;  %v1909_v49 = vmul.f32 %v4882_v23, %v4300_v57 }
 0x20f   :  { %v1919_v32 = vmul.f32 %v4883_v63, %v4341_v16  ;;  %v2066_v29 = vsel %vm234_vm5, %v1911_v35, 0.0  ;;  %v1614_v25 = vsel %vm234_vm5, %v4347_v62, 0.0  ;;  %2598 = vpow2.f32 %v1201_v58  ;;  %v4884_v63 = vld [vmem:[#allocation47_spill] sm:$0xff] }
 0x210   :  { %v2067_v26 = vadd.f32 %v2066_v29, %v2065_v54  ;;  %v235_v40 = vsel %vm234_vm5, %v4278_v47, 0.0  ;;  %v236_v13 = vsel %vm234_vm5, %v4282_v4, 0.0  ;;  %v1913_v8 = vmul.f32 %v3928_v33, %v4308_v15 }
 0x211   :  { %v4375_v60 = vpop.eup %2592  ;;  %v1923_v10 = vmul.f32 %v4115_v51, %v4290_v0  ;;  %v2068_v35 = vsel %vm234_vm5, %v1915_v17, 0.0  ;;  %v1569_v44 = vadd.f32 %v1568_v31, %v1567_v46  ;;  %v1927_v58 = vmul.f32 %v4071_v21, %v4292_v6  ;;  %v4885_v31 = vld [vmem:[#allocation26_spill] sm:$0xff] }
 0x212   :  { %v4382_v23 = vpop.eup %2594  ;;  %v2069_v47 = vadd.f32 %v2068_v35, %v2067_v26  ;;  %v1615_v54 = vadd.f32 %v1614_v25, %v1613_v61  ;;  %2600 = vpow2.f32 %v1203_v42  ;;  %v1917_v4 = vmul.f32 %v3865_v11, %v4322_v36  ;;  %v4886_v61 = vld [vmem:[#allocation37_spill] sm:$0xff] }
 0x213   :  { %v1931_v33 = vmul.f32 %v4884_v63, %v4302_v28  ;;  %v2070_v29 = vsel %vm234_vm5, %v1919_v32, 0.0  ;;  %v2190_v51 = vsel %vm234_vm5, %v1909_v49, 0.0  ;;  %v1205_v48 = vmul.f32 1.442695, %v958_v59  ;;  %v4887_v49 = vld [vmem:[#allocation21_spill] sm:$0xff] }
 0x214   :  { %v4392_v17 = vpop.eup %2596  ;;  %v2071_v46 = vadd.f32 %v2070_v29, %v2069_v47  ;;  %v2191_v62 = vadd.f32 %v2190_v51, %v4885_v31  ;;  %v237_v21 = vadd.f32 %v236_v13, %v235_v40  ;;  %v1921_v42 = vmul.f32 %v4886_v61, %v4341_v16 }
 0x215   :  { %v2072_v25 = vsel %vm234_vm5, %v1923_v10, 0.0  ;;  %v2192_v11 = vsel %vm234_vm5, %v1913_v8, 0.0  ;;  %v1616_v26 = vsel %vm234_vm5, %v4375_v60, 0.0  ;;  %v4401_v32 = vpop.eup %2598  ;;  %v1906_v35 = vmul.f32 %v4887_v49, %v4300_v57 }
 0x216   :  { %v2073_v47 = vadd.f32 %v2072_v25, %v2071_v46  ;;  %v2074_v63 = vsel %vm234_vm5, %v1927_v58, 0.0  ;;  %v2193_v59 = vadd.f32 %v2192_v11, %v2191_v62  ;;  %v2076_v40 = vsel %vm234_vm5, %v1931_v33, 0.0 }
 0x217   :  { %v2194_v13 = vsel %vm234_vm5, %v1917_v4, 0.0  ;;  %v1570_v29 = vrot.slane %v1569_v44, 2  ;;  %v1617_v10 = vadd.f32 %v1616_v26, %v1615_v54  ;;  %v1618_v61 = vsel %vm234_vm5, %v4382_v23, 0.0 }
 0x218   :  { %v4408_v51 = vpop.eup %2600  ;;  %v2075_v8 = vadd.f32 %v2074_v63, %v2073_v47  ;;  %v2195_v31 = vadd.f32 %v2194_v13, %v2193_v59  ;;  %2602 = vpow2.f32 %v1205_v48  ;;  %v2196_v49 = vsel %vm234_vm5, %v1921_v42, 0.0 }
 0x219   :  { %v1571_v46 = vadd.f32 %v1570_v29, %v1569_v44  ;;  %v1619_v25 = vadd.f32 %v1618_v61, %v1617_v10  ;;  %v1600_v62 = vsel %vm234_vm5, %v4392_v17, 0.0  ;;  %v2078_v4 = vsel %vm234_vm5, %v4334_v20, 0.0 }
 0x21a   :  { %v2077_v58 = vadd.f32 %v2076_v40, %v2075_v8  ;;  %v2197_v54 = vadd.f32 %v2196_v49, %v2195_v31  ;;  %v1601_v33 = vsel %vm234_vm5, %v4401_v32, 0.0  ;;  %v2198_v11 = vsel %vm234_vm5, %v4312_v27, 0.0  ;;  %v4888_v27 = vld [vmem:[#allocation27_spill] sm:$0xff] }
 0x21b   :  { %v2200_v48 = vsel %vm234_vm5, %v4316_v5, 0.0  ;;  %v1620_v42 = vrot.slane %v1619_v25, 4  ;;  %v1602_v44 = vadd.f32 %v1601_v33, %v1600_v62  ;;  %v1603_v63 = vsel %vm234_vm5, %v4408_v51, 0.0 }
 0x21c   :  { %v4423_v26 = vadd.f32 %v2078_v4, %v2077_v58  ;;  %v2199_v47 = vadd.f32 %v2198_v11, %v2197_v54  ;;  %v238_v20 = vsel %vm234_vm5, %v4352_v24, 0.0  ;;  %v1572_v59 = vrot.slane %v1571_v46, 1 }
 0x21d   :  { %v1621_v40 = vadd.f32 %v1620_v42, %v1619_v25  ;;  %v1604_v13 = vadd.f32 %v1603_v63, %v1602_v44  ;;  %v239_v29 = vadd.f32 %v238_v20, %v237_v21  ;;  %v1908_v5 = vmul.f32 %v4888_v27, %v4300_v57  ;;  %v4889_v21 = vld [vmem:[#allocation59_spill] sm:$0xff] }
 0x21e   :  { %v4429_v10 = vpop.eup %2602  ;;  %v2201_v8 = vadd.f32 %v2200_v48, %v2199_v47  ;;  %v1585_v31 = vrot.slane %v4345_v7, 1  ;;  %v240_v61 = vsel %vm234_vm5, %v4359_v2, 0.0  ;;  %v2202_v49 = vsel %vm234_vm5, %v4328_v1, 0.0 }
 0x21f   :  { %v1622_v62 = vrot.slane %v1621_v40, 2  ;;  %v1605_v24 = vsel %vm234_vm5, %v4429_v10, 0.0  ;;  %v241_v25 = vadd.f32 %v240_v61, %v239_v29  ;;  %v1910_v58 = vmul.f32 %v4889_v21, %v4308_v15 }
 0x220   :  { %v2001_v4 = vsel %vm234_vm5, %v1906_v35, 0.0  ;;  %v2203_v57 = vadd.f32 %v2202_v49, %v2201_v8  ;;  %v1606_v54 = vadd.f32 %v1605_v24, %v1604_v13  ;;  %v2204_v33 = vsel %vm234_vm5, %v4338_v34, 0.0  ;;  %v4891_v35 = vld [vmem:[#allocation13_spill] sm:$0xff]  ;;  %v4894_v49 = vld [vmem:[#allocation6_spill] sm:$0xff] }
 0x221   :  { %v1573_v11 = vadd.f32 %v1572_v59, %v1571_v46  ;;  %v1623_v2 = vadd.f32 %v1622_v62, %v1621_v40  ;;  %v242_v48 = vrot.slane %v241_v25, 4  ;;  %v4890_v1 = vrot.slane %v4251_v22, 2  ;;  %v4892_v46 = vld [vmem:[#allocation58_spill] sm:$0xff] }
 0x222   :  { %v2002_v44 = vadd.f32 %v2001_v4, %v4261_v19  ;;  %v4449_v47 = vadd.f32 %v2204_v33, %v2203_v57  ;;  %v1607_v63 = vrot.slane %v1606_v54, 4  ;;  %2604 = vrcp.f32 %v4286_v14 }
 0x223   :  { %v1636_v42 = vadd.f32 %v4890_v1, %v4251_v22  ;;  %v1912_v20 = vmul.f32 %v4891_v35, %v4308_v15  ;;  %v2127_v13 = vsel %vm234_vm5, %v1908_v5, 0.0  ;;  %v243_v34 = vadd.f32 %v242_v48, %v241_v25  ;;  %v4896_v1 = vld [vmem:[#allocation36_spill] sm:$0xff] }
 0x224   :  { %v1914_v59 = vmul.f32 %v4892_v46, %v4322_v36  ;;  %v2128_v40 = vadd.f32 %v2127_v13, %v4263_v50  ;;  %v1586_v22 = vadd.f32 %v1585_v31, %v4345_v7  ;;  %v1608_v29 = vadd.f32 %v1607_v63, %v1606_v54  ;;  %v4897_v46 = vld [vmem:[#allocation14_spill] sm:$0xff] }
 0x225   :  { %v2003_v19 = vsel %vm234_vm5, %v1910_v58, 0.0  ;;  %2606 = vrcp.f32 %v1573_v11  ;;  %v1624_v27 = vrot.slane %v1623_v2, 1  ;;  %v244_v8 = vrot.slane %v243_v34, 2  ;;  %v4895_v58 = vld [vmem:[#allocation34_spill] sm:$0xff] }
 0x226   :  { %v2004_v14 = vadd.f32 %v2003_v19, %v2002_v44  ;;  %v1609_v61 = vrot.slane %v1608_v29, 2  ;;  %v4893_v15 = vrot.slane %v3883_v53, 1  ;;  %v1916_v62 = vmul.f32 %v4894_v49, %v4322_v36 }
 0x227   :  { %v2129_v24 = vsel %vm234_vm5, %v1912_v20, 0.0  ;;  %v245_v50 = vadd.f32 %v244_v8, %v243_v34  ;;  %v1637_v25 = vrot.slane %v1636_v42, 1  ;;  %2608 = vrcp.f32 %v1586_v22 }
 0x228   :  { %v1599_v5 = vadd.f32 %v4893_v15, %v3883_v53  ;;  %v2130_v7 = vadd.f32 %v2129_v24, %v2128_v40  ;;  %v1610_v31 = vadd.f32 %v1609_v61, %v1608_v29  ;;  %v2605_v21 = vpop.eup %2604  ;;  %v1918_v4 = vmul.f32 %v4895_v58, %v4341_v16  ;;  %v4899_v15 = vld [vmem:[#allocation18_spill] sm:$0xff] }
 0x229   :  { %v2005_v57 = vsel %vm234_vm5, %v1914_v59, 0.0  ;;  %v1625_v54 = vadd.f32 %v1624_v27, %v1623_v2  ;;  %v246_v33 = vrot.slane %v245_v50, 1  ;;  %v249_v36 = vstv %s4672_s5  ;;  %v4898_v27 = vld [vmem:[#allocation24_spill] sm:$0xff] }
 0x22a   :  { %v2006_v11 = vadd.f32 %v2005_v57, %v2004_v14  ;;  %v1611_v53 = vrot.slane %v1610_v31, 1  ;;  %2610 = vrcp.f32 %v1599_v5  ;;  %v1920_v44 = vmul.f32 %v4896_v1, %v4341_v16 }
 0x22b   :  { %v2607_v48 = vpop.eup %2606  ;;  %v2131_v63 = vsel %vm234_vm5, %v1916_v62, 0.0  ;;  %v247_v35 = vadd.f32 %v246_v33, %v245_v50  ;;  %v1638_v20 = vadd.f32 %v1637_v25, %v1636_v42  ;;  %v1731_v13 = vsel %vm1703_vm15, %v4269_v18, %v2605_v21  ;;  %v4900_v25 = vld [vmem:[#allocation17_spill] sm:$0xff] }
 0x22c   :  { %v2132_v2 = vadd.f32 %v2131_v63, %v2130_v7  ;;  %v1612_v34 = vadd.f32 %v1611_v53, %v1610_v31  ;;  %v1922_v59 = vmul.f32 %v4897_v46, %v4290_v0  ;;  %v2007_v40 = vsel %vm234_vm5, %v1918_v4, 0.0  ;;  %v4901_v4 = vld [vmem:[#allocation46_spill] sm:$0xff]  ;;  %v4902_v53 = vld [vmem:[#allocation48_spill] sm:$0xff] }
 0x22d   :  { %2612 = vrcp.f32 %v1625_v54  ;;  %v250_v22 = vadd.f32 %v249_v36, %v247_v35  ;;  %v2609_v29 = vpop.eup %2608  ;;  %v2008_v19 = vadd.f32 %v2007_v40, %v2006_v11  ;;  %v1732_v16 = vsel %vm1705_vm0, %v2607_v48, %v1731_v13  ;;  %v4903_v13 = vld [vmem:[#allocation4_spill] sm:$0xff] }
 0x22e   :  { %2614 = vrcp.f32 %v1612_v34  ;;  %v1924_v42 = vmul.f32 %v4898_v27, %v4290_v0  ;;  %v2133_v8 = vsel %vm234_vm5, %v1920_v44, 0.0  ;;  %v1926_v5 = vmul.f32 %v4899_v15, %v4292_v6 }
 0x22f   :  { %v2259_v18 = vmul.f32 -1.442695, %v250_v22  ;;  %2616 = vrcp.f32 %v1638_v20  ;;  %v2134_v14 = vadd.f32 %v2133_v8, %v2132_v2  ;;  %v2009_v49 = vsel %vm234_vm5, %v1922_v59, 0.0 }
 0x230   :  { %v2611_v61 = vpop.eup %2610  ;;  %v1733_v62 = vsel %vm1707_vm1, %v2609_v29, %v1732_v16  ;;  %v2010_v24 = vadd.f32 %v2009_v49, %v2008_v19  ;;  %v1928_v7 = vmul.f32 %v4900_v25, %v4292_v6  ;;  %v2135_v0 = vsel %vm234_vm5, %v1924_v42, 0.0  ;;  %v4904_v25 = vld [vmem:[#allocation32_spill] sm:$0xff] }
 0x231   :  { %2618 = vpow2.f32 %v2259_v18  ;;  %v2136_v21 = vadd.f32 %v2135_v0, %v2134_v14  ;;  %v1734_v58 = vsel %vm1709_vm2, %v2611_v61, %v1733_v62  ;;  %v1930_v57 = vmul.f32 %v4901_v4, %v4302_v28 }
 0x232   :  { %v2011_v54 = vsel %vm234_vm5, %v1926_v5, 0.0  ;;  %v1932_v36 = vmul.f32 %v4902_v53, %v4302_v28  ;;  %v2137_v44 = vsel %vm234_vm5, %v1928_v7, 0.0  ;;  %v1934_v35 = vmul.f32 %v4156_v41, %v4304_v37 }
 0x233   :  { %v2613_v50 = vpop.eup %2612  ;;  %v2012_v48 = vadd.f32 %v2011_v54, %v2010_v24  ;;  %v2138_v20 = vadd.f32 %v2137_v44, %v2136_v21  ;;  %v2013_v46 = vsel %vm234_vm5, %v1930_v57, 0.0  ;;  %v1936_v28 = vmul.f32 %v4167_v9, %v4304_v37 }
 0x234   :  { %v2615_v31 = vpop.eup %2614  ;;  %v2139_v40 = vsel %vm234_vm5, %v1932_v36, 0.0  ;;  %v2015_v27 = vsel %vm234_vm5, %v1934_v35, 0.0 }
 0x235   :  { %v1735_v33 = vsel %vm1711_vm3, %v2615_v31, %v1734_v58  ;;  %v2617_v11 = vpop.eup %2616  ;;  %v2014_v59 = vadd.f32 %v2013_v46, %v2012_v48  ;;  %v2140_v41 = vadd.f32 %v2139_v40, %v2138_v20  ;;  %v2141_v37 = vsel %vm234_vm5, %v1936_v28, 0.0  ;;  %v4908_v20 = vld [vmem:[#allocation43_spill] sm:$0xff]  ;;  %v4909_v46 = vld [vmem:[#allocation52_spill] sm:$0xff] }
 0x236   :  { %v1736_v6 = vsel %vm1713_vm4, %v2613_v50, %v1735_v33 }
 0x237   :  { %v2619_v1 = vpop.eup %2618  ;;  %v1737_v63 = vsel %vm1715_vm6, %v2617_v11, %v1736_v6  ;;  %v2016_v9 = vadd.f32 %v2015_v27, %v2014_v59  ;;  %v2142_v31 = vadd.f32 %v2141_v37, %v2140_v41  ;;  %v4905_v11 = vld [vmem:[#allocation54_spill] sm:$0xff] }
 0x238   :  { %v1745_v2 = vmul.f32 %v4903_v13, %v1737_v63  ;;  %v254_v34 = vadd.f32 1.0, %v2619_v1 }
 0x23a   :  { %2620 = vrcp.f32 %v254_v34  ;;  %v1771_v22 = vrot.slane %v1745_v2, 1  ;;  %v1772_v29 = vrot.slane %v1745_v2, 2  ;;  %v1773_v19 = vrot.slane %v1745_v2, 3 }
 0x23b   :  { %v1774_v16 = vrot.slane %v1745_v2, 4  ;;  %v1775_v42 = vrot.slane %v1745_v2, 5  ;;  %v1776_v8 = vrot.slane %v1745_v2, 6  ;;  %v1777_v18 = vrot.slane %v1745_v2, 7 }
 0x23c   :  { %v4509_v14 = vperm.slane %v1745_v2, 0  ;;  %v4511_v61 = vperm.slane %v1771_v22, 0  ;;  %v4513_v15 = vperm.slane %v1772_v29, 0  ;;  %v4516_v5 = vperm.slane %v1773_v19, 0 }
 0x23d   :  { %v4518_v49 = vperm.slane %v1774_v16, 0  ;;  %v264_v62 = vand.u32 2147483647, %v254_v34  ;;  %v4520_v24 = vperm.slane %v1775_v42, 0  ;;  %vm260_vm7 = vweird.f32 %v254_v34 }
 0x23e   :  { %v1938_v50 = vmul.f32 %v4133_v43, %v4509_v14  ;;  %v1942_v7 = vmul.f32 %v4904_v25, %v4511_v61  ;;  %v4526_v21 = vperm.slane %v1776_v8, 0  ;;  %v4528_v4 = vperm.slane %v1777_v18, 0  ;;  %v4911_v25 = vld [vmem:[#allocation41_spill] sm:$0xff] }
 0x23f   :  { %v1946_v57 = vmul.f32 %v4248_v52, %v4513_v15  ;;  %v266_v33 = vand.u32 2147483648, %v254_v34  ;;  %v1950_v43 = vmul.f32 %v4190_v30, %v4516_v5  ;;  %v1954_v53 = vmul.f32 %v4905_v11, %v4518_v49 }
 0x240   :  { %v2621_v0 = vpop.eup %2620  ;;  %v2017_v54 = vsel %vm234_vm5, %v1938_v50, 0.0  ;;  %vm4537_vm8 = vcmp.eq.f32.partialorder %v264_v62, 8.507059e+37  ;;  %v1958_v1 = vmul.f32 %v4392_v17, %v4520_v24  ;;  %v2019_v52 = vsel %vm234_vm5, %v1942_v7, 0.0 }
 0x241   :  { %v256_v58 = vmul.f32 %v2621_v0, %v254_v34  ;;  %v2018_v36 = vadd.f32 %v2017_v54, %v2016_v9  ;;  %vm261_vm9 = vweird.f32 %v2621_v0  ;;  %v1962_v44 = vmul.f32 %v4330_v3, %v4526_v21  ;;  %v4910_v9 = vld [vmem:[#allocation56_spill] sm:$0xff] }
 0x242   :  { %v1940_v30 = vmul.f32 %v4151_v45, %v4509_v14  ;;  %v1966_v13 = vmul.f32 %v4908_v20, %v4528_v4  ;;  %v2021_v2 = vsel %vm234_vm5, %v1946_v57, 0.0  ;;  %v1944_v28 = vmul.f32 %v4909_v46, %v4511_v61  ;;  %vm262_vm10 = vmor %vm260_vm7, %vm261_vm9  ;;  %v333_v20 = vpop.f32.mrf.mxu1 }
 0x243   :  { %v257_v48 = vsub.f32 1.0, %v256_v58  ;;  %v2020_v63 = vadd.f32 %v2019_v52, %v2018_v36  ;;  %v267_v17 = vor.u32 1.1754944e-38, %v266_v33  ;;  %v2023_v40 = vsel %vm234_vm5, %v1950_v43, 0.0  ;;  %v4912_v43 = vld [vmem:[#allocation11_spill] sm:$0xff]  ;;  %v4913_v36 = vld [vmem:[#allocation30_spill] sm:$0xff] }
 0x244   :  { %v2025_v22 = vsel %vm234_vm5, %v1954_v53, 0.0  ;;  %v2027_v29 = vsel %vm234_vm5, %v1958_v1, 0.0  ;;  %v1948_v45 = vmul.f32 %v4284_v12, %v4513_v15  ;;  %v2143_v19 = vsel %vm234_vm5, %v1940_v30, 0.0 }
 0x245   :  { %v258_v35 = vmul.f32 %v2621_v0, %v257_v48  ;;  %v2022_v59 = vadd.f32 %v2021_v2, %v2020_v63  ;;  %v2029_v27 = vsel %vm234_vm5, %v1962_v44, 0.0  ;;  %v1952_v41 = vmul.f32 %v4217_v56, %v4516_v5  ;;  %v4914_v2 = vld [vmem:[#allocation55_spill] sm:$0xff] }
 0x246   :  { %v2144_v42 = vadd.f32 %v2143_v19, %v2142_v31  ;;  %v2031_v18 = vsel %vm234_vm5, %v1966_v13, 0.0  ;;  %v1956_v37 = vmul.f32 %v4910_v9, %v4518_v49  ;;  %v2145_v12 = vsel %vm234_vm5, %v1944_v28, 0.0  ;;  %v4918_v9 = vld [vmem:[#allocation40_spill] sm:$0xff] }
 0x247   :  { %v259_v3 = vadd.f32 %v2621_v0, %v258_v35  ;;  %v2024_v16 = vadd.f32 %v2023_v40, %v2022_v59  ;;  %v1939_v7 = vmul.f32 %v4911_v25, %v4509_v14  ;;  %v1960_v56 = vmul.f32 %v4408_v51, %v4520_v24  ;;  %v4915_v40 = vld [vmem:[#allocation42_spill] sm:$0xff] }
 0x248   :  { %v2146_v50 = vadd.f32 %v2145_v12, %v2144_v42  ;;  %v1968_v31 = vmul.f32 %v3962_v39, %v4528_v4  ;;  %v2147_v58 = vsel %vm234_vm5, %v1948_v45, 0.0  ;;  %v2149_v33 = vsel %vm234_vm5, %v1952_v41, 0.0  ;;  %v4917_v41 = vld [vmem:[#allocation57_spill] sm:$0xff]  ;;  %v4919_v12 = vld [vmem:[#allocation39_spill] sm:$0xff] }
 0x249   :  { %v263_v8 = vsel %vm262_vm10, %v2621_v0, %v259_v3  ;;  %v2026_v34 = vadd.f32 %v2025_v22, %v2024_v16  ;;  %v1964_v0 = vmul.f32 %v4375_v60, %v4526_v21  ;;  %v1943_v11 = vmul.f32 %v4912_v43, %v4511_v61  ;;  %v4916_v16 = vld [vmem:[#allocation53_spill] sm:$0xff] }
 0x24a   :  { %v4570_v62 = vsel %vm4537_vm8, %v267_v17, %v263_v8  ;;  %v2148_v54 = vadd.f32 %v2147_v58, %v2146_v50  ;;  %v2151_v51 = vsel %vm234_vm5, %v1956_v37, 0.0  ;;  %v1947_v60 = vmul.f32 %v4255_v38, %v4513_v15 }
 0x24b   :  { %v2028_v57 = vadd.f32 %v2027_v29, %v2026_v34  ;;  %v4585_v53 = vsub.f32 1.0, %v4570_v62  ;;  %v1967_v39 = vmul.f32 %v4913_v36, %v4528_v4  ;;  %v1951_v1 = vmul.f32 %v4195_v55, %v4516_v5  ;;  %v336_v36 = vpop.f32.mrf.mxu1 }
 0x24c   :  { %v2150_v6 = vadd.f32 %v2149_v33, %v2148_v54  ;;  %v2080_v52 = vsel %vm234_vm5, %v1939_v7, 0.0  ;;  %v2153_v44 = vsel %vm234_vm5, %v1960_v56, 0.0  ;;  %v2155_v63 = vsel %vm234_vm5, %v1964_v0, 0.0  ;;  %v339_v56 = vpop.f32.mrf.mxu2  ;;  %v4921_v0 = vld [vmem:[#allocation20_spill] sm:$0xff] }
 0x24d   :  { %v2030_v48 = vadd.f32 %v2029_v27, %v2028_v57  ;;  %v2157_v30 = vsel %vm234_vm5, %v1968_v31, 0.0  ;;  %v2081_v35 = vadd.f32 %v2080_v52, %v4423_v26  ;;  %v1955_v46 = vmul.f32 %v4914_v2, %v4518_v49 }
 0x24e   :  { %v2152_v13 = vadd.f32 %v2151_v51, %v2150_v6  ;;  %v2082_v28 = vsel %vm234_vm5, %v1943_v11, 0.0  ;;  %v2227_v55 = vmul.f32 %v4585_v53, %v333_v20  ;;  %v1959_v17 = vmul.f32 %v4401_v32, %v4520_v24 }
 0x24f   :  { %v2032_v38 = vadd.f32 %v2031_v18, %v2030_v48  ;;  %v2083_v59 = vadd.f32 %v2082_v28, %v2081_v35  ;;  %v1941_v22 = vmul.f32 %v4915_v40, %v4509_v14  ;;  %v2084_v29 = vsel %vm234_vm5, %v1947_v60, 0.0 }
 0x250   :  { %v2154_v26 = vadd.f32 %v2153_v44, %v2152_v13  ;;  %v2086_v45 = vsel %vm234_vm5, %v1951_v1, 0.0  ;;  %v1945_v27 = vmul.f32 %v4916_v16, %v4511_v61  ;;  %v1957_v42 = vmul.f32 %v4917_v41, %v4518_v49  ;;  %v4920_v61 = vld [vmem:[#allocation38_spill] sm:$0xff] }
 0x251   :  { %v2222_v3 = vmul.f32 %v2032_v38, %v4570_v62  ;;  %v2085_v19 = vadd.f32 %v2084_v29, %v2083_v59  ;;  %v1961_v32 = vmul.f32 %v4429_v10, %v4520_v24  ;;  %v1965_v14 = vmul.f32 %v4382_v23, %v4526_v21 }
 0x252   :  { %v2156_v18 = vadd.f32 %v2155_v63, %v2154_v26  ;;  %v1969_v37 = vmul.f32 %v4918_v9, %v4528_v4  ;;  %v1963_v34 = vmul.f32 %v4919_v12, %v4526_v21  ;;  %v1949_v25 = vmul.f32 %v4920_v61, %v4513_v15 }
 0x253   :  { %v2231_v8 = vadd.f32 %v2227_v55, %v2222_v3  ;;  %v2087_v50 = vadd.f32 %v2086_v45, %v2085_v19  ;;  %v2206_v49 = vsel %vm234_vm5, %v1941_v22, 0.0  ;;  %v2088_v10 = vsel %vm234_vm5, %v1955_v46, 0.0 }
 0x254   :  { %v2158_v7 = vadd.f32 %v2157_v30, %v2156_v18  ;;  %v2207_v24 = vadd.f32 %v2206_v49, %v4449_v47  ;;  %v1953_v4 = vmul.f32 %v4921_v0, %v4516_v5  ;;  %v2208_v31 = vsel %vm234_vm5, %v1945_v27, 0.0  ;;  %v4922_v30 = vld [vmem:[#allocation3_spill] sm:$0xff]  ;;  %v342_v59 = vpop.f32.mrf.mxu2 }
 0x255   :  { %2622 = vlog2.f32 %v2231_v8  ;;  %v2089_v23 = vadd.f32 %v2088_v10, %v2087_v50  ;;  %v2229_v58 = vmul.f32 %v4585_v53, %v339_v56  ;;  %v2090_v15 = vsel %vm234_vm5, %v1959_v17, 0.0 }
 0x256   :  { %v2224_v21 = vmul.f32 %v2158_v7, %v4570_v62  ;;  %v2209_v57 = vadd.f32 %v2208_v31, %v2207_v24  ;;  %v2210_v33 = vsel %vm234_vm5, %v1949_v25, 0.0  ;;  %v2092_v47 = vsel %vm234_vm5, %v1963_v34, 0.0 }
 0x257   :  { %v2091_v54 = vadd.f32 %v2090_v15, %v2089_v23  ;;  %v2212_v60 = vsel %vm234_vm5, %v1953_v4, 0.0  ;;  %v2094_v48 = vsel %vm234_vm5, %v1967_v39, 0.0  ;;  %v2214_v44 = vsel %vm234_vm5, %v1957_v42, 0.0 }
 0x258   :  { %v2233_v43 = vadd.f32 %v2229_v58, %v2224_v21  ;;  %v2211_v11 = vadd.f32 %v2210_v33, %v2209_v57  ;;  %v2228_v38 = vmul.f32 %v4585_v53, %v336_v36  ;;  %v2216_v13 = vsel %vm234_vm5, %v1961_v32, 0.0 }
 0x259   :  { %v2093_v51 = vadd.f32 %v2092_v47, %v2091_v54  ;;  %v2218_v46 = vsel %vm234_vm5, %v1965_v14, 0.0  ;;  %v2220_v40 = vsel %vm234_vm5, %v1969_v37, 0.0  ;;  %v2230_v29 = vmul.f32 %v4585_v53, %v342_v59 }
 0x25a   :  { %2624 = vlog2.f32 %v2233_v43  ;;  %v2213_v6 = vadd.f32 %v2212_v60, %v2211_v11 }
 0x25b   :  { %v2623_v5 = vpop.eup %2622  ;;  %v2095_v52 = vadd.f32 %v2094_v48, %v2093_v51 }
 0x25c   :  { %v2236_v1 = vmul.f32 0.6931472, %v2623_v5  ;;  %v2215_v63 = vadd.f32 %v2214_v44, %v2213_v6 }
 0x25d   :  { %v2223_v20 = vmul.f32 %v2095_v52, %v4570_v62 }
 0x25e   :  { %v2243_v35 = vadd.f32 %v2236_v1, %v4922_v30  ;;  %v2217_v2 = vadd.f32 %v2216_v13, %v2215_v63 }
 0x25f   :  { %v2232_v39 = vadd.f32 %v2228_v38, %v2223_v20 }
 0x260   :  { %2247 = vst.msk [vmem:[%s4673_s8] sm:$0xff] %vm234_vm5, %v2243_v35  ;;  %v2625_v28 = vpop.eup %2624  ;;  %v2219_v55 = vadd.f32 %v2218_v46, %v2217_v2 }
 0x261   :  { %v2240_v17 = vmul.f32 0.6931472, %v2625_v28  ;;  %2626 = vlog2.f32 %v2232_v39 }
 0x262   :  { %v2221_v22 = vadd.f32 %v2220_v40, %v2219_v55 }
 0x263   :  { %v2245_v3 = vadd.f32 %v2240_v17, %v4922_v30 }
 0x264   :  { %v2225_v26 = vmul.f32 %v2221_v22, %v4570_v62 }
 0x265   :  { %2249 = vst.msk [vmem:[%s4673_s8 + $0x10] sm:$0xff] %vm234_vm5, %v2245_v3 }
 0x266   :  { %v2234_v45 = vadd.f32 %v2230_v29, %v2225_v26 }
 0x267   :  { %v2627_v19 = vpop.eup %2626 }
 0x268   :  { %v2238_v16 = vmul.f32 0.6931472, %v2627_v19  ;;  %2628 = vlog2.f32 %v2234_v45 }
 0x26a   :  { %v2244_v27 = vadd.f32 %v2238_v16, %v4922_v30 }
 0x26c   :  { %2248 = vst.msk [vmem:[%s4673_s8 + $0x8] sm:$0xff] %vm234_vm5, %v2244_v27 }
 0x26e   :  { %v2629_v41 = vpop.eup %2628 }
 0x26f   :  { %v2242_v62 = vmul.f32 0.6931472, %v2629_v41 }
 0x271   :  { %v2246_v53 = vadd.f32 %v2242_v62, %v4922_v30 }
 0x273   :  { %2250 = vst.msk [vmem:[%s4673_s8 + $0x18] sm:$0xff] %vm234_vm5, %v2246_v53 }

</bundles_post_ra>
